<compile_context>
chip_gen: v6e
topology: v6e:2x2x1
jax: 0.10.0
libtpu: 0.0.40
codegen_flags: <defaults>
</compile_context>

<pallas_src>
import functools

import numpy as np
import jax
import jax.numpy as jnp
from jax import lax
from jax.experimental import pallas as pl
from jax.experimental.pallas import tpu as pltpu


# ---------------------------------------------------------------------------
# Pallas kernel: conv1+relu -> conv2+relu -> conv3+relu -> fc, with all
# BatchNorms folded into the next linear op's weights at init time.
# ---------------------------------------------------------------------------
def melspec_kernel(x_ref,
                   w1_ref, b1_ref, p1_ref,
                   w2_ref, b2_ref, p2_ref,
                   w3_ref, b3_ref, p3_ref,
                   wfc_ref, bfc_ref,
                   out_ref,
                   *, b_tile, seq_len):
    M = seq_len * b_tile                      # slab rows; row r = t*b_tile + b

    def conv_relu(y, w_ref, b_ref, p_ref):
        # y: (M, Cin) bf16 time-major slab.  Conv1d(k=3, padding=1) as ONE
        # im2col matmul: LHS row r = [y[t-1] | y[t] | y[t+1]] where a +/-1
        # time shift is a +/-b_tile slab-row shift (sublane-aligned for
        # b_tile=16).  Boundary rows use the per-channel pad value p
        # (= -shift/scale of the previous layer's folded BatchNorm, 0 for
        # layer 1) so the original zero padding is reproduced exactly.
        cin = y.shape[-1]
        pad = jnp.broadcast_to(p_ref[...], (b_tile, cin))
        up = jnp.concatenate([pad, y[:M - b_tile, :]], axis=0)      # y[t-1]
        dn = jnp.concatenate([y[b_tile:, :], pad], axis=0)          # y[t+1]
        lhs = jnp.concatenate([up, y, dn], axis=-1)                 # (M, 3*Cin)
        z = jnp.dot(lhs, w_ref[...], preferred_element_type=jnp.float32)
        z = jnp.maximum(z + b_ref[...], 0.0)                        # bias + ReLU
        return z.astype(jnp.bfloat16)        # single f32->bf16 cast per layer

    # Reorder the (b_tile, L, F) input block into the time-major slab (M, F):
    # per-time-step slices concatenated along sublanes (no big relayout), with
    # a single f32->bf16 cast (no bf16->f32 round trip).
    xv = x_ref[...]                                                  # (Bt, L, F)
    x = jnp.concatenate([xv[:, t, :] for t in range(seq_len)],
                        axis=0).astype(jnp.bfloat16)                 # (M, F)

    y1 = conv_relu(x,  w1_ref, b1_ref, p1_ref)                       # (M, 64)
    y2 = conv_relu(y1, w2_ref, b2_ref, p2_ref)                       # (M, 128)
    y3 = conv_relu(y2, w3_ref, b3_ref, p3_ref)                       # (M, 256)

    # Fully connected as ONE (b_tile, L*256) @ (L*256, NCP) matmul.  The FC
    # weight was pre-permuted (and BN3-folded) at init so LHS lane t*256+c
    # must hold y3[t*b_tile + b, c]: build it as a lane concat of L aligned
    # (b_tile, 256) slab slices.  The time reduction happens inside the MXU's
    # f32 accumulator — no per-time matmuls, no cross-slab sum.
    lhs = jnp.concatenate(
        [y3[t * b_tile:(t + 1) * b_tile, :] for t in range(seq_len)], axis=-1)
    out = jnp.dot(lhs, wfc_ref[...], preferred_element_type=jnp.float32)
    out_ref[...] = (out + bfc_ref[...]).astype(out_ref.dtype)


# ---------------------------------------------------------------------------
# Wrapper: grid over batch tiles, grid-invariant weight BlockSpecs.
# ---------------------------------------------------------------------------
def melspec_forward(x, params, *, n_categories, b_tile=16):
    (w1, b1, p1, w2, b2, p2, w3, b3, p3, wfc, bfc) = params
    B, L, F = x.shape
    KFC, NCP = wfc.shape

    # Pad batch to a multiple of the batch tile (no transpose, no dtype pass:
    # the time-major reorder and the single bf16 cast happen in-kernel).
    Bp = ((B + b_tile - 1) // b_tile) * b_tile
    if Bp != B:
        x = jnp.pad(x, ((0, Bp - B), (0, 0), (0, 0)))

    def full(a):
        return pl.BlockSpec(a.shape, lambda i, _n=a.ndim: (0,) * _n)

    grid = (Bp // b_tile,)
    M = L * b_tile

    # Advisory cost estimate so XLA overlaps surrounding ops with the call.
    conv_flops = sum(2 * M * int(w.shape[0]) * int(w.shape[1])
                     for w in (w1, w2, w3))
    fc_flops = 2 * b_tile * KFC * NCP
    weight_bytes = sum(int(a.size) * a.dtype.itemsize for a in params)
    cost = pl.CostEstimate(
        flops=int(grid[0] * (conv_flops + fc_flops)),
        transcendentals=0,
        bytes_accessed=int(x.size * x.dtype.itemsize
                           + Bp * NCP * 4
                           + grid[0] * weight_bytes))

    kernel = functools.partial(melspec_kernel, b_tile=b_tile, seq_len=L)

    out = pl.pallas_call(
        kernel,
        out_shape=jax.ShapeDtypeStruct((Bp, NCP), jnp.float32),
        grid=grid,
        in_specs=[pl.BlockSpec((b_tile, L, F), lambda i: (i, 0, 0)),
                  full(w1), full(b1), full(p1),
                  full(w2), full(b2), full(p2),
                  full(w3), full(b3), full(p3),
                  full(wfc), full(bfc)],
        out_specs=pl.BlockSpec((b_tile, NCP), lambda i: (i, 0)),
        compiler_params=pltpu.CompilerParams(
            dimension_semantics=("parallel",),       # batch tiles independent
            vmem_limit_bytes=32 * 1024 * 1024),
        cost_estimate=cost,
    )(x, w1, b1, p1, w2, b2, p2, w3, b3, p3, wfc, bfc)

    return out[:B, :n_categories]


# ---------------------------------------------------------------------------
# Deterministic parameter init.  PyTorch-layout parameters are generated
# first ("raw", used by the f32 reference), then converted/folded into the
# kernel layout:
#   conv i weight -> (3*Cin, Cout) bf16, rows ordered tap-major (x[t-1], x[t],
#                    x[t+1]), with BN_{i-1} scale folded in;
#   conv i bias   -> bias + sum_k W_i[k]^T . BN_{i-1} shift   (f32);
#   pad vector    -> -shift/scale of BN_{i-1} (bf16), 0 for layer 1;
#   fc weight     -> (L*256, NCP) bf16 with PyTorch C-major flatten order and
#                    BN3 scale folded in; fc bias gets the BN3 shift term.
# ---------------------------------------------------------------------------
def init_params(key, n_features, seq_length, n_categories, ncp):
    eps = 1e-5
    chans = [n_features, 64, 128, 256]
    keys = iter(jax.random.split(key, 32))

    raw_convs = []
    for i in range(3):
        cin, cout = chans[i], chans[i + 1]
        w_pt = (jax.random.normal(next(keys), (cout, cin, 3), jnp.float32)
                / np.sqrt(cin * 3))                          # PyTorch (Cout,Cin,3)
        bias = 0.1 * jax.random.normal(next(keys), (cout,), jnp.float32)
        gamma = 1.0 + 0.1 * jax.random.normal(next(keys), (cout,), jnp.float32)
        beta = 0.1 * jax.random.normal(next(keys), (cout,), jnp.float32)
        rmean = 0.1 * jax.random.normal(next(keys), (cout,), jnp.float32)
        rvar = jax.random.uniform(next(keys), (cout,), jnp.float32,
                                  minval=0.5, maxval=1.5)
        scale = gamma / jnp.sqrt(rvar + eps)                 # eval-mode BN
        shift = beta - rmean * scale
        raw_convs.append((w_pt, bias, scale, shift))

    W_pt = (jax.random.normal(next(keys), (n_categories, 256 * seq_length),
                              jnp.float32) / np.sqrt(256 * seq_length))
    b_fc = 0.1 * jax.random.normal(next(keys), (n_categories,), jnp.float32)

    # Fold BN_i (post-ReLU, eval) into the NEXT linear op.
    kernel_layers = []
    prev_scale = prev_shift = None
    for i in range(3):
        w_pt, bias, scale, shift = raw_convs[i]
        cin, cout = chans[i], chans[i + 1]
        w3d = jnp.transpose(w_pt, (2, 1, 0))                 # (3, Cin, Cout), tap k -> x[t+k-1]
        if prev_scale is None:
            w_fold, b_fold = w3d, bias
            pad = jnp.zeros((cin,), jnp.float32)
        else:
            w_fold = w3d * prev_scale[None, :, None]
            b_fold = bias + jnp.einsum('kic,i->c', w3d, prev_shift)
            pad = -prev_shift / prev_scale                   # reproduces zero padding
        kernel_layers.append((w_fold.reshape(3 * cin, cout).astype(jnp.bfloat16),
                              b_fold.reshape(1, cout),
                              pad.reshape(1, cin).astype(jnp.bfloat16)))
        prev_scale, prev_shift = scale, shift

    # FC: PyTorch flattens (B, 256, L) C-major, so wfc3d[t, c, n] = W_pt[n, c*L+t].
    wfc3d = jnp.transpose(W_pt.reshape(n_categories, 256, seq_length), (2, 1, 0))
    bfc_fold = b_fc + jnp.einsum('lcn,c->n', wfc3d, prev_shift)      # BN3 shift
    wfc_fold = wfc3d * prev_scale[None, :, None]                     # BN3 scale
    wfc_flat = wfc_fold.reshape(seq_length * 256, n_categories)
    wfc_flat = jnp.pad(wfc_flat, ((0, 0), (0, ncp - n_categories)))
    wfc_flat = wfc_flat.astype(jnp.bfloat16)
    bfc_p = jnp.pad(bfc_fold, (0, ncp - n_categories)).reshape(1, ncp)

    flat = []
    for (w, b, p) in kernel_layers:
        flat += [w, b, p]
    params = tuple(flat) + (wfc_flat, bfc_p)
    raw = {"convs": raw_convs, "W_pt": W_pt, "b_fc": b_fc}
    return params, raw


# ---------------------------------------------------------------------------
# Pure-JAX f32 reference with plain eval-mode PyTorch semantics
# (conv -> relu -> BN, C-major flatten, linear) for the correctness check.
# ---------------------------------------------------------------------------
def ref_forward(x, raw):
    h = x.astype(jnp.float32)                                # (B, L, F)
    for (w_pt, bias, scale, shift) in raw["convs"]:
        w = jnp.transpose(w_pt, (2, 1, 0))                   # (3, Cin, Cout) = WIO
        y = lax.conv_general_dilated(h, w, window_strides=(1,), padding="SAME",
                                     dimension_numbers=("NWC", "WIO", "NWC"))
        y = jnp.maximum(y + bias, 0.0)
        h = y * scale + shift
    flat = jnp.transpose(h, (0, 2, 1)).reshape(h.shape[0], -1)   # C-major flatten
    return flat @ raw["W_pt"].T + raw["b_fc"]


if __name__ == "__main__":
    B, L, F = 32, 16, 32      # batch, seq_length, n_features (small, consistent)
    NCAT = 5                  # n_categories
    NCP = 128                 # lane-padded category dim
    B_TILE = 16               # M = L*B_TILE = 256 rows per MXU pass; grid = 2

    key = jax.random.PRNGKey(0)
    kx, kp = jax.random.split(key)
    x = jax.random.normal(kx, (B, L, F), jnp.float32)

    params, raw = init_params(kp, F, L, NCAT, NCP)

    out = jax.block_until_ready(
        melspec_forward(x, params, n_categories=NCAT, b_tile=B_TILE))
    ref = ref_forward(x, raw)
    np.testing.assert_allclose(np.asarray(out), np.asarray(ref),
                               rtol=2e-2, atol=2e-2)
    print("KERNEL_OK")
</pallas_src>

<mosaic_0001>
module attributes {stable_mosaic.version = 11 : i64} {
  func.func @melspec_kernel(%arg0: i32, %arg1: memref<16x16x32xf32, #tpu.memory_space<vmem>>, %arg2: memref<96x64xbf16, #tpu.memory_space<vmem>>, %arg3: memref<1x64xf32, #tpu.memory_space<vmem>>, %arg4: memref<1x32xbf16, #tpu.memory_space<vmem>>, %arg5: memref<192x128xbf16, #tpu.memory_space<vmem>>, %arg6: memref<1x128xf32, #tpu.memory_space<vmem>>, %arg7: memref<1x64xbf16, #tpu.memory_space<vmem>>, %arg8: memref<384x256xbf16, #tpu.memory_space<vmem>>, %arg9: memref<1x256xf32, #tpu.memory_space<vmem>>, %arg10: memref<1x128xbf16, #tpu.memory_space<vmem>>, %arg11: memref<4096x128xbf16, #tpu.memory_space<vmem>>, %arg12: memref<1x128xf32, #tpu.memory_space<vmem>>, %arg13: memref<16x128xf32, #tpu.memory_space<vmem>>) attributes {dimension_semantics = [#tpu.dimension_semantics<parallel>], iteration_bounds = array<i64: 2>, scalar_prefetch = 0 : i64, scratch_operands = 0 : i64, tpu.core_type = #tpu.core_type<tc>, window_params = [{transform_indices = @transform_0, window_bounds = array<i64: 16, 16, 32>}, {pipeline_mode = #tpu.pipeline_mode<synchronous>, transform_indices = @transform_1, window_bounds = array<i64: 96, 64>}, {pipeline_mode = #tpu.pipeline_mode<synchronous>, transform_indices = @transform_2, window_bounds = array<i64: 1, 64>}, {pipeline_mode = #tpu.pipeline_mode<synchronous>, transform_indices = @transform_3, window_bounds = array<i64: 1, 32>}, {pipeline_mode = #tpu.pipeline_mode<synchronous>, transform_indices = @transform_4, window_bounds = array<i64: 192, 128>}, {pipeline_mode = #tpu.pipeline_mode<synchronous>, transform_indices = @transform_5, window_bounds = array<i64: 1, 128>}, {pipeline_mode = #tpu.pipeline_mode<synchronous>, transform_indices = @transform_6, window_bounds = array<i64: 1, 64>}, {pipeline_mode = #tpu.pipeline_mode<synchronous>, transform_indices = @transform_7, window_bounds = array<i64: 384, 256>}, {pipeline_mode = #tpu.pipeline_mode<synchronous>, transform_indices = @transform_8, window_bounds = array<i64: 1, 256>}, {pipeline_mode = #tpu.pipeline_mode<synchronous>, transform_indices = @transform_9, window_bounds = array<i64: 1, 128>}, {pipeline_mode = #tpu.pipeline_mode<synchronous>, transform_indices = @transform_10, window_bounds = array<i64: 4096, 128>}, {pipeline_mode = #tpu.pipeline_mode<synchronous>, transform_indices = @transform_11, window_bounds = array<i64: 1, 128>}, {transform_indices = @transform_12, window_bounds = array<i64: 16, 128>}]} {
    %c0 = arith.constant 0 : index
    %c0_0 = arith.constant 0 : index
    %c0_1 = arith.constant 0 : index
    %0 = vector.load %arg1[%c0, %c0_0, %c0_1] : memref<16x16x32xf32, #tpu.memory_space<vmem>>, vector<16x16x32xf32>
    %1 = vector.extract_strided_slice %0 {offsets = [0, 0, 0], sizes = [16, 1, 32], strides = [1, 1, 1]} : vector<16x16x32xf32> to vector<16x1x32xf32>
    %2 = vector.shape_cast %1 : vector<16x1x32xf32> to vector<16x32xf32>
    %3 = vector.extract_strided_slice %0 {offsets = [0, 1, 0], sizes = [16, 1, 32], strides = [1, 1, 1]} : vector<16x16x32xf32> to vector<16x1x32xf32>
    %4 = vector.shape_cast %3 : vector<16x1x32xf32> to vector<16x32xf32>
    %5 = vector.extract_strided_slice %0 {offsets = [0, 2, 0], sizes = [16, 1, 32], strides = [1, 1, 1]} : vector<16x16x32xf32> to vector<16x1x32xf32>
    %6 = vector.shape_cast %5 : vector<16x1x32xf32> to vector<16x32xf32>
    %7 = vector.extract_strided_slice %0 {offsets = [0, 3, 0], sizes = [16, 1, 32], strides = [1, 1, 1]} : vector<16x16x32xf32> to vector<16x1x32xf32>
    %8 = vector.shape_cast %7 : vector<16x1x32xf32> to vector<16x32xf32>
    %9 = vector.extract_strided_slice %0 {offsets = [0, 4, 0], sizes = [16, 1, 32], strides = [1, 1, 1]} : vector<16x16x32xf32> to vector<16x1x32xf32>
    %10 = vector.shape_cast %9 : vector<16x1x32xf32> to vector<16x32xf32>
    %11 = vector.extract_strided_slice %0 {offsets = [0, 5, 0], sizes = [16, 1, 32], strides = [1, 1, 1]} : vector<16x16x32xf32> to vector<16x1x32xf32>
    %12 = vector.shape_cast %11 : vector<16x1x32xf32> to vector<16x32xf32>
    %13 = vector.extract_strided_slice %0 {offsets = [0, 6, 0], sizes = [16, 1, 32], strides = [1, 1, 1]} : vector<16x16x32xf32> to vector<16x1x32xf32>
    %14 = vector.shape_cast %13 : vector<16x1x32xf32> to vector<16x32xf32>
    %15 = vector.extract_strided_slice %0 {offsets = [0, 7, 0], sizes = [16, 1, 32], strides = [1, 1, 1]} : vector<16x16x32xf32> to vector<16x1x32xf32>
    %16 = vector.shape_cast %15 : vector<16x1x32xf32> to vector<16x32xf32>
    %17 = vector.extract_strided_slice %0 {offsets = [0, 8, 0], sizes = [16, 1, 32], strides = [1, 1, 1]} : vector<16x16x32xf32> to vector<16x1x32xf32>
    %18 = vector.shape_cast %17 : vector<16x1x32xf32> to vector<16x32xf32>
    %19 = vector.extract_strided_slice %0 {offsets = [0, 9, 0], sizes = [16, 1, 32], strides = [1, 1, 1]} : vector<16x16x32xf32> to vector<16x1x32xf32>
    %20 = vector.shape_cast %19 : vector<16x1x32xf32> to vector<16x32xf32>
    %21 = vector.extract_strided_slice %0 {offsets = [0, 10, 0], sizes = [16, 1, 32], strides = [1, 1, 1]} : vector<16x16x32xf32> to vector<16x1x32xf32>
    %22 = vector.shape_cast %21 : vector<16x1x32xf32> to vector<16x32xf32>
    %23 = vector.extract_strided_slice %0 {offsets = [0, 11, 0], sizes = [16, 1, 32], strides = [1, 1, 1]} : vector<16x16x32xf32> to vector<16x1x32xf32>
    %24 = vector.shape_cast %23 : vector<16x1x32xf32> to vector<16x32xf32>
    %25 = vector.extract_strided_slice %0 {offsets = [0, 12, 0], sizes = [16, 1, 32], strides = [1, 1, 1]} : vector<16x16x32xf32> to vector<16x1x32xf32>
    %26 = vector.shape_cast %25 : vector<16x1x32xf32> to vector<16x32xf32>
    %27 = vector.extract_strided_slice %0 {offsets = [0, 13, 0], sizes = [16, 1, 32], strides = [1, 1, 1]} : vector<16x16x32xf32> to vector<16x1x32xf32>
    %28 = vector.shape_cast %27 : vector<16x1x32xf32> to vector<16x32xf32>
    %29 = vector.extract_strided_slice %0 {offsets = [0, 14, 0], sizes = [16, 1, 32], strides = [1, 1, 1]} : vector<16x16x32xf32> to vector<16x1x32xf32>
    %30 = vector.shape_cast %29 : vector<16x1x32xf32> to vector<16x32xf32>
    %31 = vector.extract_strided_slice %0 {offsets = [0, 15, 0], sizes = [16, 1, 32], strides = [1, 1, 1]} : vector<16x16x32xf32> to vector<16x1x32xf32>
    %32 = vector.shape_cast %31 : vector<16x1x32xf32> to vector<16x32xf32>
    %33 = tpu.concatenate %2, %4, %6, %8, %10, %12, %14, %16, %18, %20, %22, %24, %26, %28, %30, %32 in 0 : vector<16x32xf32>, vector<16x32xf32>, vector<16x32xf32>, vector<16x32xf32>, vector<16x32xf32>, vector<16x32xf32>, vector<16x32xf32>, vector<16x32xf32>, vector<16x32xf32>, vector<16x32xf32>, vector<16x32xf32>, vector<16x32xf32>, vector<16x32xf32>, vector<16x32xf32>, vector<16x32xf32>, vector<16x32xf32> -> vector<256x32xf32>
    %34 = arith.truncf %33 : vector<256x32xf32> to vector<256x32xbf16>
    %c0_2 = arith.constant 0 : index
    %c0_3 = arith.constant 0 : index
    %35 = vector.load %arg4[%c0_2, %c0_3] : memref<1x32xbf16, #tpu.memory_space<vmem>>, vector<1x32xbf16>
    %36 = vector.shape_cast %35 : vector<1x32xbf16> to vector<1x32xbf16>
    %37 = vector.broadcast %36 : vector<1x32xbf16> to vector<16x32xbf16>
    %38 = vector.extract_strided_slice %34 {offsets = [0, 0], sizes = [240, 32], strides = [1, 1]} : vector<256x32xbf16> to vector<240x32xbf16>
    %39 = tpu.concatenate %37, %38 in 0 : vector<16x32xbf16>, vector<240x32xbf16> -> vector<256x32xbf16>
    %40 = vector.extract_strided_slice %34 {offsets = [16, 0], sizes = [240, 32], strides = [1, 1]} : vector<256x32xbf16> to vector<240x32xbf16>
    %41 = tpu.concatenate %40, %37 in 0 : vector<240x32xbf16>, vector<16x32xbf16> -> vector<256x32xbf16>
    %42 = tpu.concatenate %39, %34, %41 in 1 : vector<256x32xbf16>, vector<256x32xbf16>, vector<256x32xbf16> -> vector<256x96xbf16>
    %c0_4 = arith.constant 0 : index
    %c0_5 = arith.constant 0 : index
    %43 = vector.load %arg2[%c0_4, %c0_5] : memref<96x64xbf16, #tpu.memory_space<vmem>>, vector<96x64xbf16>
    %cst = arith.constant dense<0.000000e+00> : vector<256x64xf32>
    %44 = tpu.matmul %42, %43, %cst {dimension_numbers = #tpu.dot_dimension_numbers<[1], [0], [0], [1], [0, 0, 1, 1], [], []>} : vector<256x96xbf16>, vector<96x64xbf16>, vector<256x64xf32> -> vector<256x64xf32>
    %c0_6 = arith.constant 0 : index
    %c0_7 = arith.constant 0 : index
    %45 = vector.load %arg3[%c0_6, %c0_7] : memref<1x64xf32, #tpu.memory_space<vmem>>, vector<1x64xf32>
    %46 = vector.broadcast %45 : vector<1x64xf32> to vector<256x64xf32>
    %47 = arith.addf %44, %46 : vector<256x64xf32>
    %cst_8 = arith.constant 0.000000e+00 : f32
    %48 = vector.broadcast %cst_8 : f32 to vector<256x64xf32>
    %49 = arith.maximumf %47, %48 : vector<256x64xf32>
    %50 = arith.truncf %49 : vector<256x64xf32> to vector<256x64xbf16>
    %c0_9 = arith.constant 0 : index
    %c0_10 = arith.constant 0 : index
    %51 = vector.load %arg7[%c0_9, %c0_10] : memref<1x64xbf16, #tpu.memory_space<vmem>>, vector<1x64xbf16>
    %52 = vector.shape_cast %51 : vector<1x64xbf16> to vector<1x64xbf16>
    %53 = vector.broadcast %52 : vector<1x64xbf16> to vector<16x64xbf16>
    %54 = vector.extract_strided_slice %50 {offsets = [0, 0], sizes = [240, 64], strides = [1, 1]} : vector<256x64xbf16> to vector<240x64xbf16>
    %55 = tpu.concatenate %53, %54 in 0 : vector<16x64xbf16>, vector<240x64xbf16> -> vector<256x64xbf16>
    %56 = vector.extract_strided_slice %50 {offsets = [16, 0], sizes = [240, 64], strides = [1, 1]} : vector<256x64xbf16> to vector<240x64xbf16>
    %57 = tpu.concatenate %56, %53 in 0 : vector<240x64xbf16>, vector<16x64xbf16> -> vector<256x64xbf16>
    %58 = tpu.concatenate %55, %50, %57 in 1 : vector<256x64xbf16>, vector<256x64xbf16>, vector<256x64xbf16> -> vector<256x192xbf16>
    %c0_11 = arith.constant 0 : index
    %c0_12 = arith.constant 0 : index
    %59 = vector.load %arg5[%c0_11, %c0_12] : memref<192x128xbf16, #tpu.memory_space<vmem>>, vector<192x128xbf16>
    %cst_13 = arith.constant dense<0.000000e+00> : vector<256x128xf32>
    %60 = tpu.matmul %58, %59, %cst_13 {dimension_numbers = #tpu.dot_dimension_numbers<[1], [0], [0], [1], [0, 0, 1, 1], [], []>} : vector<256x192xbf16>, vector<192x128xbf16>, vector<256x128xf32> -> vector<256x128xf32>
    %c0_14 = arith.constant 0 : index
    %c0_15 = arith.constant 0 : index
    %61 = vector.load %arg6[%c0_14, %c0_15] : memref<1x128xf32, #tpu.memory_space<vmem>>, vector<1x128xf32>
    %62 = vector.broadcast %61 : vector<1x128xf32> to vector<256x128xf32>
    %63 = arith.addf %60, %62 : vector<256x128xf32>
    %cst_16 = arith.constant 0.000000e+00 : f32
    %64 = vector.broadcast %cst_16 : f32 to vector<256x128xf32>
    %65 = arith.maximumf %63, %64 : vector<256x128xf32>
    %66 = arith.truncf %65 : vector<256x128xf32> to vector<256x128xbf16>
    %c0_17 = arith.constant 0 : index
    %c0_18 = arith.constant 0 : index
    %67 = vector.load %arg10[%c0_17, %c0_18] : memref<1x128xbf16, #tpu.memory_space<vmem>>, vector<1x128xbf16>
    %68 = vector.shape_cast %67 : vector<1x128xbf16> to vector<1x128xbf16>
    %69 = vector.broadcast %68 : vector<1x128xbf16> to vector<16x128xbf16>
    %70 = vector.extract_strided_slice %66 {offsets = [0, 0], sizes = [240, 128], strides = [1, 1]} : vector<256x128xbf16> to vector<240x128xbf16>
    %71 = tpu.concatenate %69, %70 in 0 : vector<16x128xbf16>, vector<240x128xbf16> -> vector<256x128xbf16>
    %72 = vector.extract_strided_slice %66 {offsets = [16, 0], sizes = [240, 128], strides = [1, 1]} : vector<256x128xbf16> to vector<240x128xbf16>
    %73 = tpu.concatenate %72, %69 in 0 : vector<240x128xbf16>, vector<16x128xbf16> -> vector<256x128xbf16>
    %74 = tpu.concatenate %71, %66, %73 in 1 : vector<256x128xbf16>, vector<256x128xbf16>, vector<256x128xbf16> -> vector<256x384xbf16>
    %c0_19 = arith.constant 0 : index
    %c0_20 = arith.constant 0 : index
    %75 = vector.load %arg8[%c0_19, %c0_20] : memref<384x256xbf16, #tpu.memory_space<vmem>>, vector<384x256xbf16>
    %cst_21 = arith.constant dense<0.000000e+00> : vector<256x256xf32>
    %76 = tpu.matmul %74, %75, %cst_21 {dimension_numbers = #tpu.dot_dimension_numbers<[1], [0], [0], [1], [0, 0, 1, 1], [], []>} : vector<256x384xbf16>, vector<384x256xbf16>, vector<256x256xf32> -> vector<256x256xf32>
    %c0_22 = arith.constant 0 : index
    %c0_23 = arith.constant 0 : index
    %77 = vector.load %arg9[%c0_22, %c0_23] : memref<1x256xf32, #tpu.memory_space<vmem>>, vector<1x256xf32>
    %78 = vector.broadcast %77 : vector<1x256xf32> to vector<256x256xf32>
    %79 = arith.addf %76, %78 : vector<256x256xf32>
    %cst_24 = arith.constant 0.000000e+00 : f32
    %80 = vector.broadcast %cst_24 : f32 to vector<256x256xf32>
    %81 = arith.maximumf %79, %80 : vector<256x256xf32>
    %82 = arith.truncf %81 : vector<256x256xf32> to vector<256x256xbf16>
    %83 = vector.extract_strided_slice %82 {offsets = [0, 0], sizes = [16, 256], strides = [1, 1]} : vector<256x256xbf16> to vector<16x256xbf16>
    %84 = vector.extract_strided_slice %82 {offsets = [16, 0], sizes = [16, 256], strides = [1, 1]} : vector<256x256xbf16> to vector<16x256xbf16>
    %85 = vector.extract_strided_slice %82 {offsets = [32, 0], sizes = [16, 256], strides = [1, 1]} : vector<256x256xbf16> to vector<16x256xbf16>
    %86 = vector.extract_strided_slice %82 {offsets = [48, 0], sizes = [16, 256], strides = [1, 1]} : vector<256x256xbf16> to vector<16x256xbf16>
    %87 = vector.extract_strided_slice %82 {offsets = [64, 0], sizes = [16, 256], strides = [1, 1]} : vector<256x256xbf16> to vector<16x256xbf16>
    %88 = vector.extract_strided_slice %82 {offsets = [80, 0], sizes = [16, 256], strides = [1, 1]} : vector<256x256xbf16> to vector<16x256xbf16>
    %89 = vector.extract_strided_slice %82 {offsets = [96, 0], sizes = [16, 256], strides = [1, 1]} : vector<256x256xbf16> to vector<16x256xbf16>
    %90 = vector.extract_strided_slice %82 {offsets = [112, 0], sizes = [16, 256], strides = [1, 1]} : vector<256x256xbf16> to vector<16x256xbf16>
    %91 = vector.extract_strided_slice %82 {offsets = [128, 0], sizes = [16, 256], strides = [1, 1]} : vector<256x256xbf16> to vector<16x256xbf16>
    %92 = vector.extract_strided_slice %82 {offsets = [144, 0], sizes = [16, 256], strides = [1, 1]} : vector<256x256xbf16> to vector<16x256xbf16>
    %93 = vector.extract_strided_slice %82 {offsets = [160, 0], sizes = [16, 256], strides = [1, 1]} : vector<256x256xbf16> to vector<16x256xbf16>
    %94 = vector.extract_strided_slice %82 {offsets = [176, 0], sizes = [16, 256], strides = [1, 1]} : vector<256x256xbf16> to vector<16x256xbf16>
    %95 = vector.extract_strided_slice %82 {offsets = [192, 0], sizes = [16, 256], strides = [1, 1]} : vector<256x256xbf16> to vector<16x256xbf16>
    %96 = vector.extract_strided_slice %82 {offsets = [208, 0], sizes = [16, 256], strides = [1, 1]} : vector<256x256xbf16> to vector<16x256xbf16>
    %97 = vector.extract_strided_slice %82 {offsets = [224, 0], sizes = [16, 256], strides = [1, 1]} : vector<256x256xbf16> to vector<16x256xbf16>
    %98 = vector.extract_strided_slice %82 {offsets = [240, 0], sizes = [16, 256], strides = [1, 1]} : vector<256x256xbf16> to vector<16x256xbf16>
    %99 = tpu.concatenate %83, %84, %85, %86, %87, %88, %89, %90, %91, %92, %93, %94, %95, %96, %97, %98 in 1 : vector<16x256xbf16>, vector<16x256xbf16>, vector<16x256xbf16>, vector<16x256xbf16>, vector<16x256xbf16>, vector<16x256xbf16>, vector<16x256xbf16>, vector<16x256xbf16>, vector<16x256xbf16>, vector<16x256xbf16>, vector<16x256xbf16>, vector<16x256xbf16>, vector<16x256xbf16>, vector<16x256xbf16>, vector<16x256xbf16>, vector<16x256xbf16> -> vector<16x4096xbf16>
    %c0_25 = arith.constant 0 : index
    %c0_26 = arith.constant 0 : index
    %100 = vector.load %arg11[%c0_25, %c0_26] : memref<4096x128xbf16, #tpu.memory_space<vmem>>, vector<4096x128xbf16>
    %cst_27 = arith.constant dense<0.000000e+00> : vector<16x128xf32>
    %101 = tpu.matmul %99, %100, %cst_27 {dimension_numbers = #tpu.dot_dimension_numbers<[1], [0], [0], [1], [0, 0, 1, 1], [], []>} : vector<16x4096xbf16>, vector<4096x128xbf16>, vector<16x128xf32> -> vector<16x128xf32>
    %c0_28 = arith.constant 0 : index
    %c0_29 = arith.constant 0 : index
    %102 = vector.load %arg12[%c0_28, %c0_29] : memref<1x128xf32, #tpu.memory_space<vmem>>, vector<1x128xf32>
    %103 = vector.broadcast %102 : vector<1x128xf32> to vector<16x128xf32>
    %104 = arith.addf %101, %103 : vector<16x128xf32>
    %c0_30 = arith.constant 0 : index
    %c0_31 = arith.constant 0 : index
    %105 = vector.load %arg13[%c0_30, %c0_31] : memref<16x128xf32, #tpu.memory_space<vmem>>, vector<16x128xf32>
    tpu.vector_store %arg13[%c0_30, %c0_31], %104 {strides = array<i32>} : memref<16x128xf32, #tpu.memory_space<vmem>>, vector<16x128xf32>,
    return
  }
  func.func @transform_0(%arg0: i32) -> (i32, i32, i32) {
    %c0_i32 = arith.constant 0 : i32
    %c0_i32_0 = arith.constant 0 : i32
    %c0_i32_1 = arith.constant 0 : i32
    return %arg0, %c0_i32, %c0_i32_0 : i32, i32, i32
  }
  func.func @transform_1(%arg0: i32) -> (i32, i32) {
    %c0_i32 = arith.constant 0 : i32
    %c0_i32_0 = arith.constant 0 : i32
    %c0_i32_1 = arith.constant 0 : i32
    return %c0_i32, %c0_i32_0 : i32, i32
  }
  func.func @transform_2(%arg0: i32) -> (i32, i32) {
    %c0_i32 = arith.constant 0 : i32
    %c0_i32_0 = arith.constant 0 : i32
    %c0_i32_1 = arith.constant 0 : i32
    return %c0_i32, %c0_i32_0 : i32, i32
  }
  func.func @transform_3(%arg0: i32) -> (i32, i32) {
    %c0_i32 = arith.constant 0 : i32
    %c0_i32_0 = arith.constant 0 : i32
    %c0_i32_1 = arith.constant 0 : i32
    return %c0_i32, %c0_i32_0 : i32, i32
  }
  func.func @transform_4(%arg0: i32) -> (i32, i32) {
    %c0_i32 = arith.constant 0 : i32
    %c0_i32_0 = arith.constant 0 : i32
    %c0_i32_1 = arith.constant 0 : i32
    return %c0_i32, %c0_i32_0 : i32, i32
  }
  func.func @transform_5(%arg0: i32) -> (i32, i32) {
    %c0_i32 = arith.constant 0 : i32
    %c0_i32_0 = arith.constant 0 : i32
    %c0_i32_1 = arith.constant 0 : i32
    return %c0_i32, %c0_i32_0 : i32, i32
  }
  func.func @transform_6(%arg0: i32) -> (i32, i32) {
    %c0_i32 = arith.constant 0 : i32
    %c0_i32_0 = arith.constant 0 : i32
    %c0_i32_1 = arith.constant 0 : i32
    return %c0_i32, %c0_i32_0 : i32, i32
  }
  func.func @transform_7(%arg0: i32) -> (i32, i32) {
    %c0_i32 = arith.constant 0 : i32
    %c0_i32_0 = arith.constant 0 : i32
    %c0_i32_1 = arith.constant 0 : i32
    return %c0_i32, %c0_i32_0 : i32, i32
  }
  func.func @transform_8(%arg0: i32) -> (i32, i32) {
    %c0_i32 = arith.constant 0 : i32
    %c0_i32_0 = arith.constant 0 : i32
    %c0_i32_1 = arith.constant 0 : i32
    return %c0_i32, %c0_i32_0 : i32, i32
  }
  func.func @transform_9(%arg0: i32) -> (i32, i32) {
    %c0_i32 = arith.constant 0 : i32
    %c0_i32_0 = arith.constant 0 : i32
    %c0_i32_1 = arith.constant 0 : i32
    return %c0_i32, %c0_i32_0 : i32, i32
  }
  func.func @transform_10(%arg0: i32) -> (i32, i32) {
    %c0_i32 = arith.constant 0 : i32
    %c0_i32_0 = arith.constant 0 : i32
    %c0_i32_1 = arith.constant 0 : i32
    return %c0_i32, %c0_i32_0 : i32, i32
  }
  func.func @transform_11(%arg0: i32) -> (i32, i32) {
    %c0_i32 = arith.constant 0 : i32
    %c0_i32_0 = arith.constant 0 : i32
    %c0_i32_1 = arith.constant 0 : i32
    return %c0_i32, %c0_i32_0 : i32, i32
  }
  func.func @transform_12(%arg0: i32) -> (i32, i32) {
    %c0_i32 = arith.constant 0 : i32
    %c0_i32_0 = arith.constant 0 : i32
    return %arg0, %c0_i32 : i32, i32
  }
}

</mosaic_0001>

<bundles_post_ra>
// kernel: tpu_custom_call.1
= control target key start
LH: loop header
LB: loop body
LE: loop exit
PB: predicated region body
PF: predicated region fallthrough
CT: control target
= control target key end

     0   :  { %s8606_s0 = inlined_call_operand.hbm [shape: f32[32,16,32], index: 0, kind: input, shape index: {}]   ;;  %s8607_s1 = inlined_call_operand.vmem [shape: bf16[96,64], index: 1, kind: input, shape index: {}]   ;;  %s8608_s2 = inlined_call_operand.vmem [shape: f32[1,64], index: 2, kind: input, shape index: {}]   ;;  %s8609_s3 = inlined_call_operand.vmem [shape: bf16[1,32], index: 3, kind: input, shape index: {}]   ;;  %s8610_s4 = inlined_call_operand.hbm [shape: bf16[192,128], index: 4, kind: input, shape index: {}]   ;;  %s8611_s5 = inlined_call_operand.vmem [shape: f32[1,128], index: 5, kind: input, shape index: {}]   ;;  %s8612_s6 = inlined_call_operand.vmem [shape: bf16[1,64], index: 6, kind: input, shape index: {}]   ;;  %s8613_s7 = inlined_call_operand.hbm [shape: bf16[384,256], index: 7, kind: input, shape index: {}]   ;;  %s8614_s8 = inlined_call_operand.vmem [shape: f32[1,256], index: 8, kind: input, shape index: {}]   ;;  %s8615_s9 = inlined_call_operand.vmem [shape: bf16[1,128], index: 9, kind: input, shape index: {}]   ;;  %s8616_s10 = inlined_call_operand.hbm [shape: bf16[4096,128], index: 10, kind: input, shape index: {}]   ;;  %s8617_s11 = inlined_call_operand.vmem [shape: f32[1,128], index: 11, kind: input, shape index: {}]   ;;  %s8618_s12 = inlined_call_operand.hbm [shape: f32[32,128], index: 12, kind: output, shape index: {}]  }
   0x1   :  { %8629 = sst [smem:[#allocation18_spill]] %s8610_s4 }
   0x2   :  { %8630 = sst [smem:[#allocation19_spill]] %s8613_s7 }
   0x3   :  { %8631 = sst [smem:[#allocation20_spill]] %s8616_s10 }
   0x4   :  { %17 = vsyncpa [#allocation3], 0 }
   0x5   :  { %19 = vsyncpa [#allocation3 + $0x1], 0 }
   0x6   :  { %20 = vsyncpa [#allocation6], 0 }
   0x7   :  { %21 = vsyncpa [#allocation9], 0 }
   0x8   :  { %22 = vsyncpa [#allocation4], 0 }
   0x9   :  { %24 = vsyncpa [#allocation4 + $0x1], 0  ;;  %s7089_s21 = smov 0   ;;  %s7091_s22 = smov 0  }
   0xa   :  { %s7093_s23 = smov 0   ;;  %s7095_s24 = smov 0  }
   0xb LB: > { %8632 = sst [smem:[#allocation15_spill]] %s7004_s23  ;;  %s7110_s25 = sadd.s32 4294967295, %s7008_s24   ;;  %s7008_s24 = sphi %s7095_s24, %s8662_s24   ;;  %s7004_s23 = sphi %s7093_s23, %s8659_s23   ;;  %s7000_s22 = sphi %s7091_s22, %s8661_s22   ;;  %s6996_s21 = sphi %s7089_s21, %s8660_s21  }
   0xc   : > { %s5599_s26 = sadd.s32 4294967294, %s7008_s24   ;;  %p50_p0 = scmp.ne.s32.totalorder %s7000_s22, %s6996_s21 }
   0xd   : > { %p8624_p1 = scmp.eq.s32.totalorder %s7110_s25, 0  ;;  %p305_p2 = scmp.eq.s32.totalorder %s7110_s25, 1 }
   0xe   : > { %p311_p3 = scmp.eq.s32.totalorder %s5599_s26, 1  ;;  %p5600_p5 = scmp.ge.s32.totalorder %s7008_s24, 1 }
   0xf   : > { %p7119_p4 = por %p8624_p1, %p50_p0  ;;  %p318_p7 = scmp.lt.s32.totalorder %s7008_s24, 3 }
  0x10   : > { %p7124_p6 = por %p311_p3, %p50_p0  ;;  %s7010_s30 = smov [#allocation5]  }
  0x11   : > { %s8633_s27 = scalar_select %p7119_p4, 1, 0 }
  0x12   : > { %s8634_s28 = scalar_select %p7124_p6, 1, 0 }
  0x13   : > { %p7129_p8 = pnand %p5600_p5, %p318_p7  ;;  %s339_s13 = sshll.u32 %s7010_s30, 4  ;;  %s340_s13 = int_to_ptr.vmem [resolvable:$true] %s339_s13 }
  0x14   : > { %8635 = sst [smem:[#allocation16_spill]] %s8634_s28  ;;  %s7011_s15 = smov [#allocation7]  }
  0x15   : > { %s8636_s29 = scalar_select %p7129_p8, 1, 0 }
  0x16   : > { %p6414_p9 = pneg %p7129_p8  ;;  %s358_s16 = sshll.u32 %s7011_s15, 4  ;;  %s359_s16 = int_to_ptr.vmem [resolvable:$true] %s358_s16 }
  0x17   : > { %s6841_s17 = scalar_lea.vmem %s340_s13, 1536  ;;  %p6849_p5 = scmp.lt.s32.totalorder %s340_s13, %s340_s13 }
  0x18   : > { %p7138_p11 = pnand %p6414_p9, %p8624_p1  ;;  %p6842_p13 = scmp.ne.s32.totalorder %s340_s13, %s6841_s17 }
  0x19   : > { %p6850_p7 = scmp.lt.s32.totalorder %s6841_s17, %s6841_s17 }
  0x1a   : > { %p6832_p12 = pneg %p7138_p11 }
  0x1b   : > { %p6851_p10 = por %p6850_p7, %p6849_p5 }
  0x1c   : > { %p6844_p0 = pnand %p6842_p13, %p6832_p12 }
  0x1e   : > { %p6845_p3 = pneg %p6844_p0 }
  0x20   : > { %p6852_p9 = pnand %p6851_p10, %p6845_p3 }
  0x22   : > { %6855 = shalt.err (!%p6852_p9)
}
  0x23   : > { %s8619_s18 = smov 64   ;;  %s8620_s19 = smov 4  }
  0x24   : > { %s8638_s4 = sld [smem:[#allocation18_spill]]  ;;  %s6867_s30 = scalar_lea.vmem %s359_s16, 6144 }
  0x25   : > { %p6868_p13 = scmp.ne.s32.totalorder %s359_s16, %s6867_s30  ;;  %p6875_p10 = scmp.lt.s32.totalorder %s359_s16, %s359_s16 }
  0x26   : > { %p6876_p3 = scmp.lt.s32.totalorder %s6867_s30, %s6867_s30 }
  0x27   : > { %p6870_p0 = pnand %p6868_p13, %p6832_p12 }
  0x28   : > { %p6877_p7 = por %p6876_p3, %p6875_p10 }
  0x29   : > { %p6871_p5 = pneg %p6870_p0 }
  0x2a   : > { %6417 = dma.hbm_to_vmem [thread:$0]  (!%p7138_p11), %s8638_s4, 1536, %s340_s13, [#allocation6], %s8619_s18, %s8619_s18, %s8620_s19  }
  0x2b   : > { %p6878_p9 = pnand %p6877_p7, %p6871_p5 }
  0x2d   : > { %6881 = shalt.err (!%p6878_p9)
}
  0x2e   : > { %s8621_s15 = smov 128   ;;  %s8622_s17 = smov 8  }
  0x2f   : > { %s8639_s7 = sld [smem:[#allocation19_spill]]  ;;  %s7016_s26 = smov [#allocation8]  }
  0x30   : > { %s377_s18 = sshll.u32 %s7016_s26, 4  ;;  %s7167_s30 = sadd.s32 1, %s7008_s24   ;;  %s378_s18 = int_to_ptr.vmem [resolvable:$true] %s377_s18 }
  0x31   : > { %s6893_s19 = scalar_lea.vmem %s378_s18, 32768  ;;  %p6901_p10 = scmp.lt.s32.totalorder %s378_s18, %s378_s18 }
  0x32   : > { %p6894_p13 = scmp.ne.s32.totalorder %s378_s18, %s6893_s19  ;;  %p6902_p3 = scmp.lt.s32.totalorder %s6893_s19, %s6893_s19 }
  0x34   : > { %p6896_p0 = pnand %p6894_p13, %p6832_p12  ;;  %p6903_p7 = por %p6902_p3, %p6901_p10 }
  0x35   : > { %6420 = dma.hbm_to_vmem [thread:$0]  (!%p7138_p11), %s8639_s7, 6144, %s359_s16, [#allocation6], %s8621_s15, %s8621_s15, %s8622_s17  }
  0x36   : > { %p6897_p5 = pneg %p6896_p0 }
  0x38   : > { %p6904_p9 = pnand %p6903_p7, %p6897_p5 }
  0x3a   : > { %6907 = shalt.err (!%p6904_p9)
}
  0x3b   : > { %s8640_s13 = smov 4   ;;  %s8641_s16 = smov 64  }
  0x3c   : > { %s8642_s10 = sld [smem:[#allocation20_spill]]  ;;  %s34_s19 = ssub.s32 %s7008_s24, %s7167_s30 }
  0x3d   : > { %s37_s14 = sadd.s32 1, %s7004_s23  ;;  %p35_p12 = scmp.eq.s32.totalorder %s34_s19, 0 }
  0x3e   : > { %p44_p13 = scmp.ne.s32.totalorder %s7004_s23, %s7000_s22  ;;  %p45_p0 = scmp.eq.s32.totalorder %s7008_s24, 0 }
  0x3f   : > { %p6435_p5 = scmp.lt.s32.totalorder %s7008_s24, 2  ;;  %s394_s26 = sand.u32 1, %s7004_s23  }
  0x40   : > { %s7188_s15 = scalar_select %p35_p12, %s7004_s23, %s37_s14  }
  0x41   : > { %p46_p10 = por %p45_p0, %p44_p13  ;;  %p7192_p3 = por %p305_p2, %p44_p13 }
  0x42   : > { %6423 = dma.hbm_to_vmem [thread:$0]  (!%p7138_p11), %s8642_s10, 32768, %s378_s18, [#allocation9], %s8641_s16, %s8641_s16, %s8640_s13  }
  0x43   : > { %8643 = sst [smem:[#allocation17_spill]] %s7188_s15  ;;  %s5978_s17 = sshll.u32 %s7008_s24, 12 }
  0x44   : > { %s8644_s20 = scalar_select %p7192_p3, 1, 0 }
  0x45   : > { %s5605_s4 = sshll.u32 %s394_s26, 8  ;;  %s7201_s18 = scalar_lea.hbm %s8606_s0, %s5978_s17 }
  0x46   : > { %s398_s13 = scalar_lea.vmem [#allocation2], %s5605_s4  ;;  %p7203_p11 = pnand %p6435_p5, %p46_p10 }
  0x47   : > { %s406_s16 = sshll.u32 %s398_s13, 4  ;;  %s7209_s14 = scalar_lea.sflag [#allocation3], %s394_s26  ;;  %s7207_s16 = int_to_ptr.vmem [resolvable:$true] %s406_s16 }
  0x48   : > { %s6908_s10 = scalar_lea.hbm %s7201_s18, 4096  ;;  %p6910_p7 = pneg %p7203_p11 }
  0x49   : > { %p6909_p2 = scmp.ne.s32.totalorder %s7201_s18, %s6908_s10  ;;  %s6913_s4 = scalar_lea.hbm %s8606_s0, 8192 }
  0x4a   : > { %p6914_p13 = scmp.lt.s32.totalorder %s7201_s18, %s8606_s0  ;;  %p6915_p0 = scmp.lt.s32.totalorder %s6913_s4, %s6908_s10 }
  0x4b   : > { %p6911_p9 = pnand %p6910_p7, %p6909_p2 }
  0x4c   : > { %p6916_p5 = por %p6915_p0, %p6914_p13 }
  0x4d   : > { %p6912_p12 = pneg %p6911_p9 }
  0x4f   : > { %p6917_p10 = pnand %p6916_p5, %p6912_p12 }
  0x51   : > { %6920 = shalt.err (!%p6917_p10)
}
  0x52   : > { %s6921_s26 = scalar_lea.vmem %s7207_s16, 4096  ;;  %s7017_s15 = smov [#allocation2]  }
  0x53   : > { %p6922_p1 = scmp.ne.s32.totalorder %s7207_s16, %s6921_s26  ;;  %s6926_s23 = sshll.u32 %s7017_s15, 4  ;;  %s6927_s23 = int_to_ptr.vmem [resolvable:$false] %s6926_s23 }
  0x54   : > { %s6928_s7 = scalar_lea.vmem %s6927_s23, 8192  ;;  %p6929_p9 = scmp.lt.s32.totalorder %s7207_s16, %s6927_s23 }
  0x55   : > { %p6924_p6 = pnand %p6922_p1, %p6910_p7  ;;  %p6930_p3 = scmp.lt.s32.totalorder %s6928_s7, %s6921_s26 }
  0x57   : > { %p6925_p2 = pneg %p6924_p6  ;;  %p6931_p4 = por %p6930_p3, %p6929_p9 }
  0x59   : > { %p6932_p8 = pnand %p6931_p4, %p6925_p2 }
  0x5b   : > { %6935 = shalt.err (!%p6932_p8)
}
  0x5c   : > { %s8646_s10 = smov 8   ;;  %s8647_s28 = smov 128  }
  0x5d   : > { %6427 = dma.hbm_to_vmem [thread:$0]  (!%p7203_p11), %s7201_s18, 4096, %s7207_s16, %s7209_s14, %s8647_s28, %s8647_s28, %s8646_s10  }
  0x5e   : > { %p8648_p1 = scmp.ne.s32.totalorder %s8636_s29, 0 }
  0x5f   : > { %s7236_s15 = sand.u32 (!%p8648_p1), 1, %s7000_s22   ;;  %p8649_p4 = scmp.ne.s32.totalorder (!%p8648_p1), %s8633_s27, 0 }
  0x60   : > { %418 = sbr.rel (%p8648_p1) target bundleno = 1466 (0x5ba), region = 68  ;;  %s5610_s23 = sshll.u32 (!%p8648_p1), %s7236_s15, 8 }
  0x61   : > { %s421_s4 = scalar_lea.sflag (!%p8648_p1), [#allocation3], %s7236_s15  ;;  %s7240_s17 = scalar_lea.vmem (!%p8648_p1), [#allocation2], %s5610_s23 }
  0x65   : > { %6979 = dma.done.wait (%p8649_p4), %s421_s4, 4096  }
  0x66   : > { %6981 = vsyncadd (%p8649_p4), %s421_s4, 4294963200  ;;  %p8650_p6 = scmp.eq.s32.totalorder %s7110_s25, 0 }
  0x68   : > { %6983 = dma.done.wait (%p8650_p6), [#allocation6], 7680   ;;  %p8651_p8 = pmov %p8650_p6 }
  0x69   : > { %p8652_p3 = pmov %p8650_p6 }
  0x6a   : > { %6985 = vsyncadd (%p8651_p8), [#allocation6], 4294959616 }
  0x6b   : > { %6987 = dma.done.wait (%p8652_p3), [#allocation9], 32768   ;;  %p8653_p11 = pmov %p8652_p3 }
  0x6c   : > { %v1051_v0 = vlaneseq  ;;  %vm529_vm0 = vcmask 1041409   ;;  %vm532_vm1 = vcmask 1042434   ;;  %vm535_vm2 = vcmask 1043459   ;;  %v7255_v1 = vld [vmem:[%s7240_s17] sm:$0xff]  ;;  %v7258_v2 = vld [vmem:[%s7240_s17 + $0x10] sm:$0xff]  ;;  %s7018_s19 = smov 32  }
  0x6d   : > { %6989 = vsyncadd (%p8653_p11), [#allocation9], 4294934528  ;;  %vm538_vm3 = vcmask 1044484   ;;  %vm541_vm4 = vcmask 1045509   ;;  %v7261_v3 = vld [vmem:[%s7240_s17 + $0x20] sm:$0xff]  ;;  %vm544_vm5 = vcmask 1046534  }
  0x6e   : > { %vm547_vm6 = vcmask 1047559   ;;  %v7263_v4 = vshrl.u32 %v1051_v0, 7  ;;  %v7266_v5 = vld [vmem:[%s7240_s17 + $0x30] sm:$0xff]  ;;  %v7269_v6 = vld [vmem:[%s7240_s17 + $0x40] sm:$0xff]  ;;  %v528_v8 = vrot.slane %v7258_v2, 7  ;;  %v531_v9 = vrot.slane %v7261_v3, 6 }
  0x6f   : > { %v7272_v7 = vld [vmem:[%s7240_s17 + $0x50] sm:$0xff]  ;;  %v565_v10 = vrot.slane %v7255_v1, 1  ;;  %v7278_v11 = vld [vmem:[%s7240_s17 + $0x60] sm:$0xff]  ;;  %v534_v14 = vrot.slane %v7266_v5, 5  ;;  %v537_v15 = vrot.slane %v7269_v6, 4  ;;  %v567_v39 = vrot.slane %v7261_v3, 7 }
  0x70   : > { %v7281_v12 = vld [vmem:[%s7240_s17 + $0x70] sm:$0xff]  ;;  %v7284_v13 = vld [vmem:[%s7240_s17 + $0x80] sm:$0xff]  ;;  %v540_v16 = vrot.slane %v7272_v7, 3  ;;  %v530_v20 = vsel %vm529_vm0, %v528_v8, %v7255_v1  ;;  %v543_v21 = vrot.slane %v7278_v11, 2  ;;  %v569_v42 = vrot.slane %v7266_v5, 6  ;;  %v6484_v0 = vld [vmem:[%s8607_s1 + $0x28] sm:$0xff]  }
  0x71   : > { %v7290_v17 = vld [vmem:[%s7240_s17 + $0x90] sm:$0xff]  ;;  %v7293_v18 = vld [vmem:[%s7240_s17 + $0xa0] sm:$0xff]  ;;  %v546_v22 = vrot.slane %v7281_v12, 1  ;;  %v566_v23 = vsel %vm529_vm0, %v7258_v2, %v565_v10  ;;  %v533_v27 = vsel %vm532_vm1, %v531_v9, %v530_v20  ;;  %v571_v43 = vrot.slane %v7269_v6, 5  ;;  %6354 = vmatprep.subr.bf16.mxu0 %v6484_v0  ;;  %s7019_s10 = smov 64   ;;  %s5979_s16 = sshll.u32 %s7110_s25, 8 }
  0x72   : > { %v7296_v19 = vld [vmem:[%s7240_s17 + $0xb0] sm:$0xff]  ;;  %v7305_v24 = vld [vmem:[%s7240_s17 + $0xc0] sm:$0xff]  ;;  %v549_v28 = vrot.slane %v7290_v17, 7  ;;  %v551_v29 = vrot.slane %v7293_v18, 6  ;;  %v536_v32 = vsel %vm535_vm2, %v534_v14, %v533_v27  ;;  %v568_v46 = vsel %vm532_vm1, %v567_v39, %v566_v23  ;;  %6355 = vmatpush3.bf16.msra.mxu0 %v6484_v0  ;;  %s8563_s13 = scalar_lea.hbm %s8618_s12, %s5979_s16  ;;  %s5484_s26 = scalar_lea.sflag [#allocation4], %s7236_s15 }
  0x73   : > { %v7308_v25 = vld [vmem:[%s7240_s17 + $0xd0] sm:$0xff]  ;;  %v7311_v26 = vld [vmem:[%s7240_s17 + $0xe0] sm:$0xff]  ;;  %v553_v30 = vrot.slane %v7296_v19, 5  ;;  %v555_v33 = vrot.slane %v7305_v24, 4  ;;  %v539_v36 = vsel %vm538_vm3, %v537_v15, %v536_v32  ;;  %v573_v47 = vrot.slane %v7272_v7, 4  ;;  %p8654_p12 = scmp.ne.s32.totalorder %s8644_s20, 0 }
  0x74   : > { %v7318_v31 = vld [vmem:[%s7240_s17 + $0xf0] sm:$0xff]  ;;  %v557_v34 = vrot.slane %v7308_v25, 3  ;;  %v559_v35 = vrot.slane %v7311_v26, 2  ;;  %v550_v37 = vsel %vm529_vm0, %v549_v28, %v7284_v13  ;;  %v542_v40 = vsel %vm541_vm4, %v540_v16, %v539_v36  ;;  %v6485_v15 = vld [vmem:[%s8607_s1 + $0x20] sm:$0xff]   ;;  %s7021_s25 = smov [#allocation10]  }
  0x75   : > { %v561_v38 = vrot.slane %v7318_v31, 1  ;;  %v552_v41 = vsel %vm532_vm1, %v551_v29, %v550_v37  ;;  %v545_v44 = vsel %vm544_vm5, %v543_v21, %v542_v40  ;;  %v570_v50 = vsel %vm535_vm2, %v569_v42, %v568_v46  ;;  %6356 = vmatprep.subr.bf16.mxu0 %v6485_v15 }
  0x76   : > { %v554_v45 = vsel %vm535_vm2, %v553_v30, %v552_v41  ;;  %v548_v48 = vsel %vm547_vm6, %v546_v22, %v545_v44  ;;  %v575_v51 = vrot.slane %v7278_v11, 3  ;;  %v572_v53 = vsel %vm538_vm3, %v571_v43, %v570_v50  ;;  %6357 = vmatpush3.bf16.msra.mxu0 %v6485_v15 }
  0x77   : > { %v556_v49 = vsel %vm538_vm3, %v555_v33, %v554_v45  ;;  %v577_v54 = vrot.slane %v7281_v12, 2  ;;  %v579_v55 = vrot.slane %v7284_v13, 1  ;;  %v574_v57 = vsel %vm541_vm4, %v573_v47, %v572_v53 }
  0x78   : > { %v558_v52 = vsel %vm541_vm4, %v557_v34, %v556_v49  ;;  %v581_v58 = vrot.slane %v7293_v18, 7  ;;  %v583_v59 = vrot.slane %v7296_v19, 6  ;;  %v576_v61 = vsel %vm544_vm5, %v575_v51, %v574_v57 }
  0x79   : > { %v560_v56 = vsel %vm544_vm5, %v559_v35, %v558_v52  ;;  %v580_v62 = vsel %vm529_vm0, %v7290_v17, %v579_v55  ;;  %v585_v63 = vrot.slane %v7305_v24, 5  ;;  %v578_v9 = vsel %vm547_vm6, %v577_v54, %v576_v61  ;;  %v6486_v35 = vld [vmem:[%s8607_s1 + $0x18] sm:$0xff]  }
  0x7a   : > { %v562_v60 = vsel %vm547_vm6, %v561_v38, %v560_v56  ;;  %v582_v10 = vsel %vm532_vm1, %v581_v58, %v580_v62  ;;  %v587_v14 = vrot.slane %v7308_v25, 4  ;;  %v589_v20 = vrot.slane %v7311_v26, 3  ;;  %6358 = vmatprep.subr.bf16.mxu0 %v6486_v35 }
  0x7b   : > { %v7357_v8 = vpack.c.bf16 %v562_v60, %v548_v48  ;;  %v584_v16 = vsel %vm535_vm2, %v583_v59, %v582_v10  ;;  %v591_v21 = vrot.slane %v7318_v31, 2  ;;  %v595_v22 = vrot.slane %v7255_v1, 2  ;;  %v6487_v48 = vld [vmem:[%s8607_s1 + $0x10] sm:$0xff]   ;;  %6359 = vmatpush3.bf16.msra.mxu0 %v6486_v35 }
  0x7c   : > { %v586_v23 = vsel %vm538_vm3, %v585_v63, %v584_v16  ;;  %v596_v27 = vrot.slane %v7258_v2, 1  ;;  %v599_v28 = vrot.slane %v7266_v5, 7  ;;  %v601_v29 = vrot.slane %v7269_v6, 6  ;;  %6360 = vmatprep.subr.bf16.mxu0 %v6487_v48 }
  0x7d   : > { %1071 = vrot.lane.b32.xlu0 %v7357_v8, %s7018_s19  ;;  %v588_v30 = vsel %vm541_vm4, %v587_v14, %v586_v23  ;;  %v603_v32 = vrot.slane %v7272_v7, 5  ;;  %v605_v33 = vrot.slane %v7278_v11, 4  ;;  %v607_v34 = vrot.slane %v7281_v12, 3 }
  0x7e   : > { %v590_v36 = vsel %vm544_vm5, %v589_v20, %v588_v30  ;;  %v597_v37 = vsel %vm529_vm0, %v596_v27, %v595_v22  ;;  %v609_v38 = vrot.slane %v7284_v13, 2  ;;  %v610_v39 = vrot.slane %v7290_v17, 1 }
  0x7f   : > { %v592_v40 = vsel %vm547_vm6, %v591_v21, %v590_v36  ;;  %v598_v41 = vsel %vm532_vm1, %v7261_v3, %v597_v37  ;;  %v613_v42 = vrot.slane %v7296_v19, 7  ;;  %v615_v43 = vrot.slane %v7305_v24, 6  ;;  %6361 = vmatpush3.bf16.msra.mxu0 %v6487_v48 }
  0x80   : > { %v7391_v44 = vpack.c.bf16 %v592_v40, %v578_v9  ;;  %v600_v45 = vsel %vm535_vm2, %v599_v28, %v598_v41  ;;  %v611_v46 = vsel %vm529_vm0, %v610_v39, %v609_v38  ;;  %v617_v47 = vrot.slane %v7308_v25, 5  ;;  %v6488_v9 = vld [vmem:[%s8607_s1 + $0x8] sm:$0xff]  }
  0x81   : > { %v602_v49 = vsel %vm538_vm3, %v601_v29, %v600_v45  ;;  %v612_v50 = vsel %vm532_vm1, %v7293_v18, %v611_v46  ;;  %v619_v51 = vrot.slane %v7311_v26, 4  ;;  %v621_v52 = vrot.slane %v7318_v31, 3  ;;  %6362 = vmatprep.subr.bf16.mxu0 %v6488_v9 }
  0x82   : > { %1104 = vrot.lane.b32.xlu1 %v7391_v44, %s7019_s10  ;;  %1073 = vrot.lane.b32.xlu0 %v7391_v44, %s7018_s19  ;;  %v604_v53 = vsel %vm541_vm4, %v603_v32, %v602_v49  ;;  %v614_v54 = vsel %vm535_vm2, %v613_v42, %v612_v50  ;;  %v625_v55 = vrot.slane %v7255_v1, 3  ;;  %v626_v56 = vrot.slane %v7258_v2, 2  ;;  %v6489_v32 = vld [vmem:[%s8607_s1] sm:$0xff]  }
  0x83   : > { %v606_v57 = vsel %vm544_vm5, %v605_v33, %v604_v53  ;;  %v616_v58 = vsel %vm538_vm3, %v615_v43, %v614_v54  ;;  %v628_v59 = vrot.slane %v7261_v3, 1  ;;  %v631_v60 = vrot.slane %v7269_v6, 7  ;;  %6363 = vmatpush3.bf16.msra.mxu0 %v6488_v9 }
  0x84   : > { %v608_v61 = vsel %vm547_vm6, %v607_v34, %v606_v57  ;;  %v618_v62 = vsel %vm541_vm4, %v617_v47, %v616_v58  ;;  %v627_v63 = vsel %vm529_vm0, %v626_v56, %v625_v55  ;;  %v633_v0 = vrot.slane %v7272_v7, 6  ;;  %6364 = vmatprep.subr.bf16.mxu0 %v6489_v32 }
  0x85   : > { %v620_v10 = vsel %vm544_vm5, %v619_v51, %v618_v62  ;;  %v629_v14 = vsel %vm532_vm1, %v628_v59, %v627_v63  ;;  %v635_v15 = vrot.slane %v7278_v11, 5  ;;  %v637_v16 = vrot.slane %v7281_v12, 4 }
  0x86   : > { %v622_v20 = vsel %vm547_vm6, %v621_v52, %v620_v10  ;;  %v630_v21 = vsel %vm535_vm2, %v7266_v5, %v629_v14  ;;  %v639_v22 = vrot.slane %v7284_v13, 3  ;;  %v640_v23 = vrot.slane %v7290_v17, 2 }
  0x87   : > { %v7432_v27 = vpack.c.bf16 %v622_v20, %v608_v61  ;;  %v632_v28 = vsel %vm538_vm3, %v631_v60, %v630_v21  ;;  %v642_v29 = vrot.slane %v7293_v18, 1  ;;  %v645_v30 = vrot.slane %v7305_v24, 7  ;;  %6365 = vmatpush3.bf16.msra.mxu0 %v6489_v32 }
  0x88   : > { %v634_v33 = vsel %vm541_vm4, %v633_v0, %v632_v28  ;;  %v641_v34 = vsel %vm529_vm0, %v640_v23, %v639_v22  ;;  %v647_v35 = vrot.slane %v7308_v25, 6  ;;  %v649_v36 = vrot.slane %v7311_v26, 5 }
  0x89   : > { %1106 = vrot.lane.b32.xlu1 %v7432_v27, %s7019_s10  ;;  %1075 = vrot.lane.b32.xlu0 %v7432_v27, %s7018_s19  ;;  %v636_v37 = vsel %vm544_vm5, %v635_v15, %v634_v33  ;;  %v643_v38 = vsel %vm532_vm1, %v642_v29, %v641_v34  ;;  %v651_v39 = vrot.slane %v7318_v31, 4  ;;  %v655_v40 = vrot.slane %v7255_v1, 4 }
  0x8a   : > { %v638_v41 = vsel %vm547_vm6, %v637_v16, %v636_v37  ;;  %v644_v42 = vsel %vm535_vm2, %v7296_v19, %v643_v38  ;;  %v656_v43 = vrot.slane %v7258_v2, 3  ;;  %v658_v45 = vrot.slane %v7261_v3, 2 }
  0x8b   : > { %v646_v46 = vsel %vm538_vm3, %v645_v30, %v644_v42  ;;  %v660_v47 = vrot.slane %v7266_v5, 1  ;;  %v663_v48 = vrot.slane %v7272_v7, 7  ;;  %v665_v49 = vrot.slane %v7278_v11, 6 }
  0x8c   : > { %v648_v50 = vsel %vm541_vm4, %v647_v35, %v646_v46  ;;  %v657_v51 = vsel %vm529_vm0, %v656_v43, %v655_v40  ;;  %v667_v52 = vrot.slane %v7281_v12, 5  ;;  %v669_v53 = vrot.slane %v7284_v13, 4 }
  0x8d   : > { %v650_v54 = vsel %vm544_vm5, %v649_v36, %v648_v50  ;;  %v659_v55 = vsel %vm532_vm1, %v658_v45, %v657_v51  ;;  %v670_v56 = vrot.slane %v7290_v17, 3  ;;  %v672_v57 = vrot.slane %v7293_v18, 2 }
  0x8e   : > { %v652_v58 = vsel %vm547_vm6, %v651_v39, %v650_v54  ;;  %v661_v59 = vsel %vm535_vm2, %v660_v47, %v659_v55  ;;  %v674_v60 = vrot.slane %v7296_v19, 1  ;;  %v677_v61 = vrot.slane %v7308_v25, 7 }
  0x8f   : > { %v7473_v62 = vpack.c.bf16 %v652_v58, %v638_v41  ;;  %v662_v63 = vsel %vm538_vm3, %v7269_v6, %v661_v59  ;;  %v671_v0 = vsel %vm529_vm0, %v670_v56, %v669_v53  ;;  %v679_v9 = vrot.slane %v7311_v26, 6 }
  0x90   : > { %v664_v10 = vsel %vm541_vm4, %v663_v48, %v662_v63  ;;  %v673_v14 = vsel %vm532_vm1, %v672_v57, %v671_v0  ;;  %v681_v15 = vrot.slane %v7318_v31, 5  ;;  %v685_v16 = vrot.slane %v7255_v1, 5 }
  0x91   : > { %1077 = vrot.lane.b32.xlu1 %v7473_v62, %s7018_s19  ;;  %1108 = vrot.lane.b32.xlu0 %v7473_v62, %s7019_s10  ;;  %v666_v20 = vsel %vm544_vm5, %v665_v49, %v664_v10  ;;  %v675_v21 = vsel %vm535_vm2, %v674_v60, %v673_v14  ;;  %v686_v22 = vrot.slane %v7258_v2, 4  ;;  %v688_v23 = vrot.slane %v7261_v3, 3 }
  0x92   : > { %v668_v28 = vsel %vm547_vm6, %v667_v52, %v666_v20  ;;  %v676_v29 = vsel %vm538_vm3, %v7305_v24, %v675_v21  ;;  %v690_v30 = vrot.slane %v7266_v5, 2  ;;  %v692_v32 = vrot.slane %v7269_v6, 1 }
  0x93   : > { %v678_v33 = vsel %vm541_vm4, %v677_v61, %v676_v29  ;;  %v687_v34 = vsel %vm529_vm0, %v686_v22, %v685_v16  ;;  %v695_v35 = vrot.slane %v7278_v11, 7  ;;  %v697_v36 = vrot.slane %v7281_v12, 6 }
  0x94   : > { %v680_v37 = vsel %vm544_vm5, %v679_v9, %v678_v33  ;;  %v689_v38 = vsel %vm532_vm1, %v688_v23, %v687_v34  ;;  %v699_v39 = vrot.slane %v7284_v13, 5  ;;  %v700_v40 = vrot.slane %v7290_v17, 4 }
  0x95   : > { %v682_v41 = vsel %vm547_vm6, %v681_v15, %v680_v37  ;;  %v691_v42 = vsel %vm535_vm2, %v690_v30, %v689_v38  ;;  %v702_v43 = vrot.slane %v7293_v18, 3  ;;  %v704_v45 = vrot.slane %v7296_v19, 2 }
  0x96   : > { %v7508_v46 = vpack.c.bf16 %v682_v41, %v668_v28  ;;  %v693_v47 = vsel %vm538_vm3, %v692_v32, %v691_v42  ;;  %v701_v48 = vsel %vm529_vm0, %v700_v40, %v699_v39  ;;  %v706_v49 = vrot.slane %v7305_v24, 1 }
  0x97   : > { %v694_v50 = vsel %vm541_vm4, %v7272_v7, %v693_v47  ;;  %v703_v51 = vsel %vm532_vm1, %v702_v43, %v701_v48  ;;  %v709_v52 = vrot.slane %v7311_v26, 7  ;;  %v711_v53 = vrot.slane %v7318_v31, 6 }
  0x98   : > { %1110 = vrot.lane.b32.xlu1 %v7508_v46, %s7019_s10  ;;  %1079 = vrot.lane.b32.xlu0 %v7508_v46, %s7018_s19  ;;  %v696_v54 = vsel %vm544_vm5, %v695_v35, %v694_v50  ;;  %v705_v55 = vsel %vm535_vm2, %v704_v45, %v703_v51  ;;  %v715_v56 = vrot.slane %v7255_v1, 6  ;;  %v716_v57 = vrot.slane %v7258_v2, 5 }
  0x99   : > { %v698_v58 = vsel %vm547_vm6, %v697_v36, %v696_v54  ;;  %v707_v59 = vsel %vm538_vm3, %v706_v49, %v705_v55  ;;  %v718_v60 = vrot.slane %v7261_v3, 4  ;;  %v720_v61 = vrot.slane %v7266_v5, 3  ;;  %v7580_v54 = vld [vmem:[%s7240_s17 + $0x38] sm:$0xff] }
  0x9a   : > { %v708_v63 = vsel %vm541_vm4, %v7308_v25, %v707_v59  ;;  %v717_v0 = vsel %vm529_vm0, %v716_v57, %v715_v56  ;;  %v722_v9 = vrot.slane %v7269_v6, 2  ;;  %v724_v10 = vrot.slane %v7272_v7, 1  ;;  %v7588_v57 = vld [vmem:[%s7240_s17 + $0x8] sm:$0xff] }
  0x9b   : > { %v710_v14 = vsel %vm544_vm5, %v709_v52, %v708_v63  ;;  %v719_v15 = vsel %vm532_vm1, %v718_v60, %v717_v0  ;;  %v727_v16 = vrot.slane %v7281_v12, 7  ;;  %v729_v20 = vrot.slane %v7284_v13, 6  ;;  %v7604_v63 = vld [vmem:[%s7240_s17 + $0x78] sm:$0xff] }
  0x9c   : > { %v712_v21 = vsel %vm547_vm6, %v711_v53, %v710_v14  ;;  %v721_v22 = vsel %vm535_vm2, %v720_v61, %v719_v15  ;;  %v730_v23 = vrot.slane %v7290_v17, 5  ;;  %v732_v28 = vrot.slane %v7293_v18, 4  ;;  %v7577_v53 = vld [vmem:[%s7240_s17 + $0x28] sm:$0xff]  ;;  %v7612_v14 = vld [vmem:[%s7240_s17 + $0x98] sm:$0xff] }
  0x9d   : > { %v7543_v29 = vpack.c.bf16 %v712_v21, %v698_v58  ;;  %v723_v30 = vsel %vm538_vm3, %v722_v9, %v721_v22  ;;  %v734_v32 = vrot.slane %v7296_v19, 3  ;;  %v736_v33 = vrot.slane %v7305_v24, 2  ;;  %v7615_v15 = vld [vmem:[%s7240_s17 + $0xa8] sm:$0xff] }
  0x9e   : > { %v725_v34 = vsel %vm541_vm4, %v724_v10, %v723_v30  ;;  %v731_v35 = vsel %vm529_vm0, %v730_v23, %v729_v20  ;;  %v738_v36 = vrot.slane %v7308_v25, 1  ;;  %v741_v37 = vrot.slane %v7318_v31, 7  ;;  %v7621_v20 = vld [vmem:[%s7240_s17 + $0xb8] sm:$0xff]  ;;  %v7624_v21 = vld [vmem:[%s7240_s17 + $0xc8] sm:$0xff] }
  0x9f   : > { %1081 = vrot.lane.b32.xlu1 %v7543_v29, %s7018_s19  ;;  %1112 = vrot.lane.b32.xlu0 %v7543_v29, %s7019_s10  ;;  %v726_v38 = vsel %vm544_vm5, %v7278_v11, %v725_v34  ;;  %v733_v39 = vsel %vm532_vm1, %v732_v28, %v731_v35  ;;  %v745_v40 = vrot.slane %v7255_v1, 7  ;;  %v746_v41 = vrot.slane %v7258_v2, 6  ;;  %v7570_v2 = vld [vmem:[%s7240_s17 + $0x18] sm:$0xff]  ;;  %v7635_v28 = vld [vmem:[%s7240_s17 + $0x88] sm:$0xff] }
  0xa0   : > { %v728_v42 = vsel %vm547_vm6, %v727_v16, %v726_v38  ;;  %v735_v43 = vsel %vm535_vm2, %v734_v32, %v733_v39  ;;  %v748_v45 = vrot.slane %v7261_v3, 5  ;;  %v750_v47 = vrot.slane %v7266_v5, 4  ;;  %v7644_v34 = vld [vmem:[%s7240_s17 + $0xe8] sm:$0xff]  ;;  %v7647_v35 = vld [vmem:[%s7240_s17 + $0xf8] sm:$0xff] }
  0xa1   : > { %v737_v48 = vsel %vm538_vm3, %v736_v33, %v735_v43  ;;  %v747_v49 = vsel %vm529_vm0, %v746_v41, %v745_v40  ;;  %v752_v1 = vrot.slane %v7269_v6, 3  ;;  %v754_v50 = vrot.slane %v7272_v7, 2 }
  0xa2   : > { %v739_v51 = vsel %vm541_vm4, %v738_v36, %v737_v48  ;;  %v749_v52 = vsel %vm532_vm1, %v748_v45, %v747_v49  ;;  %v756_v3 = vrot.slane %v7278_v11, 1  ;;  %v759_v5 = vrot.slane %v7284_v13, 7  ;;  %v7591_v11 = vld [vmem:[%s7240_s17 + $0x48] sm:$0xff]  ;;  %v7594_v13 = vld [vmem:[%s7240_s17 + $0x58] sm:$0xff] }
  0xa3   : > { %v740_v6 = vsel %vm544_vm5, %v7311_v26, %v739_v51  ;;  %v751_v7 = vsel %vm535_vm2, %v750_v47, %v749_v52  ;;  %v760_v55 = vrot.slane %v7290_v17, 6  ;;  %v762_v56 = vrot.slane %v7293_v18, 5  ;;  %v7601_v17 = vld [vmem:[%s7240_s17 + $0x68] sm:$0xff] }
  0xa4   : > { %v742_v58 = vsel %vm547_vm6, %v741_v37, %v740_v6  ;;  %v753_v59 = vsel %vm538_vm3, %v752_v1, %v751_v7  ;;  %v764_v60 = vrot.slane %v7296_v19, 4  ;;  %v766_v61 = vrot.slane %v7305_v24, 3 }
  0xa5   : > { %v7606_v18 = vpack.c.bf16 %v742_v58, %v728_v42  ;;  %v755_v0 = vsel %vm541_vm4, %v754_v50, %v753_v59  ;;  %v761_v9 = vsel %vm529_vm0, %v760_v55, %v759_v5  ;;  %v768_v10 = vrot.slane %v7308_v25, 2 }
  0xa6   : > { %v757_v19 = vsel %vm544_vm5, %v756_v3, %v755_v0  ;;  %v763_v24 = vsel %vm532_vm1, %v762_v56, %v761_v9  ;;  %v770_v16 = vrot.slane %v7311_v26, 1  ;;  %v791_v22 = vrot.slane %v7570_v2, 7  ;;  %v7638_v26 = vld [vmem:[%s7240_s17 + $0xd8] sm:$0xff]  ;;  %s5614_s17 = sshll.u32 %s7236_s15, 4 }
  0xa7   : > { %1114 = vrot.lane.b32.xlu1 %v7606_v18, %s7019_s10  ;;  %1083 = vrot.lane.b32.xlu0 %v7606_v18, %s7018_s19  ;;  %v758_v25 = vsel %vm547_vm6, %v7281_v12, %v757_v19  ;;  %v765_v23 = vsel %vm535_vm2, %v764_v60, %v763_v24  ;;  %v793_v30 = vrot.slane %v7577_v53, 6  ;;  %v795_v32 = vrot.slane %v7580_v54, 5  ;;  %s476_s29 = scalar_lea.vmem [#allocation10], %s5614_s17 }
  0xa8   : > { %v767_v33 = vsel %vm538_vm3, %v766_v61, %v765_v23  ;;  %v792_v36 = vsel %vm529_vm0, %v791_v22, %v7588_v57  ;;  %v797_v12 = vrot.slane %v7591_v11, 4  ;;  %v799_v37 = vrot.slane %v7594_v13, 3  ;;  %s5497_s18 = sshll.u32 %s476_s29, 4  ;;  %s8558_s18 = int_to_ptr.vmem [resolvable:$true] %s5497_s18 }
  0xa9   : > { %v769_v38 = vsel %vm541_vm4, %v768_v10, %v767_v33  ;;  %v794_v39 = vsel %vm532_vm1, %v793_v30, %v792_v36  ;;  %v801_v40 = vrot.slane %v7601_v17, 2  ;;  %v803_v41 = vrot.slane %v7604_v63, 1  ;;  %s6936_s7 = scalar_lea.vmem %s8558_s18, 256 }
  0xaa   : > { %v771_v42 = vsel %vm544_vm5, %v770_v16, %v769_v38  ;;  %v796_v43 = vsel %vm535_vm2, %v795_v32, %v794_v39  ;;  %v805_v45 = vrot.slane %v7612_v14, 7  ;;  %v807_v47 = vrot.slane %v7615_v15, 6  ;;  %p6937_p7 = scmp.ne.s32.totalorder %s8558_s18, %s6936_s7 }
  0xab   : > { %v772_v48 = vsel %vm547_vm6, %v7318_v31, %v771_v42  ;;  %v798_v49 = vsel %vm538_vm3, %v797_v12, %v796_v43  ;;  %v809_v1 = vrot.slane %v7621_v20, 5  ;;  %v811_v50 = vrot.slane %v7624_v21, 4 }
  0xac   : > { %v7666_v51 = vpack.c.bf16 %v772_v48, %v758_v25  ;;  %v800_v52 = vsel %vm541_vm4, %v799_v37, %v798_v49  ;;  %v806_v3 = vsel %vm529_vm0, %v805_v45, %v7635_v28  ;;  %v813_v5 = vrot.slane %v7638_v26, 3  ;;  %p6938_p13 = pnand %p6937_p7, %p8654_p12 }
  0xad   : > { %v802_v6 = vsel %vm544_vm5, %v801_v40, %v800_v52  ;;  %v808_v7 = vsel %vm532_vm1, %v807_v47, %v806_v3  ;;  %v815_v31 = vrot.slane %v7644_v34, 2  ;;  %v817_v55 = vrot.slane %v7647_v35, 1 }
  0xae   : > { %1085 = vrot.lane.b32.xlu1 %v7666_v51, %s7018_s19  ;;  %1116 = vrot.lane.b32.xlu0 %v7666_v51, %s7019_s10  ;;  %v804_v56 = vsel %vm547_vm6, %v803_v41, %v802_v6  ;;  %v810_v58 = vsel %vm535_vm2, %v809_v1, %v808_v7  ;;  %v821_v59 = vrot.slane %v7588_v57, 1  ;;  %v823_v60 = vrot.slane %v7577_v53, 7  ;;  %p6939_p0 = pneg %p6938_p13 }
  0xaf   : > { %v812_v61 = vsel %vm538_vm3, %v811_v50, %v810_v58  ;;  %v825_v0 = vrot.slane %v7580_v54, 6  ;;  %v827_v9 = vrot.slane %v7591_v11, 5  ;;  %v829_v10 = vrot.slane %v7594_v13, 4 }
  0xb0   : > { %v814_v19 = vsel %vm541_vm4, %v813_v5, %v812_v61  ;;  %v822_v24 = vsel %vm529_vm0, %v7570_v2, %v821_v59  ;;  %v831_v16 = vrot.slane %v7601_v17, 3  ;;  %v833_v22 = vrot.slane %v7604_v63, 2 }
  0xb1   : > { %v816_v25 = vsel %vm544_vm5, %v815_v31, %v814_v19  ;;  %v824_v23 = vsel %vm532_vm1, %v823_v60, %v822_v24  ;;  %v835_v30 = vrot.slane %v7635_v28, 1  ;;  %v837_v32 = vrot.slane %v7615_v15, 7 }
  0xb2   : > { %v818_v33 = vsel %vm547_vm6, %v817_v55, %v816_v25  ;;  %v826_v36 = vsel %vm535_vm2, %v825_v0, %v824_v23  ;;  %v839_v12 = vrot.slane %v7621_v20, 6  ;;  %v841_v37 = vrot.slane %v7624_v21, 5 }
  0xb3   : > { %v7701_v38 = vpack.c.bf16 %v818_v33, %v804_v56  ;;  %v828_v39 = vsel %vm538_vm3, %v827_v9, %v826_v36  ;;  %v836_v40 = vsel %vm529_vm0, %v7612_v14, %v835_v30  ;;  %v843_v41 = vrot.slane %v7638_v26, 4 }
  0xb4   : > { %v830_v42 = vsel %vm541_vm4, %v829_v10, %v828_v39  ;;  %v838_v43 = vsel %vm532_vm1, %v837_v32, %v836_v40  ;;  %v845_v45 = vrot.slane %v7644_v34, 3  ;;  %v847_v47 = vrot.slane %v7647_v35, 2 }
  0xb5   : > { %1118 = vrot.lane.b32.xlu1 %v7701_v38, %s7019_s10  ;;  %1087 = vrot.lane.b32.xlu0 %v7701_v38, %s7018_s19  ;;  %v832_v48 = vsel %vm544_vm5, %v831_v16, %v830_v42  ;;  %v840_v49 = vsel %vm535_vm2, %v839_v12, %v838_v43  ;;  %v851_v1 = vrot.slane %v7588_v57, 2  ;;  %v852_v50 = vrot.slane %v7570_v2, 1 }
  0xb6   : > { %v834_v52 = vsel %vm547_vm6, %v833_v22, %v832_v48  ;;  %v842_v3 = vsel %vm538_vm3, %v841_v37, %v840_v49  ;;  %v855_v5 = vrot.slane %v7580_v54, 7  ;;  %v857_v6 = vrot.slane %v7591_v11, 6 }
  0xb7   : > { %v844_v7 = vsel %vm541_vm4, %v843_v41, %v842_v3  ;;  %v853_v31 = vsel %vm529_vm0, %v852_v50, %v851_v1  ;;  %v859_v55 = vrot.slane %v7594_v13, 5  ;;  %v861_v56 = vrot.slane %v7601_v17, 4 }
  0xb8   : > { %v846_v58 = vsel %vm544_vm5, %v845_v45, %v844_v7  ;;  %v854_v59 = vsel %vm532_vm1, %v7577_v53, %v853_v31  ;;  %v863_v60 = vrot.slane %v7604_v63, 3  ;;  %v865_v61 = vrot.slane %v7635_v28, 2 }
  0xb9   : > { %v848_v0 = vsel %vm547_vm6, %v847_v47, %v846_v58  ;;  %v856_v9 = vsel %vm535_vm2, %v855_v5, %v854_v59  ;;  %v866_v10 = vrot.slane %v7612_v14, 1  ;;  %v869_v19 = vrot.slane %v7621_v20, 7 }
  0xba   : > { %v7736_v24 = vpack.c.bf16 %v848_v0, %v834_v52  ;;  %v858_v16 = vsel %vm538_vm3, %v857_v6, %v856_v9  ;;  %v871_v22 = vrot.slane %v7624_v21, 6  ;;  %v873_v25 = vrot.slane %v7638_v26, 5 }
  0xbb   : > { %v860_v23 = vsel %vm541_vm4, %v859_v55, %v858_v16  ;;  %v867_v30 = vsel %vm529_vm0, %v866_v10, %v865_v61  ;;  %v875_v32 = vrot.slane %v7644_v34, 4  ;;  %v877_v33 = vrot.slane %v7647_v35, 3 }
  0xbc   : > { %1089 = vrot.lane.b32.xlu1 %v7736_v24, %s7018_s19  ;;  %1120 = vrot.lane.b32.xlu0 %v7736_v24, %s7019_s10  ;;  %v862_v36 = vsel %vm544_vm5, %v861_v56, %v860_v23  ;;  %v868_v12 = vsel %vm532_vm1, %v7615_v15, %v867_v30  ;;  %v881_v37 = vrot.slane %v7588_v57, 3  ;;  %v882_v39 = vrot.slane %v7570_v2, 2 }
  0xbd   : > { %v864_v40 = vsel %vm547_vm6, %v863_v60, %v862_v36  ;;  %v870_v41 = vsel %vm535_vm2, %v869_v19, %v868_v12  ;;  %v884_v42 = vrot.slane %v7577_v53, 1  ;;  %v887_v43 = vrot.slane %v7591_v11, 7 }
  0xbe   : > { %v872_v45 = vsel %vm538_vm3, %v871_v22, %v870_v41  ;;  %v883_v47 = vsel %vm529_vm0, %v882_v39, %v881_v37  ;;  %v889_v48 = vrot.slane %v7594_v13, 6  ;;  %v891_v49 = vrot.slane %v7601_v17, 5 }
  0xbf   : > { %v874_v1 = vsel %vm541_vm4, %v873_v25, %v872_v45  ;;  %v885_v50 = vsel %vm532_vm1, %v884_v42, %v883_v47  ;;  %v893_v52 = vrot.slane %v7604_v63, 4  ;;  %v895_v3 = vrot.slane %v7635_v28, 3 }
  0xc0   : > { %v876_v5 = vsel %vm544_vm5, %v875_v32, %v874_v1  ;;  %v886_v6 = vsel %vm535_vm2, %v7580_v54, %v885_v50  ;;  %v896_v7 = vrot.slane %v7612_v14, 2  ;;  %v898_v31 = vrot.slane %v7615_v15, 1 }
  0xc1   : > { %v878_v55 = vsel %vm547_vm6, %v877_v33, %v876_v5  ;;  %v888_v56 = vsel %vm538_vm3, %v887_v43, %v886_v6  ;;  %v901_v58 = vrot.slane %v7624_v21, 7  ;;  %v903_v59 = vrot.slane %v7638_v26, 6 }
  0xc2   : > { %v7775_v60 = vpack.c.bf16 %v878_v55, %v864_v40  ;;  %v890_v61 = vsel %vm541_vm4, %v889_v48, %v888_v56  ;;  %v897_v0 = vsel %vm529_vm0, %v896_v7, %v895_v3  ;;  %v905_v9 = vrot.slane %v7644_v34, 5 }
  0xc3   : > { %v892_v10 = vsel %vm544_vm5, %v891_v49, %v890_v61  ;;  %v899_v19 = vsel %vm532_vm1, %v898_v31, %v897_v0  ;;  %v907_v16 = vrot.slane %v7647_v35, 4  ;;  %v911_v22 = vrot.slane %v7588_v57, 4 }
  0xc4   : > { %1122 = vrot.lane.b32.xlu1 %v7775_v60, %s7019_s10  ;;  %1091 = vrot.lane.b32.xlu0 %v7775_v60, %s7018_s19  ;;  %v894_v25 = vsel %vm547_vm6, %v893_v52, %v892_v10  ;;  %v900_v23 = vsel %vm535_vm2, %v7621_v20, %v899_v19  ;;  %v912_v30 = vrot.slane %v7570_v2, 3  ;;  %v914_v32 = vrot.slane %v7577_v53, 2 }
  0xc5   : > { %v902_v33 = vsel %vm538_vm3, %v901_v58, %v900_v23  ;;  %v916_v36 = vrot.slane %v7580_v54, 1  ;;  %v919_v12 = vrot.slane %v7594_v13, 7  ;;  %v921_v37 = vrot.slane %v7601_v17, 6 }
  0xc6   : > { %v904_v39 = vsel %vm541_vm4, %v903_v59, %v902_v33  ;;  %v913_v40 = vsel %vm529_vm0, %v912_v30, %v911_v22  ;;  %v923_v41 = vrot.slane %v7604_v63, 5  ;;  %v925_v42 = vrot.slane %v7635_v28, 4 }
  0xc7   : > { %v906_v43 = vsel %vm544_vm5, %v905_v9, %v904_v39  ;;  %v915_v45 = vsel %vm532_vm1, %v914_v32, %v913_v40  ;;  %v926_v47 = vrot.slane %v7612_v14, 3  ;;  %v928_v48 = vrot.slane %v7615_v15, 2 }
  0xc8   : > { %v908_v49 = vsel %vm547_vm6, %v907_v16, %v906_v43  ;;  %v917_v1 = vsel %vm535_vm2, %v916_v36, %v915_v45  ;;  %v930_v50 = vrot.slane %v7621_v20, 1  ;;  %v933_v52 = vrot.slane %v7638_v26, 7 }
  0xc9   : > { %v7809_v3 = vpack.c.bf16 %v908_v49, %v894_v25  ;;  %v918_v5 = vsel %vm538_vm3, %v7591_v11, %v917_v1  ;;  %v927_v6 = vsel %vm529_vm0, %v926_v47, %v925_v42  ;;  %v935_v7 = vrot.slane %v7644_v34, 6 }
  0xca   : > { %v920_v31 = vsel %vm541_vm4, %v919_v12, %v918_v5  ;;  %v929_v55 = vsel %vm532_vm1, %v928_v48, %v927_v6  ;;  %v937_v56 = vrot.slane %v7647_v35, 5  ;;  %v941_v58 = vrot.slane %v7588_v57, 5 }
  0xcb   : > { %1093 = vrot.lane.b32.xlu1 %v7809_v3, %s7018_s19  ;;  %1124 = vrot.lane.b32.xlu0 %v7809_v3, %s7019_s10  ;;  %v922_v59 = vsel %vm544_vm5, %v921_v37, %v920_v31  ;;  %v931_v61 = vsel %vm535_vm2, %v930_v50, %v929_v55  ;;  %v942_v0 = vrot.slane %v7570_v2, 4  ;;  %v944_v9 = vrot.slane %v7577_v53, 3 }
  0xcc   : > { %v924_v10 = vsel %vm547_vm6, %v923_v41, %v922_v59  ;;  %v932_v19 = vsel %vm538_vm3, %v7624_v21, %v931_v61  ;;  %v946_v16 = vrot.slane %v7580_v54, 2  ;;  %v948_v22 = vrot.slane %v7591_v11, 1 }
  0xcd   : > { %v934_v25 = vsel %vm541_vm4, %v933_v52, %v932_v19  ;;  %v943_v23 = vsel %vm529_vm0, %v942_v0, %v941_v58  ;;  %v951_v30 = vrot.slane %v7601_v17, 7  ;;  %v953_v32 = vrot.slane %v7604_v63, 6 }
  0xce   : > { %v936_v33 = vsel %vm544_vm5, %v935_v7, %v934_v25  ;;  %v945_v36 = vsel %vm532_vm1, %v944_v9, %v943_v23  ;;  %v955_v12 = vrot.slane %v7635_v28, 5  ;;  %v956_v37 = vrot.slane %v7612_v14, 4 }
  0xcf   : > { %v938_v39 = vsel %vm547_vm6, %v937_v56, %v936_v33  ;;  %v947_v40 = vsel %vm535_vm2, %v946_v16, %v945_v36  ;;  %v958_v41 = vrot.slane %v7615_v15, 3  ;;  %v960_v42 = vrot.slane %v7621_v20, 2 }
  0xd0   : > { %v7844_v43 = vpack.c.bf16 %v938_v39, %v924_v10  ;;  %v949_v45 = vsel %vm538_vm3, %v948_v22, %v947_v40  ;;  %v957_v47 = vsel %vm529_vm0, %v956_v37, %v955_v12  ;;  %v962_v48 = vrot.slane %v7624_v21, 1 }
  0xd1   : > { %v950_v49 = vsel %vm541_vm4, %v7594_v13, %v949_v45  ;;  %v959_v1 = vsel %vm532_vm1, %v958_v41, %v957_v47  ;;  %v965_v50 = vrot.slane %v7644_v34, 7  ;;  %v967_v52 = vrot.slane %v7647_v35, 6 }
  0xd2   : > { %1126 = vrot.lane.b32.xlu1 %v7844_v43, %s7019_s10  ;;  %1095 = vrot.lane.b32.xlu0 %v7844_v43, %s7018_s19  ;;  %v952_v5 = vsel %vm544_vm5, %v951_v30, %v950_v49  ;;  %v961_v6 = vsel %vm535_vm2, %v960_v42, %v959_v1  ;;  %v971_v7 = vrot.slane %v7588_v57, 6  ;;  %v972_v31 = vrot.slane %v7570_v2, 5 }
  0xd3   : > { %v954_v55 = vsel %vm547_vm6, %v953_v32, %v952_v5  ;;  %v963_v56 = vsel %vm538_vm3, %v962_v48, %v961_v6  ;;  %v974_v58 = vrot.slane %v7577_v53, 4  ;;  %v976_v59 = vrot.slane %v7580_v54, 3 }
  0xd4   : > { %v964_v61 = vsel %vm541_vm4, %v7638_v26, %v963_v56  ;;  %v973_v0 = vsel %vm529_vm0, %v972_v31, %v971_v7  ;;  %v978_v9 = vrot.slane %v7591_v11, 2  ;;  %v980_v10 = vrot.slane %v7594_v13, 1 }
  0xd5   : > { %v966_v19 = vsel %vm544_vm5, %v965_v50, %v964_v61  ;;  %v975_v16 = vsel %vm532_vm1, %v974_v58, %v973_v0  ;;  %v983_v22 = vrot.slane %v7604_v63, 7  ;;  %v985_v25 = vrot.slane %v7635_v28, 6 }
  0xd6   : > { %v968_v23 = vsel %vm547_vm6, %v967_v52, %v966_v19  ;;  %v977_v30 = vsel %vm535_vm2, %v976_v59, %v975_v16  ;;  %v986_v32 = vrot.slane %v7612_v14, 5  ;;  %v988_v33 = vrot.slane %v7615_v15, 4 }
  0xd7   : > { %v7879_v36 = vpack.c.bf16 %v968_v23, %v954_v55  ;;  %v979_v12 = vsel %vm538_vm3, %v978_v9, %v977_v30  ;;  %v990_v37 = vrot.slane %v7621_v20, 3  ;;  %v992_v39 = vrot.slane %v7624_v21, 2 }
  0xd8   : > { %v981_v40 = vsel %vm541_vm4, %v980_v10, %v979_v12  ;;  %v987_v41 = vsel %vm529_vm0, %v986_v32, %v985_v25  ;;  %v994_v42 = vrot.slane %v7638_v26, 1  ;;  %v997_v45 = vrot.slane %v7647_v35, 7 }
  0xd9   : > { %1097 = vrot.lane.b32.xlu1 %v7879_v36, %s7018_s19  ;;  %1128 = vrot.lane.b32.xlu0 %v7879_v36, %s7019_s10  ;;  %v982_v47 = vsel %vm544_vm5, %v7601_v17, %v981_v40  ;;  %v989_v48 = vsel %vm532_vm1, %v988_v33, %v987_v41  ;;  %v1001_v49 = vrot.slane %v7588_v57, 7  ;;  %v1002_v1 = vrot.slane %v7570_v2, 6 }
  0xda   : > { %v984_v50 = vsel %vm547_vm6, %v983_v22, %v982_v47  ;;  %v991_v52 = vsel %vm535_vm2, %v990_v37, %v989_v48  ;;  %v1004_v5 = vrot.slane %v7577_v53, 5  ;;  %v1006_v6 = vrot.slane %v7580_v54, 4 }
  0xdb   : > { %v993_v7 = vsel %vm538_vm3, %v992_v39, %v991_v52  ;;  %v1003_v31 = vsel %vm529_vm0, %v1002_v1, %v1001_v49  ;;  %v1008_v55 = vrot.slane %v7591_v11, 3  ;;  %v1010_v56 = vrot.slane %v7594_v13, 2 }
  0xdc   : > { %v995_v57 = vsel %vm541_vm4, %v994_v42, %v993_v7  ;;  %v1005_v2 = vsel %vm532_vm1, %v1004_v5, %v1003_v31  ;;  %v1012_v58 = vrot.slane %v7601_v17, 1  ;;  %v1015_v59 = vrot.slane %v7635_v28, 7 }
  0xdd   : > { %v996_v53 = vsel %vm544_vm5, %v7644_v34, %v995_v57  ;;  %v1007_v54 = vsel %vm535_vm2, %v1006_v6, %v1005_v2  ;;  %v1016_v61 = vrot.slane %v7612_v14, 6  ;;  %v1018_v0 = vrot.slane %v7615_v15, 5 }
  0xde   : > { %v998_v11 = vsel %vm547_vm6, %v997_v45, %v996_v53  ;;  %v1009_v13 = vsel %vm538_vm3, %v1008_v55, %v1007_v54  ;;  %v1020_v9 = vrot.slane %v7621_v20, 4  ;;  %v1022_v10 = vrot.slane %v7624_v21, 3  ;;  %v1047_v21 = vld [vmem:[%s8609_s3] sm:$0x1] }
  0xdf   : > { %v7918_v17 = vpack.c.bf16 %v998_v11, %v984_v50  ;;  %v1011_v28 = vsel %vm541_vm4, %v1010_v56, %v1009_v13  ;;  %v1017_v19 = vsel %vm529_vm0, %v1016_v61, %v1015_v59  ;;  %v1024_v16 = vrot.slane %v7638_v26, 2 }
  0xe0   : > { %v1013_v14 = vsel %vm544_vm5, %v1012_v58, %v1011_v28  ;;  %v1019_v15 = vsel %vm532_vm1, %v1018_v0, %v1017_v19  ;;  %v1026_v22 = vrot.slane %v7644_v34, 1  ;;  %v7936_v25 = vsub.s32 0, %v7263_v4 }
  0xe1   : > { %1130 = vrot.lane.b32.xlu1 %v7918_v17, %s7019_s10  ;;  %1099 = vrot.lane.b32.xlu0 %v7918_v17, %s7018_s19  ;;  %v1021_v20 = vsel %vm535_vm2, %v1020_v9, %v1019_v15  ;;  %v1014_v34 = vsel %vm547_vm6, %v7604_v63, %v1013_v14  ;;  %v1049_v32 = vpack.i.b16 %v1047_v21, %v1047_v21  ;;  %vm1136_vm7 = vcmask 261120  }
  0xe2   : > { %v1023_v26 = vsel %vm538_vm3, %v1022_v10, %v1021_v20  ;;  %vm1185_vm8 = vcmask 523264   ;;  %vm1273_vm9 = vcmask 785408  }
  0xe3   : > { %v1025_v23 = vsel %vm541_vm4, %v1024_v16, %v1023_v26  ;;  %v1054_v37 = vrot.slane %v1049_v32, %v7936_v25 }
  0xe4   : > { %v1027_v30 = vsel %vm544_vm5, %v1026_v22, %v1025_v23 }
  0xe5   : > { %v1028_v33 = vsel %vm547_vm6, %v7647_v35, %v1027_v30 }
  0xe6   : > { %v1046_v12 = vpack.c.bf16 %v1028_v33, %v1014_v34 }
  0xe8   : > { %1101 = vrot.lane.b32.xlu1 %v1046_v12, %s7018_s19  ;;  %1132 = vrot.lane.b32.xlu0 %v1046_v12, %s7019_s10 }
  0xec   : > { %1134 = vrot.lane.b32.xlu1 %v1054_v37, %s7019_s10 }
  0xef   : > { %v1072_v63 = vpop.permute.xlu0 %1071 }
  0xf0   : > { %v1139_v39 = vsel %vm1136_vm7, %v1054_v37, %v1072_v63 }
  0xf4   : > { %v1105_v40 = vpop.permute.xlu1 %1104  ;;  %v1074_v35 = vpop.permute.xlu0 %1073 }
  0xf5   : > { %v1187_v41 = vsel %vm1185_vm8, %v1139_v39, %v1105_v40  ;;  %v1142_v42 = vsel %vm1136_vm7, %v7357_v8, %v1074_v35  ;;  %v6490_v35 = vld [vmem:[#allocation5 + $0x38] sm:$0xff]  }
  0xf6   : > { %6366 = vmatprep.mubr.msk.bf16.mxu0 %vm1273_vm9, %v1187_v41 }
  0xfb   : > { %v1107_v45 = vpop.permute.xlu1 %1106  ;;  %v1076_v48 = vpop.permute.xlu0 %1075 }
  0xfc   : > { %v1189_v47 = vsel %vm1185_vm8, %v1142_v42, %v1107_v45  ;;  %v1145_v49 = vsel %vm1136_vm7, %v7391_v44, %v1076_v48  ;;  %v7020_v42 = vmov 0   ;;  %v6492_v45 = vld [vmem:[#allocation5 + $0x28] sm:$0xff]  }
  0xfd   : > { %6367 = vmatmul.mubr.msk.bf16.vlgmr.msra.gmra.mxu0 %vm1273_vm9, %v1189_v47  ;;  %1771 = vmatprep.subr.bf16.mxu1 %v7020_v42  ;;  %v6494_v47 = vld [vmem:[#allocation5 + $0x18] sm:$0xff]  }
  0xfe   : > { %1772 = vmatpush1.bf16.msra.mxu1 %v6490_v35 }
  0xff   : > { %1773 = vmatprep.subr.bf16.mxu1 %v7020_v42 }
 0x103   : > { %v1109_v1 = vpop.permute.xlu0 %1108  ;;  %v1078_v50 = vpop.permute.xlu1 %1077 }
 0x104   : > { %v1191_v52 = vsel %vm1185_vm8, %v1145_v49, %v1109_v1  ;;  %v1148_v5 = vsel %vm1136_vm7, %v7432_v27, %v1078_v50  ;;  %v8019_v49 = vld [vmem:[%s8608_s2] ss:$0 sm:$0xff]  ;;  %v6495_v50 = vld [vmem:[#allocation5 + $0x10] sm:$0xff]  }
 0x105   : > { %6370 = vmatprep.mubr.msk.bf16.mxu0 %vm1273_vm9, %v1191_v52 }
 0x10a   : > { %v1111_v6 = vpop.permute.xlu1 %1110  ;;  %v1080_v7 = vpop.permute.xlu0 %1079 }
 0x10b   : > { %v1193_v8 = vsel %vm1185_vm8, %v1148_v5, %v1111_v6  ;;  %v1151_v31 = vsel %vm1136_vm7, %v7473_v62, %v1080_v7 }
 0x10c   : > { %6371 = vmatmul.mubr.msk.bf16.gmra.mxu0 %vm1273_vm9, %v1193_v8 }
 0x111   : > { %v1113_v55 = vpop.permute.xlu0 %1112  ;;  %v1082_v56 = vpop.permute.xlu1 %1081 }
 0x112   : > { %v1195_v44 = vsel %vm1185_vm8, %v1151_v31, %v1113_v55  ;;  %v1154_v57 = vsel %vm1136_vm7, %v7508_v46, %v1082_v56  ;;  %v6496_v31 = vld [vmem:[#allocation5 + $0x8] sm:$0xff]  }
 0x113   : > { %6374 = vmatprep.mubr.msk.bf16.mxu0 %vm1273_vm9, %v1195_v44 }
 0x119   : > { %v1115_v2 = vpop.permute.xlu1 %1114  ;;  %v1084_v58 = vpop.permute.xlu0 %1083 }
 0x11a   : > { %v1197_v27 = vsel %vm1185_vm8, %v1154_v57, %v1115_v2  ;;  %v1157_v59 = vsel %vm1136_vm7, %v7543_v29, %v1084_v58  ;;  %v6497_v58 = vld [vmem:[#allocation5] sm:$0xff]  }
 0x11b   : > { %6375 = vmatmul.mubr.msk.bf16.gmra.mxu0 %vm1273_vm9, %v1197_v27 }
 0x120   : > { %v1117_v53 = vpop.permute.xlu0 %1116  ;;  %v1086_v62 = vpop.permute.xlu1 %1085 }
 0x121   : > { %v1199_v54 = vsel %vm1185_vm8, %v1157_v59, %v1117_v53  ;;  %v1160_v61 = vsel %vm1136_vm7, %v7606_v18, %v1086_v62  ;;  %v6498_v53 = vld [vmem:[#allocation5 + $0x58] sm:$0xff]  }
 0x122   : > { %6378 = vmatprep.mubr.msk.bf16.mxu0 %vm1273_vm9, %v1199_v54 }
 0x127   : > { %v1119_v0 = vpop.permute.xlu1 %1118  ;;  %v1088_v11 = vpop.permute.xlu0 %1087 }
 0x128   : > { %v1201_v46 = vsel %vm1185_vm8, %v1160_v61, %v1119_v0  ;;  %v1163_v13 = vsel %vm1136_vm7, %v7666_v51, %v1088_v11 }
 0x129   : > { %6379 = vmatmul.mubr.msk.bf16.gmra.mxu0 %vm1273_vm9, %v1201_v46  ;;  %v6499_v46 = vld [vmem:[#allocation5 + $0x50] sm:$0xff]  }
 0x12e   : > { %v1121_v9 = vpop.permute.xlu0 %1120  ;;  %v1090_v10 = vpop.permute.xlu1 %1089 }
 0x12f   : > { %v1203_v29 = vsel %vm1185_vm8, %v1163_v13, %v1121_v9  ;;  %v1166_v28 = vsel %vm1136_vm7, %v7701_v38, %v1090_v10 }
 0x130   : > { %6382 = vmatprep.mubr.msk.bf16.mxu0 %vm1273_vm9, %v1203_v29 }
 0x136   : > { %v1123_v19 = vpop.permute.xlu1 %1122  ;;  %v1092_v16 = vpop.permute.xlu0 %1091 }
 0x137   : > { %v1205_v18 = vsel %vm1185_vm8, %v1166_v28, %v1123_v19  ;;  %v1169_v14 = vsel %vm1136_vm7, %v7736_v24, %v1092_v16 }
 0x138   : > { %6383 = vmatmul.mubr.msk.bf16.gmra.mxu0 %vm1273_vm9, %v1205_v18  ;;  %v6500_v18 = vld [vmem:[#allocation5 + $0x48] sm:$0xff]  }
 0x13d   : > { %v1125_v15 = vpop.permute.xlu0 %1124  ;;  %v1094_v51 = vpop.permute.xlu1 %1093 }
 0x13e   : > { %v1207_v22 = vsel %vm1185_vm8, %v1169_v14, %v1125_v15  ;;  %v1172_v20 = vsel %vm1136_vm7, %v7775_v60, %v1094_v51  ;;  %v6501_v51 = vld [vmem:[#allocation5 + $0x40] sm:$0xff]  }
 0x13f   : > { %6386 = vmatprep.mubr.msk.bf16.mxu0 %vm1273_vm9, %v1207_v22 }
 0x144   : > { %v1127_v21 = vpop.permute.xlu1 %1126  ;;  %v1096_v26 = vpop.permute.xlu0 %1095 }
 0x145   : > { %v1209_v38 = vsel %vm1185_vm8, %v1172_v20, %v1127_v21  ;;  %v1175_v34 = vsel %vm1136_vm7, %v7809_v3, %v1096_v26 }
 0x146   : > { %6387 = vmatmul.mubr.msk.bf16.gmra.mxu0 %vm1273_vm9, %v1209_v38 }
 0x14b   : > { %v1129_v23 = vpop.permute.xlu0 %1128  ;;  %v1098_v30 = vpop.permute.xlu1 %1097 }
 0x14c   : > { %v1211_v24 = vsel %vm1185_vm8, %v1175_v34, %v1129_v23  ;;  %v1178_v32 = vsel %vm1136_vm7, %v7844_v43, %v1098_v30 }
 0x14d   : > { %6390 = vmatprep.mubr.msk.bf16.mxu0 %vm1273_vm9, %v1211_v24 }
 0x153   : > { %v1131_v33 = vpop.permute.xlu1 %1130  ;;  %v1100_v12 = vpop.permute.xlu0 %1099 }
 0x154   : > { %v1213_v60 = vsel %vm1185_vm8, %v1178_v32, %v1131_v33  ;;  %v1181_v37 = vsel %vm1136_vm7, %v7879_v36, %v1100_v12  ;;  %v6491_v36 = vld [vmem:[#allocation5 + $0x30] sm:$0xff]  }
 0x155   : > { %6391 = vmatmul.mubr.msk.bf16.gmra.mxu0 %vm1273_vm9, %v1213_v60  ;;  %1774 = vmatpush1.bf16.msra.mxu1 %v6491_v36 }
 0x156   : > { %1775 = vmatprep.subr.bf16.mxu1 %v7020_v42 }
 0x159   : > { %1776 = vmatpush1.bf16.msra.mxu1 %v6492_v45 }
 0x15a   : > { %v1102_v63 = vpop.permute.xlu1 %1101  ;;  %v1133_v3 = vpop.permute.xlu0 %1132  ;;  %1777 = vmatprep.subr.bf16.mxu1 %v7020_v42 }
 0x15b   : > { %v1215_v39 = vsel %vm1185_vm8, %v1181_v37, %v1133_v3  ;;  %v1184_v40 = vsel %vm1136_vm7, %v7918_v17, %v1102_v63  ;;  %v6493_v17 = vld [vmem:[#allocation5 + $0x20] sm:$0xff]  }
 0x15c   : > { %6394 = vmatprep.mubr.msk.bf16.mxu0 %vm1273_vm9, %v1215_v39 }
 0x15d   : > { %1778 = vmatpush1.bf16.msra.mxu1 %v6493_v17 }
 0x15e   : > { %v1135_v41 = vpop.permute.xlu1 %1134  ;;  %1779 = vmatprep.subr.bf16.mxu1 %v7020_v42 }
 0x15f   : > { %v1217_v43 = vsel %vm1185_vm8, %v1184_v40, %v1135_v41 }
 0x160   : > { %6395 = vmatmul.mubr.msk.bf16.gmra.mxu0 %vm1273_vm9, %v1217_v43 }
 0x161   : > { %1780 = vmatpush1.bf16.msra.mxu1 %v6494_v47 }
 0x162   : > { %1781 = vmatprep.subr.bf16.mxu1 %v7020_v42 }
 0x165   : > { %1782 = vmatpush1.bf16.msra.mxu1 %v6495_v50 }
 0x166   : > { %1783 = vmatprep.subr.bf16.mxu1 %v7020_v42 }
 0x169   : > { %1784 = vmatpush1.bf16.msra.mxu1 %v6496_v31 }
 0x16a   : > { %1785 = vmatprep.subr.bf16.mxu1 %v7020_v42 }
 0x16d   : > { %1786 = vmatpush1.bf16.msra.mxu1 %v6497_v58 }
 0x16e   : > { %1795 = vmatprep.subr.bf16.mxu1 %v7020_v42 }
 0x171   : > { %1796 = vmatpush2.bf16.msra.mxu1 %v6498_v53 }
 0x172   : > { %1797 = vmatprep.subr.bf16.mxu1 %v7020_v42 }
 0x175   : > { %1798 = vmatpush2.bf16.msra.mxu1 %v6499_v46 }
 0x176   : > { %1799 = vmatprep.subr.bf16.mxu1 %v7020_v42 }
 0x179   : > { %1800 = vmatpush2.bf16.msra.mxu1 %v6500_v18 }
 0x17a   : > { %1801 = vmatprep.subr.bf16.mxu1 %v7020_v42 }
 0x17d   : > { %1802 = vmatpush2.bf16.msra.mxu1 %v6501_v51 }
 0x1bd   : > { %v6368_v48 = vpop.f32.mrf.mxu0 }
 0x1be   : > { %v1349_v52 = vadd.f32 %v6368_v48, %v8019_v49 }
 0x1bf   : > { %v1340_v1 = vpop.f32.mrf.mxu0 }
 0x1c0   : > { %v1341_v6 = vadd.f32 %v8019_v49, %v1340_v1  ;;  %v1469_v55 = vmax.f32 %v1349_v52, 0.0 }
 0x1c1   : > { %v6369_v5 = vpop.f32.mrf.mxu0 }
 0x1c2   : > { %v1352_v8 = vadd.f32 %v6369_v5, %v8019_v49  ;;  %v1467_v57 = vmax.f32 %v1341_v6, 0.0 }
 0x1c3   : > { %v1343_v7 = vpop.f32.mrf.mxu0 }
 0x1c4   : > { %v1470_v44 = vmax.f32 %v1352_v8, 0.0  ;;  %v1344_v56 = vadd.f32 %v8019_v49, %v1343_v7 }
 0x1c6   : > { %v8027_v2 = vpack.c.bf16 %v1470_v44, %v1469_v55  ;;  %v1468_v27 = vmax.f32 %v1344_v56, 0.0 }
 0x1c8   : > { %1541 = vrot.lane.b32.xlu1 %v8027_v2, %s7019_s10  ;;  %5651 = vmatprep.mubr.msk.bf16.mxu1 %vm1185_vm8, %v8027_v2  ;;  %v8033_v59 = vpack.c.bf16 %v1468_v27, %v1467_v57 }
 0x1ca   : > { %1539 = vrot.lane.b32.xlu0 %v8033_v59, %s7019_s10 }
 0x1cc   : > { %v6372_v62 = vpop.f32.mrf.mxu0 }
 0x1cd   : > { %v1365_v54 = vadd.f32 %v6372_v62, %v8019_v49 }
 0x1ce   : > { %v1356_v61 = vpop.f32.mrf.mxu0 }
 0x1cf   : > { %v1357_v0 = vadd.f32 %v8019_v49, %v1356_v61  ;;  %v1473_v13 = vmax.f32 %v1365_v54, 0.0 }
 0x1d0   : > { %v6373_v11 = vpop.f32.mrf.mxu0 }
 0x1d1   : > { %v1368_v9 = vadd.f32 %v6373_v11, %v8019_v49  ;;  %v1471_v10 = vmax.f32 %v1357_v0, 0.0 }
 0x1d2   : > { %v1359_v29 = vpop.f32.mrf.mxu0 }
 0x1d3   : > { %v1474_v28 = vmax.f32 %v1368_v9, 0.0  ;;  %v1360_v19 = vadd.f32 %v8019_v49, %v1359_v29 }
 0x1d5   : > { %v8045_v16 = vpack.c.bf16 %v1474_v28, %v1473_v13  ;;  %v1472_v14 = vmax.f32 %v1360_v19, 0.0 }
 0x1d7   : > { %1545 = vrot.lane.b32.xlu1 %v8045_v16, %s7019_s10  ;;  %v8049_v15 = vpack.c.bf16 %v1472_v14, %v1471_v10 }
 0x1d9   : > { %1543 = vrot.lane.b32.xlu0 %v8049_v15, %s7019_s10 }
 0x1db   : > { %v6376_v22 = vpop.f32.mrf.mxu0 }
 0x1dc   : > { %v1381_v20 = vadd.f32 %v6376_v22, %v8019_v49 }
 0x1dd   : > { %v1372_v21 = vpop.f32.mrf.mxu0 }
 0x1de   : > { %v1373_v38 = vadd.f32 %v8019_v49, %v1372_v21  ;;  %v1477_v34 = vmax.f32 %v1381_v20, 0.0 }
 0x1df   : > { %v6377_v26 = vpop.f32.mrf.mxu0 }
 0x1e0   : > { %v1384_v23 = vadd.f32 %v6377_v26, %v8019_v49  ;;  %v1475_v30 = vmax.f32 %v1373_v38, 0.0 }
 0x1e1   : > { %v1375_v24 = vpop.f32.mrf.mxu0 }
 0x1e2   : > { %v1478_v32 = vmax.f32 %v1384_v23, 0.0  ;;  %v1376_v33 = vadd.f32 %v8019_v49, %v1375_v24 }
 0x1e4   : > { %v8058_v60 = vpack.c.bf16 %v1478_v32, %v1477_v34  ;;  %v1476_v12 = vmax.f32 %v1376_v33, 0.0 }
 0x1e6   : > { %1549 = vrot.lane.b32.xlu1 %v8058_v60, %s7019_s10  ;;  %v8062_v37 = vpack.c.bf16 %v1476_v12, %v1475_v30 }
 0x1e8   : > { %1547 = vrot.lane.b32.xlu0 %v8062_v37, %s7019_s10 }
 0x1e9   : > { %v6380_v63 = vpop.f32.mrf.mxu0 }
 0x1ea   : > { %v1397_v3 = vadd.f32 %v6380_v63, %v8019_v49 }
 0x1eb   : > { %v1388_v39 = vpop.f32.mrf.mxu0 }
 0x1ec   : > { %v1389_v40 = vadd.f32 %v8019_v49, %v1388_v39  ;;  %v1481_v43 = vmax.f32 %v1397_v3, 0.0  ;;  %v6504_v3 = vld [vmem:[#allocation7 + $0x174] ss:$8 sps:$4 sm:$0xff]  }
 0x1ed   : > { %v6381_v41 = vpop.f32.mrf.mxu0  ;;  %2481 = vmatprep.subr.bf16.mxu1 %v6504_v3  ;;  %v6535_v3 = vld [vmem:[#allocation7 + $0x120] ss:$8 sps:$4 sm:$0xff]  }
 0x1ee   : > { %v1400_v35 = vadd.f32 %v6381_v41, %v8019_v49  ;;  %v1479_v45 = vmax.f32 %v1389_v40, 0.0 }
 0x1ef   : > { %v1391_v36 = vpop.f32.mrf.mxu0 }
 0x1f0   : > { %v1482_v17 = vmax.f32 %v1400_v35, 0.0  ;;  %v1392_v47 = vadd.f32 %v8019_v49, %v1391_v36 }
 0x1f2   : > { %v8070_v48 = vpack.c.bf16 %v1482_v17, %v1481_v43  ;;  %v1480_v1 = vmax.f32 %v1392_v47, 0.0 }
 0x1f4   : > { %1553 = vrot.lane.b32.xlu1 %v8070_v48, %s7019_s10  ;;  %v8074_v50 = vpack.c.bf16 %v1480_v1, %v1479_v45 }
 0x1f6   : > { %1551 = vrot.lane.b32.xlu0 %v8074_v50, %s7019_s10 }
 0x1f8   : > { %v6384_v52 = vpop.f32.mrf.mxu0 }
 0x1f9   : > { %v1413_v5 = vadd.f32 %v6384_v52, %v8019_v49 }
 0x1fa   : > { %v1404_v6 = vpop.f32.mrf.mxu0 }
 0x1fb   : > { %v1405_v8 = vadd.f32 %v8019_v49, %v1404_v6  ;;  %v1485_v31 = vmax.f32 %v1413_v5, 0.0 }
 0x1fc   : > { %v6385_v7 = vpop.f32.mrf.mxu0 }
 0x1fd   : > { %v1416_v55 = vadd.f32 %v6385_v7, %v8019_v49  ;;  %v1483_v56 = vmax.f32 %v1405_v8, 0.0 }
 0x1fe   : > { %v1407_v44 = vpop.f32.mrf.mxu0 }
 0x1ff   : > { %v1486_v57 = vmax.f32 %v1416_v55, 0.0  ;;  %v1408_v27 = vadd.f32 %v8019_v49, %v1407_v44  ;;  %v6514_v44 = vld [vmem:[#allocation7 + $0x70] ss:$8 sps:$4 sm:$0xff]  }
 0x201   : > { %v8082_v58 = vpack.c.bf16 %v1486_v57, %v1485_v31  ;;  %v1484_v53 = vmax.f32 %v1408_v27, 0.0  ;;  %v1515_v31 = vld [vmem:[%s8612_s6] sm:$0x1]  ;;  %v6519_v57 = vld [vmem:[#allocation7 + $0x64] ss:$8 sps:$4 sm:$0xff]  }
 0x202   : > { %v1517_v55 = vpack.i.b16 %v1515_v31, %v1515_v31  ;;  %v6517_v27 = vld [vmem:[#allocation7 + $0x60] ss:$8 sps:$4 sm:$0xff]   ;;  %v6558_v31 = vld [vmem:[#allocation7 + $0xc4] ss:$8 sps:$4 sm:$0xff]  }
 0x203   : > { %1557 = vrot.lane.b32.xlu1 %v8082_v58, %s7019_s10  ;;  %v8086_v62 = vpack.c.bf16 %v1484_v53, %v1483_v56  ;;  %v6516_v56 = vld [vmem:[#allocation7 + $0x74] ss:$8 sps:$4 sm:$0xff]   ;;  %v6502_v53 = vld [vmem:[#allocation7 + $0x170] ss:$8 sps:$4 sm:$0xff]  }
 0x204   : > { %2288 = vmatprep.subr.bf16.mxu0 %v6516_v56  ;;  %v6561_v56 = vld [vmem:[#allocation7 + $0xb4] ss:$8 sps:$4 sm:$0xff]  }
 0x205   : > { %1555 = vrot.lane.b32.xlu0 %v8086_v62, %s7019_s10  ;;  %2289 = vmatpush1.bf16.msra.mxu0 %v6514_v44  ;;  %v6556_v44 = vld [vmem:[#allocation7 + $0xc0] ss:$8 sps:$4 sm:$0xff]  }
 0x206   : > { %v6388_v54 = vpop.f32.mrf.mxu0  ;;  %2290 = vmatprep.subr.bf16.mxu0 %v6519_v57 }
 0x207   : > { %v1429_v61 = vadd.f32 %v6388_v54, %v8019_v49 }
 0x208   : > { %v1420_v0 = vpop.f32.mrf.mxu0 }
 0x209   : > { %v1421_v46 = vadd.f32 %v8019_v49, %v1420_v0  ;;  %v1489_v13 = vmax.f32 %v1429_v61, 0.0  ;;  %v6507_v61 = vld [vmem:[#allocation7 + $0x164] ss:$8 sps:$4 sm:$0xff]   ;;  %v6525_v0 = vld [vmem:[#allocation7 + $0x54] ss:$8 sps:$4 sm:$0xff]   ;;  %2291 = vmatpush1.bf16.msra.mxu0 %v6517_v27 }
 0x20a   : > { %v6389_v11 = vpop.f32.mrf.mxu0  ;;  %2292 = vmatprep.subr.bf16.mxu0 %v6525_v0  ;;  %v6559_v27 = vld [vmem:[#allocation7 + $0xb0] ss:$8 sps:$4 sm:$0xff]  }
 0x20b   : > { %v1432_v9 = vadd.f32 %v6389_v11, %v8019_v49  ;;  %v1487_v10 = vmax.f32 %v1421_v46, 0.0  ;;  %v6523_v11 = vld [vmem:[#allocation7 + $0x50] ss:$8 sps:$4 sm:$0xff]  }
 0x20c   : > { %v1423_v29 = vpop.f32.mrf.mxu0 }
 0x20d   : > { %v1490_v28 = vmax.f32 %v1432_v9, 0.0  ;;  %v1424_v19 = vadd.f32 %v8019_v49, %v1423_v29  ;;  %v6528_v9 = vld [vmem:[#allocation7 + $0x44] ss:$8 sps:$4 sm:$0xff]   ;;  %v6510_v29 = vld [vmem:[#allocation7 + $0x154] ss:$8 sps:$4 sm:$0xff]   ;;  %2293 = vmatpush1.bf16.msra.mxu0 %v6523_v11 }
 0x20e   : > { %2294 = vmatprep.subr.bf16.mxu0 %v6528_v9  ;;  %v6565_v11 = vld [vmem:[#allocation7 + $0x100] ss:$8 sps:$4 sm:$0xff]   ;;  %v6567_v9 = vld [vmem:[#allocation7 + $0x104] ss:$8 sps:$4 sm:$0xff]  }
 0x20f   : > { %v8094_v18 = vpack.c.bf16 %v1490_v28, %v1489_v13  ;;  %v1488_v14 = vmax.f32 %v1424_v19, 0.0  ;;  %v6505_v13 = vld [vmem:[#allocation7 + $0x160] ss:$8 sps:$4 sm:$0xff]   ;;  %v6508_v19 = vld [vmem:[#allocation7 + $0x150] ss:$8 sps:$4 sm:$0xff]  }
 0x210   : > { %v6526_v28 = vld [vmem:[#allocation7 + $0x40] ss:$8 sps:$4 sm:$0xff]  }
 0x211   : > { %v8096_v51 = vpack.c.bf16 %v1488_v14, %v1487_v10  ;;  %1561 = vrot.lane.b32.xlu1 %v8094_v18, %s7019_s10  ;;  %v6513_v14 = vld [vmem:[#allocation7 + $0x144] ss:$8 sps:$4 sm:$0xff]   ;;  %2295 = vmatpush1.bf16.msra.mxu0 %v6526_v28 }
 0x213   : > { %1559 = vrot.lane.b32.xlu0 %v8096_v51, %s7019_s10 }
 0x215   : > { %v6392_v22 = vpop.f32.mrf.mxu0 }
 0x216   : > { %v1445_v20 = vadd.f32 %v6392_v22, %v8019_v49  ;;  %v6531_v22 = vld [vmem:[#allocation7 + $0x34] ss:$8 sps:$4 sm:$0xff]  }
 0x217   : > { %v1436_v21 = vpop.f32.mrf.mxu0  ;;  %2296 = vmatprep.subr.bf16.mxu0 %v6531_v22 }
 0x218   : > { %v1437_v38 = vadd.f32 %v8019_v49, %v1436_v21  ;;  %v1493_v34 = vmax.f32 %v1445_v20, 0.0  ;;  %v6529_v21 = vld [vmem:[#allocation7 + $0x30] ss:$8 sps:$4 sm:$0xff]  }
 0x219   : > { %v6393_v26 = vpop.f32.mrf.mxu0  ;;  %2297 = vmatpush1.bf16.msra.mxu0 %v6529_v21 }
 0x21a   : > { %v1448_v23 = vadd.f32 %v6393_v26, %v8019_v49  ;;  %v1491_v30 = vmax.f32 %v1437_v38, 0.0  ;;  %v6511_v38 = vld [vmem:[#allocation7 + $0x140] ss:$8 sps:$4 sm:$0xff]   ;;  %v6534_v26 = vld [vmem:[#allocation7 + $0x24] ss:$8 sps:$4 sm:$0xff]  }
 0x21b   : > { %v1439_v24 = vpop.f32.mrf.mxu0  ;;  %2298 = vmatprep.subr.bf16.mxu0 %v6534_v26 }
 0x21c   : > { %v1494_v32 = vmax.f32 %v1448_v23, 0.0  ;;  %v1440_v33 = vadd.f32 %v8019_v49, %v1439_v24  ;;  %v6532_v23 = vld [vmem:[#allocation7 + $0x20] ss:$8 sps:$4 sm:$0xff]  }
 0x21d   : > { %2299 = vmatpush1.bf16.msra.mxu0 %v6532_v23 }
 0x21e   : > { %v8106_v12 = vpack.c.bf16 %v1494_v32, %v1493_v34  ;;  %v1492_v63 = vmax.f32 %v1440_v33, 0.0  ;;  %v6522_v34 = vld [vmem:[#allocation7 + $0x134] ss:$8 sps:$4 sm:$0xff]  }
 0x21f   : > { %v6540_v32 = vld [vmem:[#allocation7 + $0x14] ss:$8 sps:$4 sm:$0xff]  }
 0x220   : > { %v8108_v39 = vpack.c.bf16 %v1492_v63, %v1491_v30  ;;  %v6396_v40 = vpop.f32.mrf.mxu0  ;;  %1565 = vrot.lane.b32.xlu1 %v8106_v12, %s7019_s10  ;;  %v6520_v30 = vld [vmem:[#allocation7 + $0x130] ss:$8 sps:$4 sm:$0xff]   ;;  %2300 = vmatprep.subr.bf16.mxu0 %v6540_v32 }
 0x221   : > { %v1461_v41 = vadd.f32 %v6396_v40, %v8019_v49  ;;  %v6538_v63 = vld [vmem:[#allocation7 + $0x10] ss:$8 sps:$4 sm:$0xff]   ;;  %v6543_v40 = vld [vmem:[#allocation7 + $0x4] ss:$8 sps:$4 sm:$0xff]  }
 0x222   : > { %v1452_v43 = vpop.f32.mrf.mxu0  ;;  %1563 = vrot.lane.b32.xlu0 %v8108_v39, %s7019_s10  ;;  %2301 = vmatpush1.bf16.msra.mxu0 %v6538_v63 }
 0x223   : > { %v1453_v35 = vadd.f32 %v8019_v49, %v1452_v43  ;;  %v1497_v45 = vmax.f32 %v1461_v41, 0.0  ;;  %v6552_v41 = vld [vmem:[#allocation7 + $0x114] ss:$8 sps:$4 sm:$0xff]   ;;  %2302 = vmatprep.subr.bf16.mxu0 %v6543_v40 }
 0x224   : > { %v6397_v36 = vpop.f32.mrf.mxu0 }
 0x225   : > { %v1464_v17 = vadd.f32 %v6397_v36, %v8019_v49  ;;  %v1495_v1 = vmax.f32 %v1453_v35, 0.0  ;;  %v6541_v35 = vld [vmem:[#allocation7] ss:$8 sps:$4 sm:$0xff]   ;;  %v6546_v36 = vld [vmem:[#allocation7 + $0xf4] ss:$8 sps:$4 sm:$0xff]  }
 0x226   : > { %v1455_v47 = vpop.f32.mrf.mxu0  ;;  %2303 = vmatpush1.bf16.msra.mxu0 %v6541_v35 }
 0x227   : > { %v1498_v52 = vmax.f32 %v1464_v17, 0.0  ;;  %v1456_v5 = vadd.f32 %v8019_v49, %v1455_v47  ;;  %v8130_v49 = vrot.slane %v1517_v55, %v7936_v25  ;;  %v6544_v17 = vld [vmem:[#allocation7 + $0xf0] ss:$8 sps:$4 sm:$0xff]   ;;  %2304 = vmatprep.subr.bf16.mxu0 %v6546_v36  ;;  %v6549_v47 = vld [vmem:[#allocation7 + $0xe4] ss:$8 sps:$4 sm:$0xff]  }
 0x228   : > { %v6576_v36 = vld [vmem:[#allocation8 + $0x70] sm:$0xff]  }
 0x229   : > { %v8118_v6 = vpack.c.bf16 %v1498_v52, %v1497_v45  ;;  %v1496_v8 = vmax.f32 %v1456_v5, 0.0  ;;  %v6550_v45 = vld [vmem:[#allocation7 + $0x110] ss:$8 sps:$4 sm:$0xff]   ;;  %v6547_v52 = vld [vmem:[#allocation7 + $0xe0] ss:$8 sps:$4 sm:$0xff]  }
 0x22a   : > { %2305 = vmatpush2.bf16.msra.mxu0 %v6544_v17  ;;  %v6555_v5 = vld [vmem:[#allocation7 + $0xd4] ss:$8 sps:$4 sm:$0xff]  }
 0x22b   : > { %v8120_v7 = vpack.c.bf16 %v1496_v8, %v1495_v1  ;;  %1569 = vrot.lane.b32.xlu1 %v8118_v6, %s7019_s10  ;;  %2306 = vmatprep.subr.bf16.mxu0 %v6549_v47  ;;  %v6584_v17 = vld [vmem:[#allocation8 + $0x1f8] sm:$0xff]  }
 0x22d   : > { %1567 = vrot.lane.b32.xlu0 %v8120_v7, %s7019_s10  ;;  %s6940_s10 = sshll.u32 %s7021_s25, 4  ;;  %s6941_s10 = int_to_ptr.vmem [resolvable:$false] %s6940_s10 }
 0x22e   : > { %2307 = vmatpush2.bf16.msra.mxu0 %v6547_v52  ;;  %s6942_s28 = scalar_lea.vmem %s6941_s10, 512  ;;  %p6943_p5 = scmp.lt.s32.totalorder %s8558_s18, %s6941_s10 }
 0x22f   : > { %2308 = vmatprep.subr.bf16.mxu0 %v6555_v5  ;;  %v6578_v5 = vld [vmem:[#allocation8 + $0x68] sm:$0xff]   ;;  %p6944_p10 = scmp.lt.s32.totalorder %s6942_s28, %s6936_s7 }
 0x231   : > { %p6945_p2 = por %p6944_p10, %p6943_p5 }
 0x233   : > { %p6946_p9 = pnand %p6945_p2, %p6939_p0 }
 0x23a   : > { %v1542_v10 = vpop.permute.xlu1 %1541 }
 0x23b   : > { %v1577_v20 = vsel %vm1185_vm8, %v8033_v59, %v1542_v10  ;;  %v6537_v59 = vld [vmem:[#allocation7 + $0x124] ss:$8 sps:$4 sm:$0xff]  }
 0x23c   : > { %v1540_v54 = vpop.permute.xlu0 %1539  ;;  %v6573_v10 = vld [vmem:[#allocation7 + $0x84] ss:$8 sps:$4 sm:$0xff]  }
 0x23d   : > { %v1573_v46 = vsel %vm1185_vm8, %v8130_v49, %v1540_v54 }
 0x23e   : > { %1804 = vmatmul.mubr.bf16.vlgmr.msra.gmra.mxu1 %v1573_v46  ;;  %v6564_v46 = vld [vmem:[#allocation7 + $0xa4] ss:$8 sps:$4 sm:$0xff]  }
 0x23f   : > { %5652 = vmatprep.mubr.msk.bf16.mxu1 %vm1185_vm8, %v8049_v15  ;;  %2482 = vmatpush1.bf16.msra.mxu1 %v6502_v53 }
 0x240   : > { %2483 = vmatprep.subr.bf16.mxu1 %v6507_v61 }
 0x243   : > { %2484 = vmatpush1.bf16.msra.mxu1 %v6505_v13 }
 0x244   : > { %2485 = vmatprep.subr.bf16.mxu1 %v6510_v29  ;;  %v6570_v29 = vld [vmem:[#allocation7 + $0x94] ss:$8 sps:$4 sm:$0xff]  }
 0x246   : > { %1812 = vmatmul.mubr.bf16.gmra.mxu1 %v1577_v20 }
 0x247   : > { %5653 = vmatprep.mubr.msk.bf16.mxu1 %vm1185_vm8, %v8045_v16  ;;  %2486 = vmatpush1.bf16.msra.mxu1 %v6508_v19  ;;  %v6571_v19 = vld [vmem:[#allocation7 + $0x80] ss:$8 sps:$4 sm:$0xff]  }
 0x248   : > { %2487 = vmatprep.subr.bf16.mxu1 %v6513_v14 }
 0x249   : > { %v1546_v43 = vpop.permute.xlu1 %1545 }
 0x24b   : > { %v1544_v24 = vpop.permute.xlu0 %1543  ;;  %2488 = vmatpush1.bf16.msra.mxu1 %v6511_v38 }
 0x24c   : > { %2489 = vmatprep.subr.bf16.mxu1 %v6522_v34  ;;  %v1581_v33 = vsel %vm1185_vm8, %v8027_v2, %v1544_v24  ;;  %v1585_v2 = vsel %vm1185_vm8, %v8049_v15, %v1546_v43  ;;  %v6553_v15 = vld [vmem:[#allocation7 + $0xd0] ss:$8 sps:$4 sm:$0xff]  }
 0x24d   : > { %2309 = vmatpush2.bf16.msra.mxu0 %v6553_v15  ;;  %v6575_v43 = vld [vmem:[#allocation8 + $0x38] sm:$0xff]  }
 0x24e   : > { %1820 = vmatmul.mubr.bf16.gmra.mxu1 %v1581_v33  ;;  %2310 = vmatprep.subr.bf16.mxu0 %v6558_v31 }
 0x24f   : > { %5654 = vmatprep.mubr.msk.bf16.mxu1 %vm1185_vm8, %v8062_v37  ;;  %2490 = vmatpush1.bf16.msra.mxu1 %v6520_v30 }
 0x250   : > { %2491 = vmatprep.subr.bf16.mxu1 %v6537_v59 }
 0x251   : > { %2311 = vmatpush2.bf16.msra.mxu0 %v6556_v44  ;;  %v6579_v44 = vld [vmem:[#allocation8 + $0x28] sm:$0xff]  }
 0x252   : > { %2312 = vmatprep.subr.bf16.mxu0 %v6561_v56  ;;  %v6585_v56 = vld [vmem:[#allocation8 + $0x1b8] sm:$0xff]  }
 0x253   : > { %2492 = vmatpush1.bf16.msra.mxu1 %v6535_v3 }
 0x254   : > { %2493 = vmatprep.subr.bf16.mxu1 %v6552_v41 }
 0x255   : > { %2313 = vmatpush2.bf16.msra.mxu0 %v6559_v27  ;;  %v6580_v27 = vld [vmem:[#allocation8 + $0x60] sm:$0xff]  }
 0x256   : > { %1828 = vmatmul.mubr.bf16.gmra.mxu1 %v1585_v2  ;;  %2314 = vmatprep.subr.bf16.mxu0 %v6564_v46  ;;  %v6582_v46 = vld [vmem:[#allocation8 + $0x58] sm:$0xff]  }
 0x257   : > { %5655 = vmatprep.mubr.msk.bf16.mxu1 %vm1185_vm8, %v8058_v60  ;;  %2494 = vmatpush1.bf16.msra.mxu1 %v6550_v45 }
 0x258   : > { %v1550_v55 = vpop.permute.xlu1 %1549  ;;  %2495 = vmatprep.subr.bf16.mxu1 %v6567_v9 }
 0x259   : > { %v1593_v57 = vsel %vm1185_vm8, %v8062_v37, %v1550_v55 }
 0x25a   : > { %v1548_v1 = vpop.permute.xlu0 %1547 }
 0x25b   : > { %v1589_v8 = vsel %vm1185_vm8, %v8045_v16, %v1548_v1  ;;  %2496 = vmatpush1.bf16.msra.mxu1 %v6565_v11  ;;  %v6577_v1 = vld [vmem:[#allocation8 + $0x30] sm:$0xff]   ;;  %v6592_v11 = vld [vmem:[#allocation8 + $0x1e8] sm:$0xff]  }
 0x25c   : > { %6068 = vmatprep.subr.bf16.mxu1 %v6584_v17 }
 0x25e   : > { %1836 = vmatmul.mubr.bf16.gmra.mxu1 %v1589_v8 }
 0x25f   : > { %5656 = vmatprep.mubr.msk.bf16.mxu1 %vm1185_vm8, %v8074_v50 }
 0x266   : > { %1844 = vmatmul.mubr.bf16.gmra.mxu1 %v1593_v57  ;;  %v1554_v54 = vpop.permute.xlu1 %1553 }
 0x267   : > { %5657 = vmatprep.mubr.msk.bf16.mxu1 %vm1185_vm8, %v8070_v48  ;;  %v1601_v37 = vsel %vm1185_vm8, %v8074_v50, %v1554_v54 }
 0x268   : > { %v1552_v16 = vpop.permute.xlu0 %1551 }
 0x269   : > { %v1597_v53 = vsel %vm1185_vm8, %v8058_v60, %v1552_v16  ;;  %v6562_v60 = vld [vmem:[#allocation7 + $0xa0] ss:$8 sps:$4 sm:$0xff]   ;;  %v6588_v16 = vld [vmem:[#allocation8 + $0x1f0] sm:$0xff]  }
 0x26a   : > { %2315 = vmatpush2.bf16.msra.mxu0 %v6562_v60 }
 0x26b   : > { %2316 = vmatprep.subr.bf16.mxu0 %v6570_v29  ;;  %v6583_v29 = vld [vmem:[#allocation8 + $0x18] sm:$0xff]  }
 0x26e   : > { %1852 = vmatmul.mubr.bf16.gmra.mxu1 %v1597_v53 }
 0x26f   : > { %5658 = vmatprep.mubr.msk.bf16.mxu1 %vm1185_vm8, %v8086_v62 }
 0x275   : > { %v1558_v13 = vpop.permute.xlu1 %1557 }
 0x276   : > { %1860 = vmatmul.mubr.bf16.gmra.mxu1 %v1601_v37  ;;  %v1609_v50 = vsel %vm1185_vm8, %v8086_v62, %v1558_v13 }
 0x277   : > { %5659 = vmatprep.mubr.msk.bf16.mxu1 %vm1185_vm8, %v8082_v58  ;;  %v1556_v61 = vpop.permute.xlu0 %1555 }
 0x278   : > { %v1605_v0 = vsel %vm1185_vm8, %v8070_v48, %v1556_v61  ;;  %v6568_v48 = vld [vmem:[#allocation7 + $0x90] ss:$8 sps:$4 sm:$0xff]   ;;  %v6581_v61 = vld [vmem:[#allocation8 + $0x20] sm:$0xff]  }
 0x279   : > { %2317 = vmatpush2.bf16.msra.mxu0 %v6568_v48 }
 0x27a   : > { %2318 = vmatprep.subr.bf16.mxu0 %v6573_v10  ;;  %v6593_v10 = vld [vmem:[#allocation8 + $0x1a8] sm:$0xff]  }
 0x27d   : > { %2319 = vmatpush2.bf16.msra.mxu0 %v6571_v19  ;;  %v6586_v19 = vld [vmem:[#allocation8 + $0x50] sm:$0xff]  }
 0x27e   : > { %1868 = vmatmul.mubr.bf16.gmra.mxu1 %v1605_v0  ;;  %v6589_v0 = vld [vmem:[#allocation8 + $0x1b0] sm:$0xff]  }
 0x27f   : > { %5660 = vmatprep.mubr.msk.bf16.mxu1 %vm1185_vm8, %v8096_v51 }
 0x283   : > { %v1562_v62 = vpop.permute.xlu1 %1561 }
 0x284   : > { %v1617_v22 = vsel %vm1185_vm8, %v8096_v51, %v1562_v62 }
 0x285   : > { %v1560_v28 = vpop.permute.xlu0 %1559 }
 0x286   : > { %1876 = vmatmul.mubr.bf16.gmra.mxu1 %v1609_v50  ;;  %v1613_v14 = vsel %vm1185_vm8, %v8082_v58, %v1560_v28 }
 0x287   : > { %5661 = vmatprep.mubr.msk.bf16.mxu1 %vm1185_vm8, %v8094_v18 }
 0x28e   : > { %1884 = vmatmul.mubr.bf16.gmra.mxu1 %v1613_v14 }
 0x28f   : > { %5662 = vmatprep.mubr.msk.bf16.mxu1 %vm1185_vm8, %v8108_v39 }
 0x292   : > { %v1566_v58 = vpop.permute.xlu1 %1565 }
 0x293   : > { %v1625_v38 = vsel %vm1185_vm8, %v8108_v39, %v1566_v58  ;;  %v6574_v39 = vld [vmem:[#allocation8 + $0x78] sm:$0xff]   ;;  %v6590_v58 = vld [vmem:[#allocation8 + $0x48] sm:$0xff]  }
 0x294   : > { %v1564_v20 = vpop.permute.xlu0 %1563  ;;  %6002 = vmatprep.subr.bf16.mxu0 %v6574_v39 }
 0x295   : > { %v1621_v21 = vsel %vm1185_vm8, %v8094_v18, %v1564_v20  ;;  %v6587_v20 = vld [vmem:[#allocation8 + $0x10] sm:$0xff]  }
 0x296   : > { %1892 = vmatmul.mubr.bf16.gmra.mxu1 %v1617_v22 }
 0x297   : > { %5663 = vmatprep.mubr.msk.bf16.mxu1 %vm1185_vm8, %v8106_v12 }
 0x29d   : > { %v1570_v18 = vpop.permute.xlu1 %1569 }
 0x29e   : > { %1900 = vmatmul.mubr.bf16.gmra.mxu1 %v1621_v21  ;;  %v1633_v34 = vsel %vm1185_vm8, %v8120_v7, %v1570_v18 }
 0x29f   : > { %5664 = vmatprep.mubr.msk.bf16.mxu1 %vm1185_vm8, %v8120_v7  ;;  %v1568_v51 = vpop.permute.xlu0 %1567 }
 0x2a0   : > { %v1629_v26 = vsel %vm1185_vm8, %v8106_v12, %v1568_v51  ;;  %v1980_v12 = vld [vmem:[%s8615_s9] sm:$0x1] }
 0x2a1   : > { %v1982_v7 = vpack.i.b16 %v1980_v12, %v1980_v12 }
 0x2a3   : > { %v8206_v40 = vrot.slane %v1982_v7, %v7936_v25 }
 0x2a6   : > { %1908 = vmatmul.mubr.bf16.gmra.mxu1 %v1625_v38 }
 0x2a7   : > { %5665 = vmatprep.mubr.msk.bf16.mxu1 %vm1185_vm8, %v8118_v6  ;;  %v8198_v6 = vld [vmem:[%s8611_s5] ss:$0 sm:$0xff] }
 0x2ae   : > { %1916 = vmatmul.mubr.bf16.gmra.mxu1 %v1629_v26 }
 0x2af   : > { %5666 = vmatprep.mubr.msk.bf16.mxu1 %vm1185_vm8, %v8130_v49 }
 0x2b6   : > { %1924 = vmatmul.mubr.bf16.gmra.mxu1 %v1633_v34  ;;  %v6591_v34 = vld [vmem:[#allocation8 + $0x8] sm:$0xff]  }
 0x2b7   : > { %2513 = vmatprep.mubr.bf16.mxu1 %v7020_v42 }
 0x2fe   : > { %v1805_v23 = vpop.f32.mrf.mxu1 }
 0x2ff   : > { %v1806_v24 = vadd.f32 %v8198_v6, %v1805_v23 }
 0x300   : > { %v1807_v49 = vpop.f32.mrf.mxu1 }
 0x301   : > { %v1932_v33 = vmax.f32 %v1806_v24, 0.0 }
 0x302   : > { %v1808_v30 = vpop.f32.mrf.mxu1 }
 0x303   : > { %v1809_v59 = vadd.f32 %v8198_v6, %v1808_v30 }
 0x304   : > { %v1810_v32 = vpop.f32.mrf.mxu1 }
 0x305   : > { %v1933_v63 = vmax.f32 %v1809_v59, 0.0 }
 0x306   : > { %v1813_v3 = vpop.f32.mrf.mxu1 }
 0x307   : > { %v1964_v41 = vpack.c.bf16 %v1933_v63, %v1932_v33  ;;  %v1814_v45 = vadd.f32 %v8198_v6, %v1813_v3 }
 0x308   : > { %v1815_v35 = vpop.f32.mrf.mxu1 }
 0x309   : > { %2320 = vmatprep.mubr.bf16.mxu0 %v1964_v41  ;;  %v1934_v8 = vmax.f32 %v1814_v45, 0.0 }
 0x30a   : > { %v1816_v2 = vpop.f32.mrf.mxu1  ;;  %2321 = vmatmul.mubr.bf16.vlgmr.msra.gmra.mxu0 %v8206_v40 }
 0x30b   : > { %v1817_v47 = vadd.f32 %v8198_v6, %v1816_v2  ;;  %6003 = vmatpush3.bf16.msra.mxu0 %v6575_v43 }
 0x30c   : > { %v1818_v52 = vpop.f32.mrf.mxu1  ;;  %6004 = vmatprep.subr.bf16.mxu0 %v6576_v36 }
 0x30d   : > { %v1935_v15 = vmax.f32 %v1817_v47, 0.0 }
 0x30e   : > { %v1821_v31 = vpop.f32.mrf.mxu1 }
 0x30f   : > { %v1965_v55 = vpack.c.bf16 %v1935_v15, %v1934_v8  ;;  %6005 = vmatpush3.bf16.msra.mxu0 %v6577_v1  ;;  %v1822_v53 = vadd.f32 %v8198_v6, %v1821_v31 }
 0x310   : > { %v1823_v57 = vpop.f32.mrf.mxu1  ;;  %6006 = vmatprep.subr.bf16.mxu0 %v6578_v5 }
 0x311   : > { %2330 = vmatprep.mubr.bf16.mxu0 %v1965_v55  ;;  %2514 = vmatmul.mubr.bf16.vlgmr.msra.gmra.mxu1 %v1965_v55  ;;  %v1936_v13 = vmax.f32 %v1822_v53, 0.0 }
 0x312   : > { %v1824_v54 = vpop.f32.mrf.mxu1  ;;  %2331 = vmatmul.mubr.bf16.gmra.mxu0 %v1964_v41  ;;  %2523 = vmatprep.mubr.bf16.mxu1 %v7020_v42 }
 0x313   : > { %v1825_v37 = vadd.f32 %v8198_v6, %v1824_v54  ;;  %6007 = vmatpush3.bf16.msra.mxu0 %v6579_v44  ;;  %6069 = vmatpush3.bf16.msra.mxu1 %v6585_v56 }
 0x314   : > { %v1826_v60 = vpop.f32.mrf.mxu1  ;;  %6008 = vmatprep.subr.bf16.mxu0 %v6580_v27  ;;  %6070 = vmatprep.subr.bf16.mxu1 %v6588_v16 }
 0x315   : > { %v1937_v9 = vmax.f32 %v1825_v37, 0.0 }
 0x316   : > { %v1829_v50 = vpop.f32.mrf.mxu1 }
 0x317   : > { %v1966_v48 = vpack.c.bf16 %v1937_v9, %v1936_v13  ;;  %6009 = vmatpush3.bf16.msra.mxu0 %v6581_v61  ;;  %6071 = vmatpush3.bf16.msra.mxu1 %v6589_v0  ;;  %v1830_v14 = vadd.f32 %v8198_v6, %v1829_v50 }
 0x318   : > { %v1831_v28 = vpop.f32.mrf.mxu1  ;;  %6010 = vmatprep.subr.bf16.mxu0 %v6582_v46  ;;  %6072 = vmatprep.subr.bf16.mxu1 %v6592_v11 }
 0x319   : > { %2340 = vmatprep.mubr.bf16.mxu0 %v1966_v48  ;;  %2524 = vmatmul.mubr.bf16.gmra.mxu1 %v1966_v48  ;;  %v1938_v38 = vmax.f32 %v1830_v14, 0.0 }
 0x31a   : > { %v1832_v62 = vpop.f32.mrf.mxu1  ;;  %2341 = vmatmul.mubr.bf16.gmra.mxu0 %v1965_v55  ;;  %2533 = vmatprep.mubr.bf16.mxu1 %v7020_v42 }
 0x31b   : > { %v1833_v22 = vadd.f32 %v8198_v6, %v1832_v62  ;;  %6011 = vmatpush3.bf16.msra.mxu0 %v6583_v29  ;;  %6073 = vmatpush3.bf16.msra.mxu1 %v6593_v10 }
 0x31c   : > { %v1834_v21 = vpop.f32.mrf.mxu1  ;;  %6012 = vmatprep.subr.bf16.mxu0 %v6586_v19 }
 0x31d   : > { %v1939_v51 = vmax.f32 %v1833_v22, 0.0 }
 0x31e   : > { %v1837_v26 = vpop.f32.mrf.mxu1 }
 0x31f   : > { %v1967_v18 = vpack.c.bf16 %v1939_v51, %v1938_v38  ;;  %6013 = vmatpush3.bf16.msra.mxu0 %v6587_v20  ;;  %v1838_v23 = vadd.f32 %v8198_v6, %v1837_v26  ;;  %v6594_v38 = vld [vmem:[#allocation8 + $0x40] sm:$0xff]  }
 0x320   : > { %v1839_v39 = vpop.f32.mrf.mxu1  ;;  %6014 = vmatprep.subr.bf16.mxu0 %v6590_v58  ;;  %v6595_v26 = vld [vmem:[#allocation8] sm:$0xff]  }
 0x321   : > { %2350 = vmatprep.mubr.bf16.mxu0 %v1967_v18  ;;  %2534 = vmatmul.mubr.bf16.gmra.mxu1 %v1967_v18  ;;  %v1940_v30 = vmax.f32 %v1838_v23, 0.0 }
 0x322   : > { %v1840_v12 = vpop.f32.mrf.mxu1  ;;  %2351 = vmatmul.mubr.bf16.gmra.mxu0 %v1966_v48  ;;  %2543 = vmatprep.mubr.bf16.mxu1 %v7020_v42 }
 0x323   : > { %v1841_v49 = vadd.f32 %v8198_v6, %v1840_v12  ;;  %6015 = vmatpush3.bf16.msra.mxu0 %v6591_v34  ;;  %v6596_v34 = vld [vmem:[#allocation8 + $0x1e0] sm:$0xff]  }
 0x324   : > { %v1842_v24 = vpop.f32.mrf.mxu1  ;;  %6016 = vmatprep.subr.bf16.mxu0 %v6594_v38  ;;  %6074 = vmatprep.subr.bf16.mxu1 %v6596_v34 }
 0x325   : > { %v1941_v7 = vmax.f32 %v1841_v49, 0.0  ;;  %v6597_v49 = vld [vmem:[#allocation8 + $0x1a0] sm:$0xff]  }
 0x326   : > { %v1845_v59 = vpop.f32.mrf.mxu1  ;;  %6075 = vmatpush3.bf16.msra.mxu1 %v6597_v49 }
 0x327   : > { %v1968_v32 = vpack.c.bf16 %v1941_v7, %v1940_v30  ;;  %v1846_v63 = vadd.f32 %v8198_v6, %v1845_v59  ;;  %6017 = vmatpush3.bf16.msra.mxu0 %v6595_v26  ;;  %v6619_v26 = vld [vmem:[#allocation8 + $0x2f8] sm:$0xff]  }
 0x328   : > { %v1847_v33 = vpop.f32.mrf.mxu1 }
 0x329   : > { %2360 = vmatprep.mubr.bf16.mxu0 %v1968_v32  ;;  %2544 = vmatmul.mubr.bf16.gmra.mxu1 %v1968_v32  ;;  %v1942_v35 = vmax.f32 %v1846_v63, 0.0 }
 0x32a   : > { %v1848_v3 = vpop.f32.mrf.mxu1  ;;  %2361 = vmatmul.mubr.bf16.gmra.mxu0 %v1967_v18  ;;  %2553 = vmatprep.mubr.bf16.mxu1 %v7020_v42 }
 0x32b   : > { %v1849_v41 = vadd.f32 %v8198_v6, %v1848_v3 }
 0x32c   : > { %v1850_v43 = vpop.f32.mrf.mxu1 }
 0x32d   : > { %v1943_v36 = vmax.f32 %v1849_v41, 0.0 }
 0x32e   : > { %v1853_v45 = vpop.f32.mrf.mxu1 }
 0x32f   : > { %v1969_v2 = vpack.c.bf16 %v1943_v36, %v1942_v35  ;;  %v1854_v47 = vadd.f32 %v8198_v6, %v1853_v45 }
 0x330   : > { %v1855_v17 = vpop.f32.mrf.mxu1 }
 0x331   : > { %2370 = vmatprep.mubr.bf16.mxu0 %v1969_v2  ;;  %2554 = vmatmul.mubr.bf16.gmra.mxu1 %v1969_v2  ;;  %v1944_v8 = vmax.f32 %v1854_v47, 0.0 }
 0x332   : > { %v1856_v1 = vpop.f32.mrf.mxu1  ;;  %2371 = vmatmul.mubr.bf16.gmra.mxu0 %v1968_v32  ;;  %2563 = vmatprep.mubr.bf16.mxu1 %v7020_v42 }
 0x333   : > { %v1857_v52 = vadd.f32 %v8198_v6, %v1856_v1  ;;  %v6598_v1 = vld [vmem:[#allocation8 + $0xf8] sm:$0xff]  }
 0x334   : > { %v1858_v5 = vpop.f32.mrf.mxu1  ;;  %6024 = vmatprep.subr.bf16.mxu0 %v6598_v1 }
 0x335   : > { %v1945_v15 = vmax.f32 %v1857_v52, 0.0 }
 0x336   : > { %v1861_v31 = vpop.f32.mrf.mxu1 }
 0x337   : > { %v1970_v55 = vpack.c.bf16 %v1945_v15, %v1944_v8  ;;  %v1862_v56 = vadd.f32 %v8198_v6, %v1861_v31  ;;  %v6600_v8 = vld [vmem:[#allocation8 + $0x1d8] sm:$0xff]  }
 0x338   : > { %v1863_v44 = vpop.f32.mrf.mxu1  ;;  %v6601_v15 = vld [vmem:[#allocation8 + $0x198] sm:$0xff]   ;;  %6076 = vmatprep.subr.bf16.mxu1 %v6600_v8 }
 0x339   : > { %2380 = vmatprep.mubr.bf16.mxu0 %v1970_v55  ;;  %2564 = vmatmul.mubr.bf16.gmra.mxu1 %v1970_v55  ;;  %v1946_v53 = vmax.f32 %v1862_v56, 0.0 }
 0x33a   : > { %v1864_v57 = vpop.f32.mrf.mxu1  ;;  %2381 = vmatmul.mubr.bf16.gmra.mxu0 %v1969_v2  ;;  %2573 = vmatprep.mubr.bf16.mxu1 %v7020_v42 }
 0x33b   : > { %v1865_v27 = vadd.f32 %v8198_v6, %v1864_v57  ;;  %6077 = vmatpush3.bf16.msra.mxu1 %v6601_v15 }
 0x33c   : > { %v1866_v16 = vpop.f32.mrf.mxu1 }
 0x33d   : > { %v1947_v54 = vmax.f32 %v1865_v27, 0.0 }
 0x33e   : > { %v1869_v37 = vpop.f32.mrf.mxu1 }
 0x33f   : > { %v1971_v61 = vpack.c.bf16 %v1947_v54, %v1946_v53  ;;  %v1870_v60 = vadd.f32 %v8198_v6, %v1869_v37  ;;  %v6607_v37 = vld [vmem:[#allocation8 + $0x1d0] sm:$0xff]  }
 0x340   : > { %v1871_v0 = vpop.f32.mrf.mxu1  ;;  %6078 = vmatprep.subr.bf16.mxu1 %v6607_v37 }
 0x341   : > { %2390 = vmatprep.mubr.bf16.mxu0 %v1971_v61  ;;  %2574 = vmatmul.mubr.bf16.gmra.mxu1 %v1971_v61  ;;  %v1948_v9 = vmax.f32 %v1870_v60, 0.0 }
 0x342   : > { %v1872_v46 = vpop.f32.mrf.mxu1  ;;  %2391 = vmatmul.mubr.bf16.gmra.mxu0 %v1970_v55  ;;  %2583 = vmatprep.mubr.bf16.mxu1 %v7020_v42 }
 0x343   : > { %v1873_v11 = vadd.f32 %v8198_v6, %v1872_v46  ;;  %v6609_v46 = vld [vmem:[#allocation8 + $0x190] sm:$0xff]  }
 0x344   : > { %v1874_v13 = vpop.f32.mrf.mxu1  ;;  %6079 = vmatpush3.bf16.msra.mxu1 %v6609_v46 }
 0x345   : > { %v1949_v50 = vmax.f32 %v1873_v11, 0.0 }
 0x346   : > { %v1877_v48 = vpop.f32.mrf.mxu1 }
 0x347   : > { %v1972_v29 = vpack.c.bf16 %v1949_v50, %v1948_v9  ;;  %v1878_v28 = vadd.f32 %v8198_v6, %v1877_v48  ;;  %v6611_v48 = vld [vmem:[#allocation8 + $0x1c8] sm:$0xff]  }
 0x348   : > { %v1879_v10 = vpop.f32.mrf.mxu1  ;;  %6080 = vmatprep.subr.bf16.mxu1 %v6611_v48 }
 0x349   : > { %2400 = vmatprep.mubr.bf16.mxu0 %v1972_v29  ;;  %2584 = vmatmul.mubr.bf16.gmra.mxu1 %v1972_v29  ;;  %v1950_v22 = vmax.f32 %v1878_v28, 0.0  ;;  %v6613_v28 = vld [vmem:[#allocation8 + $0x188] sm:$0xff]  }
 0x34a   : > { %v1880_v19 = vpop.f32.mrf.mxu1  ;;  %2401 = vmatmul.mubr.bf16.gmra.mxu0 %v1971_v61  ;;  %2593 = vmatprep.mubr.bf16.mxu1 %v7020_v42 }
 0x34b   : > { %v1881_v14 = vadd.f32 %v8198_v6, %v1880_v19  ;;  %6081 = vmatpush3.bf16.msra.mxu1 %v6613_v28 }
 0x34c   : > { %v1882_v62 = vpop.f32.mrf.mxu1 }
 0x34d   : > { %v1951_v20 = vmax.f32 %v1881_v14, 0.0  ;;  %v6615_v62 = vld [vmem:[#allocation8 + $0x1c0] sm:$0xff]  }
 0x34e   : > { %v1885_v21 = vpop.f32.mrf.mxu1  ;;  %6082 = vmatprep.subr.bf16.mxu1 %v6615_v62 }
 0x34f   : > { %v1973_v58 = vpack.c.bf16 %v1951_v20, %v1950_v22  ;;  %v1886_v18 = vadd.f32 %v8198_v6, %v1885_v21  ;;  %v6617_v21 = vld [vmem:[#allocation8 + $0x180] sm:$0xff]  }
 0x350   : > { %v1887_v51 = vpop.f32.mrf.mxu1  ;;  %6083 = vmatpush3.bf16.msra.mxu1 %v6617_v21 }
 0x351   : > { %2410 = vmatprep.mubr.bf16.mxu0 %v1973_v58  ;;  %2594 = vmatmul.mubr.bf16.gmra.mxu1 %v1973_v58  ;;  %v1952_v24 = vmax.f32 %v1886_v18, 0.0 }
 0x352   : > { %v1888_v39 = vpop.f32.mrf.mxu1  ;;  %2411 = vmatmul.mubr.bf16.gmra.mxu0 %v1972_v29  ;;  %2603 = vmatprep.mubr.bf16.mxu1 %v7020_v42 }
 0x353   : > { %v1889_v23 = vadd.f32 %v8198_v6, %v1888_v39  ;;  %6112 = vmatprep.subr.bf16.mxu1 %v6619_v26 }
 0x354   : > { %v1890_v12 = vpop.f32.mrf.mxu1 }
 0x355   : > { %v1953_v30 = vmax.f32 %v1889_v23, 0.0 }
 0x356   : > { %v1893_v7 = vpop.f32.mrf.mxu1 }
 0x357   : > { %v1974_v59 = vpack.c.bf16 %v1953_v30, %v1952_v24  ;;  %v1894_v33 = vadd.f32 %v8198_v6, %v1893_v7  ;;  %v2036_v24 = vld [vmem:[%s8614_s8] sm:$0x3] }
 0x358   : > { %v1895_v32 = vpop.f32.mrf.mxu1 }
 0x359   : > { %2420 = vmatprep.mubr.bf16.mxu0 %v1974_v59  ;;  %2604 = vmatmul.mubr.bf16.gmra.mxu1 %v1974_v59  ;;  %v1954_v43 = vmax.f32 %v1894_v33, 0.0 }
 0x35a   : > { %v1896_v63 = vpop.f32.mrf.mxu1  ;;  %2421 = vmatmul.mubr.bf16.gmra.mxu0 %v1973_v58  ;;  %2613 = vmatprep.mubr.bf16.mxu1 %v7020_v42 }
 0x35b   : > { %v1897_v3 = vadd.f32 %v8198_v6, %v1896_v63 }
 0x35c   : > { %v1898_v41 = vpop.f32.mrf.mxu1 }
 0x35d   : > { %v1955_v35 = vmax.f32 %v1897_v3, 0.0 }
 0x35e   : > { %v1901_v36 = vpop.f32.mrf.mxu1 }
 0x35f   : > { %v1975_v45 = vpack.c.bf16 %v1955_v35, %v1954_v43  ;;  %v1902_v17 = vadd.f32 %v8198_v6, %v1901_v36 }
 0x360   : > { %v1903_v2 = vpop.f32.mrf.mxu1 }
 0x361   : > { %2430 = vmatprep.mubr.bf16.mxu0 %v1975_v45  ;;  %2614 = vmatmul.mubr.bf16.gmra.mxu1 %v1975_v45  ;;  %v1956_v31 = vmax.f32 %v1902_v17, 0.0 }
 0x362   : > { %v1904_v47 = vpop.f32.mrf.mxu1  ;;  %2431 = vmatmul.mubr.bf16.gmra.mxu0 %v1974_v59  ;;  %2623 = vmatprep.mubr.bf16.mxu1 %v7020_v42  ;;  %v8260_v59 = vrot.slane %v2036_v24, %v7936_v25 }
 0x363   : > { %v1905_v52 = vadd.f32 %v8198_v6, %v1904_v47 }
 0x364   : > { %v1906_v5 = vpop.f32.mrf.mxu1 }
 0x365   : > { %v1957_v55 = vmax.f32 %v1905_v52, 0.0 }
 0x366   : > { %v1909_v44 = vpop.f32.mrf.mxu1 }
 0x367   : > { %v1976_v56 = vpack.c.bf16 %v1957_v55, %v1956_v31  ;;  %v1910_v27 = vadd.f32 %v8198_v6, %v1909_v44 }
 0x368   : > { %v1911_v57 = vpop.f32.mrf.mxu1 }
 0x369   : > { %2440 = vmatprep.mubr.bf16.mxu0 %v1976_v56  ;;  %2624 = vmatmul.mubr.bf16.gmra.mxu1 %v1976_v56  ;;  %v1958_v61 = vmax.f32 %v1910_v27, 0.0 }
 0x36a   : > { %v1912_v16 = vpop.f32.mrf.mxu1  ;;  %2441 = vmatmul.mubr.bf16.gmra.mxu0 %v1975_v45  ;;  %2633 = vmatprep.mubr.bf16.mxu1 %v7020_v42 }
 0x36b   : > { %v1913_v53 = vadd.f32 %v8198_v6, %v1912_v16 }
 0x36c   : > { %v1914_v54 = vpop.f32.mrf.mxu1 }
 0x36d   : > { %v1959_v0 = vmax.f32 %v1913_v53, 0.0  ;;  %v6599_v53 = vld [vmem:[#allocation8 + $0xb8] sm:$0xff]  }
 0x36e   : > { %v1917_v60 = vpop.f32.mrf.mxu1 }
 0x36f   : > { %v1977_v11 = vpack.c.bf16 %v1959_v0, %v1958_v61  ;;  %v1918_v9 = vadd.f32 %v8198_v6, %v1917_v60  ;;  %v6602_v61 = vld [vmem:[#allocation8 + $0xf0] sm:$0xff]  }
 0x370   : > { %v1919_v13 = vpop.f32.mrf.mxu1 }
 0x371   : > { %2450 = vmatprep.mubr.bf16.mxu0 %v1977_v11  ;;  %2634 = vmatmul.mubr.bf16.gmra.mxu1 %v1977_v11  ;;  %v1960_v19 = vmax.f32 %v1918_v9, 0.0 }
 0x372   : > { %v1920_v50 = vpop.f32.mrf.mxu1  ;;  %2451 = vmatmul.mubr.bf16.gmra.mxu0 %v1976_v56  ;;  %2643 = vmatprep.mubr.bf16.mxu1 %v7020_v42 }
 0x373   : > { %v1921_v29 = vadd.f32 %v8198_v6, %v1920_v50  ;;  %v6603_v50 = vld [vmem:[#allocation8 + $0xb0] sm:$0xff]  }
 0x374   : > { %v1922_v10 = vpop.f32.mrf.mxu1 }
 0x375   : > { %v1961_v14 = vmax.f32 %v1921_v29, 0.0  ;;  %v6604_v29 = vld [vmem:[#allocation8 + $0xe8] sm:$0xff]  }
 0x376   : > { %v1925_v22 = vpop.f32.mrf.mxu1 }
 0x377   : > { %v1978_v20 = vpack.c.bf16 %v1961_v14, %v1960_v19  ;;  %v1926_v38 = vadd.f32 %v8198_v6, %v1925_v22 }
 0x378   : > { %v1927_v58 = vpop.f32.mrf.mxu1 }
 0x379   : > { %2460 = vmatprep.mubr.bf16.mxu0 %v1978_v20  ;;  %2644 = vmatmul.mubr.bf16.gmra.mxu1 %v1978_v20  ;;  %v1962_v39 = vmax.f32 %v1926_v38, 0.0  ;;  %v6606_v58 = vld [vmem:[#allocation8 + $0xe0] sm:$0xff]  }
 0x37a   : > { %v1928_v51 = vpop.f32.mrf.mxu1  ;;  %2461 = vmatmul.mubr.bf16.gmra.mxu0 %v1977_v11  ;;  %2653 = vmatprep.mubr.bf16.mxu1 %v7020_v42 }
 0x37b   : > { %v1929_v18 = vadd.f32 %v8198_v6, %v1928_v51  ;;  %v2044_v6 = vsub.s32 1, %v7263_v4 }
 0x37c   : > { %v1930_v34 = vpop.f32.mrf.mxu1 }
 0x37d   : > { %v1963_v23 = vmax.f32 %v1929_v18, 0.0  ;;  %v8262_v32 = vrot.slane %v2036_v24, %v2044_v6  ;;  %v6608_v18 = vld [vmem:[#allocation8 + $0xa0] sm:$0xff]  }
 0x37f   : > { %v1979_v12 = vpack.c.bf16 %v1963_v23, %v1962_v39  ;;  %v6610_v39 = vld [vmem:[#allocation8 + $0xd8] sm:$0xff]  }
 0x381   : > { %2470 = vmatprep.mubr.bf16.mxu0 %v1979_v12  ;;  %2654 = vmatmul.mubr.bf16.gmra.mxu1 %v1979_v12 }
 0x382   : > { %2471 = vmatmul.mubr.bf16.gmra.mxu0 %v1978_v20  ;;  %2663 = vmatprep.mubr.bf16.mxu1 %v7020_v42  ;;  %v6605_v20 = vld [vmem:[#allocation8 + $0xa8] sm:$0xff]  }
 0x389   : > { %2664 = vmatmul.mubr.bf16.gmra.mxu1 %v8206_v40 }
 0x3ca   : > { %v2322_v49 = vpop.f32.mrf.mxu0 }
 0x3cb   : > { %v2323_v42 = vadd.f32 %v2322_v49, %v8260_v59 }
 0x3cc   : > { %v2324_v30 = vpop.f32.mrf.mxu0 }
 0x3cd   : > { %v2325_v41 = vadd.f32 %v2324_v30, %v8262_v32  ;;  %v6612_v30 = vld [vmem:[#allocation8 + $0x98] sm:$0xff]  }
 0x3ce   : > { %v2326_v7 = vpop.f32.mrf.mxu0 }
 0x3cf   : > { %v2327_v43 = vadd.f32 %v2326_v7, %v8260_v59 }
 0x3d0   : > { %v2328_v33 = vpop.f32.mrf.mxu0 }
 0x3d1   : > { %v2515_v63 = vpop.f32.mrf.mxu1  ;;  %v2329_v36 = vadd.f32 %v2328_v33, %v8262_v32 }
 0x3d2   : > { %v8264_v3 = vpop.f32.mrf.mxu0  ;;  %v2516_v17 = vadd.f32 %v2515_v63, %v2323_v42  ;;  %v6614_v63 = vld [vmem:[#allocation8 + $0xd0] sm:$0xff]  }
 0x3d3   : > { %v2517_v40 = vpop.f32.mrf.mxu1 }
 0x3d4   : > { %v2334_v35 = vpop.f32.mrf.mxu0  ;;  %v2518_v45 = vadd.f32 %v2517_v40, %v2325_v41  ;;  %v2674_v44 = vmax.f32 %v2516_v17, 0.0  ;;  %v6616_v17 = vld [vmem:[#allocation8 + $0x90] sm:$0xff]  }
 0x3d5   : > { %v2519_v4 = vpop.f32.mrf.mxu1  ;;  %v2335_v57 = vadd.f32 %v2334_v35, %v8262_v32 }
 0x3d6   : > { %v2520_v25 = vadd.f32 %v2519_v4, %v2327_v43  ;;  %v8270_v2 = vpop.f32.mrf.mxu0  ;;  %v2675_v15 = vmax.f32 %v2518_v45, 0.0 }
 0x3d7   : > { %v2521_v47 = vpop.f32.mrf.mxu1 }
 0x3d8   : > { %v2522_v1 = vadd.f32 %v2521_v47, %v2329_v36  ;;  %v2338_v52 = vpop.f32.mrf.mxu0  ;;  %v2676_v5 = vmax.f32 %v2520_v25, 0.0 }
 0x3d9   : > { %v8272_v8 = vpop.f32.mrf.mxu1  ;;  %v2339_v0 = vadd.f32 %v2338_v52, %v8262_v32  ;;  %v6618_v52 = vld [vmem:[#allocation8 + $0xc8] sm:$0xff]  }
 0x3da   : > { %v2677_v31 = vmax.f32 %v2522_v1, 0.0  ;;  %v8274_v55 = vpop.f32.mrf.mxu0  ;;  %v2738_v54 = vpack.c.bf16 %v2676_v5, %v2674_v44 }
 0x3db   : > { %v2527_v56 = vpop.f32.mrf.mxu1 }
 0x3dc   : > { %v2739_v27 = vpack.c.bf16 %v2677_v31, %v2675_v15  ;;  %v8277_v16 = vpop.f32.mrf.mxu0  ;;  %v2528_v60 = vadd.f32 %v2527_v56, %v2335_v57  ;;  %v2337_v56 = vadd.f32 %v8270_v2, %v8260_v59  ;;  %v6622_v2 = vld [vmem:[#allocation8 + $0xc0] sm:$0xff]  }
 0x3dd   : > { %v8279_v37 = vpop.f32.mrf.mxu1 }
 0x3de   : > { %v8282_v46 = vpop.f32.mrf.mxu0  ;;  %4857 = vmatprep.mubr.bf16.mxu0 %v2739_v27  ;;  %v2679_v10 = vmax.f32 %v2528_v60, 0.0  ;;  %v6620_v60 = vld [vmem:[#allocation8 + $0x88] sm:$0xff]  }
 0x3df   : > { %v2531_v11 = vpop.f32.mrf.mxu1  ;;  %4858 = vmatmul.mubr.bf16.vlgmr.msra.gmra.mxu0 %v2738_v54 }
 0x3e0   : > { %v2532_v13 = vadd.f32 %v2531_v11, %v2339_v0  ;;  %6025 = vmatpush3.bf16.msra.mxu0 %v6599_v53  ;;  %v2348_v9 = vpop.f32.mrf.mxu0  ;;  %v6621_v11 = vld [vmem:[#allocation8 + $0x2b8] sm:$0xff]  }
 0x3e1   : > { %v8284_v48 = vpop.f32.mrf.mxu1  ;;  %6026 = vmatprep.subr.bf16.mxu0 %v6602_v61  ;;  %v2349_v53 = vadd.f32 %v2348_v9, %v8262_v32  ;;  %v2345_v9 = vadd.f32 %v8277_v16, %v8262_v32 }
 0x3e2   : > { %v2681_v28 = vmax.f32 %v2532_v13, 0.0  ;;  %v2352_v19 = vpop.f32.mrf.mxu0  ;;  %v2333_v13 = vadd.f32 %v8264_v3, %v8260_v59 }
 0x3e3   : > { %v8286_v14 = vpop.f32.mrf.mxu1  ;;  %v2353_v7 = vadd.f32 %v2352_v19, %v8260_v59 }
 0x3e4   : > { %v2741_v62 = vpack.c.bf16 %v2681_v28, %v2679_v10  ;;  %6027 = vmatpush3.bf16.msra.mxu0 %v6603_v50  ;;  %v2354_v22 = vpop.f32.mrf.mxu0  ;;  %v2530_v50 = vadd.f32 %v8279_v37, %v2337_v56  ;;  %v6623_v28 = vld [vmem:[#allocation8 + $0x2f0] sm:$0xff]   ;;  %v2538_v3 = vadd.f32 %v8286_v14, %v2345_v9  ;;  %v6633_v56 = vld [vmem:[#allocation8 + $0x2a0] sm:$0xff]  }
 0x3e5   : > { %v8288_v21 = vpop.f32.mrf.mxu1  ;;  %6028 = vmatprep.subr.bf16.mxu0 %v6604_v29  ;;  %v2355_v49 = vadd.f32 %v2354_v22, %v8262_v32  ;;  %v6638_v9 = vld [vmem:[#allocation8 + $0x160] sm:$0xff]  }
 0x3e6   : > { %v2356_v38 = vpop.f32.mrf.mxu0  ;;  %4898 = vmatprep.mubr.bf16.mxu0 %v2741_v62  ;;  %v2680_v16 = vmax.f32 %v2530_v50, 0.0 }
 0x3e7   : > { %v2541_v51 = vpop.f32.mrf.mxu1  ;;  %v2357_v24 = vadd.f32 %v2356_v38, %v8260_v59 }
 0x3e8   : > { %6029 = vmatpush3.bf16.msra.mxu0 %v6605_v20  ;;  %v2358_v26 = vpop.f32.mrf.mxu0  ;;  %v2542_v19 = vadd.f32 %v2541_v51, %v2349_v53  ;;  %v2526_v20 = vadd.f32 %v8272_v8, %v2333_v13 }
 0x3e9   : > { %v2545_v34 = vpop.f32.mrf.mxu1  ;;  %6030 = vmatprep.subr.bf16.mxu0 %v6606_v58  ;;  %v2359_v42 = vadd.f32 %v2358_v26, %v8262_v32 }
 0x3ea   : > { %v2362_v23 = vpop.f32.mrf.mxu0  ;;  %v2546_v35 = vadd.f32 %v2545_v34, %v2353_v7  ;;  %v6625_v34 = vld [vmem:[#allocation8 + $0x2b0] sm:$0xff]   ;;  %v2685_v8 = vmax.f32 %v2542_v19, 0.0 }
 0x3eb   : > { %v2547_v12 = vpop.f32.mrf.mxu1  ;;  %v2363_v36 = vadd.f32 %v2362_v23, %v8260_v59  ;;  %v6627_v23 = vld [vmem:[#allocation8 + $0x2e8] sm:$0xff]  }
 0x3ec   : > { %6031 = vmatpush3.bf16.msra.mxu0 %v6608_v18  ;;  %v8292_v6 = vpop.f32.mrf.mxu0  ;;  %v2548_v40 = vadd.f32 %v2547_v12, %v2355_v49  ;;  %v2686_v57 = vmax.f32 %v2546_v35, 0.0  ;;  %v6624_v18 = vld [vmem:[#allocation8 + $0x80] sm:$0xff]  }
 0x3ed   : > { %v2549_v33 = vpop.f32.mrf.mxu1  ;;  %6032 = vmatprep.subr.bf16.mxu0 %v6610_v39  ;;  %v6626_v39 = vld [vmem:[#allocation8 + $0x178] sm:$0xff]  }
 0x3ee   : > { %v2550_v41 = vadd.f32 %v2549_v33, %v2357_v24  ;;  %v2366_v43 = vpop.f32.mrf.mxu0  ;;  %v2687_v5 = vmax.f32 %v2548_v40, 0.0  ;;  %v2678_v24 = vmax.f32 %v2526_v20, 0.0  ;;  %v6639_v20 = vld [vmem:[#allocation8 + $0x2d0] sm:$0xff]  }
 0x3ef   : > { %v2551_v4 = vpop.f32.mrf.mxu1  ;;  %v2367_v54 = vadd.f32 %v2366_v43, %v8260_v59  ;;  %v6630_v43 = vld [vmem:[#allocation8 + $0x170] sm:$0xff]  }
 0x3f0   : > { %v2552_v45 = vadd.f32 %v2551_v4, %v2359_v42  ;;  %6033 = vmatpush3.bf16.msra.mxu0 %v6612_v30  ;;  %v8297_v25 = vpop.f32.mrf.mxu0  ;;  %v2688_v47 = vmax.f32 %v2550_v41, 0.0  ;;  %v2683_v30 = vmax.f32 %v2538_v3, 0.0  ;;  %v2740_v42 = vpack.c.bf16 %v2680_v16, %v2678_v24  ;;  %v6629_v41 = vld [vmem:[#allocation8 + $0x2a8] sm:$0xff]   ;;  %v6641_v16 = vld [vmem:[#allocation8 + $0x290] sm:$0xff]  }
 0x3f1   : > { %v2555_v1 = vpop.f32.mrf.mxu1  ;;  %6034 = vmatprep.subr.bf16.mxu0 %v6614_v63  ;;  %v6628_v63 = vld [vmem:[#allocation8 + $0x138] sm:$0xff]  }
 0x3f2   : > { %v2689_v15 = vmax.f32 %v2552_v45, 0.0  ;;  %v2556_v31 = vadd.f32 %v2555_v1, %v2363_v36  ;;  %v8299_v44 = vpop.f32.mrf.mxu0  ;;  %v2744_v29 = vpack.c.bf16 %v2688_v47, %v2686_v57  ;;  %v2743_v35 = vpack.c.bf16 %v2685_v8, %v2683_v30  ;;  %v6634_v57 = vld [vmem:[#allocation8 + $0x168] sm:$0xff]  }
 0x3f3   : > { %v8303_v27 = vpop.f32.mrf.mxu1 }
 0x3f4   : > { %v2745_v61 = vpack.c.bf16 %v2689_v15, %v2687_v5  ;;  %6035 = vmatpush3.bf16.msra.mxu0 %v6616_v17  ;;  %v2374_v0 = vpop.f32.mrf.mxu0  ;;  %v2690_v37 = vmax.f32 %v2556_v31, 0.0  ;;  %v6631_v17 = vld [vmem:[#allocation8 + $0x2e0] sm:$0xff]   ;;  %v6632_v15 = vld [vmem:[#allocation8 + $0x130] sm:$0xff]  }
 0x3f5   : > { %v2559_v10 = vpop.f32.mrf.mxu1  ;;  %6036 = vmatprep.subr.bf16.mxu0 %v6618_v52  ;;  %v2375_v7 = vadd.f32 %v2374_v0, %v8262_v32 }
 0x3f6   : > { %v2560_v62 = vadd.f32 %v2559_v10, %v2367_v54  ;;  %v8312_v22 = vpop.f32.mrf.mxu0  ;;  %4980 = vmatprep.mubr.bf16.mxu1 %v2745_v61  ;;  %v6636_v10 = vld [vmem:[#allocation8 + $0x128] sm:$0xff]  }
 0x3f7   : > { %v8315_v58 = vpop.f32.mrf.mxu1  ;;  %4981 = vmatmul.mubr.bf16.vlgmr.msra.gmra.mxu1 %v2744_v29 }
 0x3f8   : > { %v2692_v38 = vmax.f32 %v2560_v62, 0.0  ;;  %6037 = vmatpush3.bf16.msra.mxu0 %v6620_v60  ;;  %6113 = vmatpush3.bf16.msra.mxu1 %v6621_v11  ;;  %v2378_v26 = vpop.f32.mrf.mxu0  ;;  %v6635_v60 = vld [vmem:[#allocation8 + $0x2d8] sm:$0xff]  }
 0x3f9   : > { %v8318_v51 = vpop.f32.mrf.mxu1  ;;  %6038 = vmatprep.subr.bf16.mxu0 %v6622_v2  ;;  %6114 = vmatprep.subr.bf16.mxu1 %v6623_v28  ;;  %v2379_v4 = vadd.f32 %v2378_v26, %v8262_v32  ;;  %v6637_v28 = vld [vmem:[#allocation8 + $0x298] sm:$0xff]  }
 0x3fa   : > { %v8320_v12 = vpack.c.bf16 %v2692_v38, %v2690_v37  ;;  %v2382_v49 = vpop.f32.mrf.mxu0 }
 0x3fb   : > { %v2567_v14 = vpop.f32.mrf.mxu1  ;;  %v2383_v1 = vadd.f32 %v2382_v49, %v8260_v59  ;;  %v6643_v49 = vld [vmem:[#allocation8 + $0x2c8] sm:$0xff]  }
 0x3fc   : > { %6039 = vmatpush3.bf16.msra.mxu0 %v6624_v18  ;;  %6115 = vmatpush3.bf16.msra.mxu1 %v6625_v34  ;;  %v8323_v33 = vpop.f32.mrf.mxu0  ;;  %v2568_v36 = vadd.f32 %v2567_v14, %v2375_v7  ;;  %v6640_v18 = vld [vmem:[#allocation8 + $0x120] sm:$0xff]   ;;  %v2377_v14 = vadd.f32 %v8312_v22, %v8260_v59  ;;  %v6644_v7 = vld [vmem:[#allocation8 + $0x118] sm:$0xff]  }
 0x3fd   : > { %v8325_v40 = vpop.f32.mrf.mxu1  ;;  %6046 = vmatprep.subr.bf16.mxu0 %v6626_v39  ;;  %6116 = vmatprep.subr.bf16.mxu1 %v6627_v23  ;;  %v6642_v39 = vld [vmem:[#allocation8 + $0x158] sm:$0xff]  }
 0x3fe   : > { %v2386_v45 = vpop.f32.mrf.mxu0  ;;  %v2695_v53 = vmax.f32 %v2568_v36, 0.0 }
 0x3ff   : > { %4899 = vmatmul.mubr.bf16.vlgmr.msra.gmra.mxu0 %v2740_v42  ;;  %v2571_v47 = vpop.f32.mrf.mxu1  ;;  %v2387_v13 = vadd.f32 %v2386_v45, %v8260_v59  ;;  %v6647_v45 = vld [vmem:[#allocation8 + $0x2c0] sm:$0xff]  }
 0x400   : > { %v2572_v52 = vadd.f32 %v2571_v47, %v2379_v4  ;;  %6047 = vmatpush3.bf16.msra.mxu0 %v6628_v63  ;;  %4939 = vmatprep.mubr.bf16.mxu0 %v2743_v35  ;;  %v8329_v5 = vpop.f32.mrf.mxu0  ;;  %v2373_v35 = vadd.f32 %v8299_v44, %v8260_v59  ;;  %v2570_v4 = vadd.f32 %v8325_v40, %v2377_v14  ;;  %v6649_v40 = vld [vmem:[#allocation8 + $0x280] sm:$0xff]  }
 0x401   : > { %6117 = vmatpush3.bf16.msra.mxu1 %v6629_v41  ;;  %v2575_v31 = vpop.f32.mrf.mxu1  ;;  %6048 = vmatprep.subr.bf16.mxu0 %v6630_v43  ;;  %v6645_v41 = vld [vmem:[#allocation8 + $0x288] sm:$0xff]   ;;  %v6646_v43 = vld [vmem:[#allocation8 + $0x150] sm:$0xff]  }
 0x402   : > { %v2697_v54 = vmax.f32 %v2572_v52, 0.0  ;;  %v2576_v61 = vadd.f32 %v2575_v31, %v2383_v1  ;;  %v8331_v0 = vpop.f32.mrf.mxu0  ;;  %6118 = vmatprep.subr.bf16.mxu1 %v6631_v17  ;;  %v2566_v1 = vadd.f32 %v8318_v51, %v2373_v35  ;;  %v2347_v51 = vadd.f32 %v8282_v46, %v8260_v59  ;;  %v6657_v35 = vld [vmem:[#allocation8 + $0x3b0] sm:$0xff]  }
 0x403   : > { %v8333_v11 = vpop.f32.mrf.mxu1 }
 0x404   : > { %v2749_v50 = vpack.c.bf16 %v2697_v54, %v2695_v53  ;;  %6049 = vmatpush3.bf16.msra.mxu0 %v6632_v15  ;;  %v2394_v29 = vpop.f32.mrf.mxu0  ;;  %v2698_v37 = vmax.f32 %v2576_v61, 0.0  ;;  %v2696_v53 = vmax.f32 %v2570_v4, 0.0  ;;  %v6658_v4 = vld [vmem:[#allocation8 + $0x278] sm:$0xff]  }
 0x405   : > { %6119 = vmatpush3.bf16.msra.mxu1 %v6633_v56  ;;  %v2579_v2 = vpop.f32.mrf.mxu1  ;;  %6050 = vmatprep.subr.bf16.mxu0 %v6634_v57  ;;  %v2395_v63 = vadd.f32 %v2394_v29, %v8262_v32  ;;  %v6648_v56 = vld [vmem:[#allocation8 + $0x110] sm:$0xff]   ;;  %v6650_v57 = vld [vmem:[#allocation8 + $0x148] sm:$0xff]  }
 0x406   : > { %v2580_v19 = vadd.f32 %v2579_v2, %v2387_v13  ;;  %v8336_v62 = vpop.f32.mrf.mxu0  ;;  %6120 = vmatprep.subr.bf16.mxu1 %v6635_v60  ;;  %5062 = vmatprep.mubr.bf16.mxu1 %v2749_v50  ;;  %v6651_v13 = vld [vmem:[#allocation8 + $0x3f8] sm:$0xff]   ;;  %v2694_v2 = vmax.f32 %v2566_v1, 0.0 }
 0x407   : > { %v8338_v3 = vpop.f32.mrf.mxu1 }
 0x408   : > { %v2700_v38 = vmax.f32 %v2580_v19, 0.0  ;;  %6051 = vmatpush3.bf16.msra.mxu0 %v6636_v10  ;;  %v2398_v26 = vpop.f32.mrf.mxu0  ;;  %v2369_v10 = vadd.f32 %v8297_v25, %v8262_v32  ;;  %v6652_v19 = vld [vmem:[#allocation8 + $0x108] sm:$0xff]   ;;  %v2365_v25 = vadd.f32 %v8292_v6, %v8262_v32 }
 0x409   : > { %6121 = vmatpush3.bf16.msra.mxu1 %v6637_v28  ;;  %v8340_v34 = vpop.f32.mrf.mxu1  ;;  %6052 = vmatprep.subr.bf16.mxu0 %v6638_v9  ;;  %v2399_v36 = vadd.f32 %v2398_v26, %v8262_v32  ;;  %v6653_v26 = vld [vmem:[#allocation8 + $0x3b8] sm:$0xff]  }
 0x40a   : > { %v8342_v23 = vpack.c.bf16 %v2700_v38, %v2698_v37  ;;  %v2402_v8 = vpop.f32.mrf.mxu0  ;;  %6122 = vmatprep.subr.bf16.mxu1 %v6639_v20  ;;  %v2343_v20 = vadd.f32 %v8274_v55, %v8260_v59  ;;  %v2540_v37 = vadd.f32 %v8288_v21, %v2347_v51  ;;  %v2558_v14 = vadd.f32 %v8303_v27, %v2365_v25  ;;  %v6659_v27 = vld [vmem:[#allocation8 + $0x3e8] sm:$0xff]  }
 0x40b   : > { %v2587_v24 = vpop.f32.mrf.mxu1  ;;  %v2403_v52 = vadd.f32 %v2402_v8, %v8260_v59  ;;  %v6668_v25 = vld [vmem:[#allocation8 + $0x228] sm:$0xff]  }
 0x40c   : > { %6053 = vmatpush3.bf16.msra.mxu0 %v6640_v18  ;;  %v8346_v30 = vpop.f32.mrf.mxu0  ;;  %v2588_v17 = vadd.f32 %v2587_v24, %v2395_v63  ;;  %v2562_v18 = vadd.f32 %v8315_v58, %v2369_v10  ;;  %v6655_v24 = vld [vmem:[#allocation8 + $0x3f0] sm:$0xff]   ;;  %v2536_v55 = vadd.f32 %v8284_v48, %v2343_v20  ;;  %v6656_v58 = vld [vmem:[#allocation8 + $0x100] sm:$0xff]  }
 0x40d   : > { %6123 = vmatpush3.bf16.msra.mxu1 %v6641_v16  ;;  %v8349_v42 = vpop.f32.mrf.mxu1  ;;  %6054 = vmatprep.subr.bf16.mxu0 %v6642_v39  ;;  %v2748_v16 = vpack.c.bf16 %v2696_v53, %v2694_v2  ;;  %v6665_v2 = vld [vmem:[#allocation8 + $0x3a0] sm:$0xff]  }
 0x40e   : > { %v2406_v22 = vpop.f32.mrf.mxu0  ;;  %6124 = vmatprep.subr.bf16.mxu1 %v6643_v49  ;;  %v2703_v50 = vmax.f32 %v2588_v17, 0.0  ;;  %v6654_v49 = vld [vmem:[#allocation8 + $0x140] sm:$0xff]  }
 0x40f   : > { %v2591_v47 = vpop.f32.mrf.mxu1  ;;  %v2407_v28 = vadd.f32 %v2406_v22, %v8260_v59 }
 0x410   : > { %v2592_v15 = vadd.f32 %v2591_v47, %v2399_v36  ;;  %6055 = vmatpush3.bf16.msra.mxu0 %v6644_v7  ;;  %v8357_v31 = vpop.f32.mrf.mxu0  ;;  %v2693_v36 = vmax.f32 %v2562_v18, 0.0  ;;  %v2691_v47 = vmax.f32 %v2558_v14, 0.0 }
 0x411   : > { %6125 = vmatpush3.bf16.msra.mxu1 %v6645_v41  ;;  %v2595_v44 = vpop.f32.mrf.mxu1  ;;  %6056 = vmatprep.subr.bf16.mxu0 %v6646_v43  ;;  %v2684_v41 = vmax.f32 %v2540_v37, 0.0  ;;  %v6667_v37 = vld [vmem:[#allocation8 + $0x3d8] sm:$0xff]  }
 0x412   : > { %v2705_v54 = vmax.f32 %v2592_v15, 0.0  ;;  %v2596_v61 = vadd.f32 %v2595_v44, %v2403_v52  ;;  %v8359_v60 = vpop.f32.mrf.mxu0  ;;  %6126 = vmatprep.subr.bf16.mxu1 %v6647_v45  ;;  %v2682_v45 = vmax.f32 %v2536_v55, 0.0  ;;  %v6660_v52 = vld [vmem:[#allocation8 + $0x238] sm:$0xff]   ;;  %v6661_v44 = vld [vmem:[#allocation8 + $0x3a8] sm:$0xff]   ;;  %v6671_v55 = vld [vmem:[#allocation8 + $0x3d0] sm:$0xff]  }
 0x413   : > { %v8363_v29 = vpop.f32.mrf.mxu1 }
 0x414   : > { %6057 = vmatpush3.bf16.msra.mxu0 %v6648_v56  ;;  %v8368_v9 = vpop.f32.mrf.mxu0  ;;  %v2753_v38 = vpack.c.bf16 %v2705_v54, %v2703_v50  ;;  %v2706_v7 = vmax.f32 %v2596_v61, 0.0  ;;  %v2742_v15 = vpack.c.bf16 %v2684_v41, %v2682_v45  ;;  %v6663_v54 = vld [vmem:[#allocation8 + $0x3e0] sm:$0xff]   ;;  %v6664_v50 = vld [vmem:[#allocation8 + $0x230] sm:$0xff]   ;;  %v6675_v45 = vld [vmem:[#allocation8 + $0x3c8] sm:$0xff]  }
 0x415   : > { %6127 = vmatpush3.bf16.msra.mxu1 %v6649_v40  ;;  %v2599_v46 = vpop.f32.mrf.mxu1  ;;  %6058 = vmatprep.subr.bf16.mxu0 %v6650_v57  ;;  %v6662_v40 = vld [vmem:[#allocation8 + $0x270] sm:$0xff]   ;;  %v2747_v57 = vpack.c.bf16 %v2693_v36, %v2691_v47  ;;  %v6672_v41 = vld [vmem:[#allocation8 + $0x220] sm:$0xff]   ;;  %v6674_v36 = vld [vmem:[#allocation8 + $0x258] sm:$0xff]  }
 0x416   : > { %v2600_v39 = vadd.f32 %v2599_v46, %v2407_v28  ;;  %v8376_v8 = vpop.f32.mrf.mxu0  ;;  %6156 = vmatprep.subr.bf16.mxu1 %v6651_v13  ;;  %v6666_v28 = vld [vmem:[#allocation8 + $0x268] sm:$0xff]  }
 0x417   : > { %v8379_v21 = vpop.f32.mrf.mxu1 }
 0x418   : > { %v2708_v63 = vmax.f32 %v2600_v39, 0.0  ;;  %5063 = vmatmul.mubr.bf16.vlgmr.msra.gmra.mxu1 %v2748_v16  ;;  %6059 = vmatpush3.bf16.msra.mxu0 %v6652_v19  ;;  %v8382_v6 = vpop.f32.mrf.mxu0  ;;  %v6669_v16 = vld [vmem:[#allocation8 + $0x398] sm:$0xff]   ;;  %v6670_v39 = vld [vmem:[#allocation8 + $0x260] sm:$0xff]  }
 0x419   : > { %6157 = vmatpush3.bf16.msra.mxu1 %v6653_v26  ;;  %5144 = vmatprep.mubr.bf16.mxu1 %v2753_v38  ;;  %v8384_v43 = vpop.f32.mrf.mxu1 }
 0x41a   : > { %v8386_v48 = vpack.c.bf16 %v2708_v63, %v2706_v7  ;;  %v2422_v22 = vpop.f32.mrf.mxu0  ;;  %6060 = vmatprep.subr.bf16.mxu0 %v6654_v49  ;;  %6158 = vmatprep.subr.bf16.mxu1 %v6655_v24 }
 0x41b   : > { %v8388_v17 = vpop.f32.mrf.mxu1  ;;  %v2423_v13 = vadd.f32 %v2422_v22, %v8260_v59 }
 0x41c   : > { %6061 = vmatpush3.bf16.msra.mxu0 %v6656_v58  ;;  %v8390_v1 = vpop.f32.mrf.mxu0 }
 0x41d   : > { %6159 = vmatpush3.bf16.msra.mxu1 %v6657_v35  ;;  %v8392_v56 = vpop.f32.mrf.mxu1  ;;  %6090 = vmatprep.subr.bf16.mxu0 %v6658_v4  ;;  %v6673_v4 = vld [vmem:[#allocation8 + $0x390] sm:$0xff]  }
 0x41e   : > { %v2426_v53 = vpop.f32.mrf.mxu0  ;;  %6160 = vmatprep.subr.bf16.mxu1 %v6659_v27 }
 0x41f   : > { %4940 = vmatmul.mubr.bf16.vlgmr.msra.gmra.mxu0 %v2742_v15  ;;  %v2611_v61 = vpop.f32.mrf.mxu1  ;;  %v2427_v46 = vadd.f32 %v2426_v53, %v8260_v59  ;;  %v6677_v53 = vld [vmem:[#allocation8 + $0x388] sm:$0xff]  }
 0x420   : > { %6091 = vmatpush3.bf16.msra.mxu0 %v6660_v52  ;;  %5021 = vmatprep.mubr.bf16.mxu0 %v2747_v57  ;;  %v8395_v51 = vpop.f32.mrf.mxu0  ;;  %v2397_v52 = vadd.f32 %v8336_v62, %v8260_v59  ;;  %v6679_v62 = vld [vmem:[#allocation8 + $0x3c0] sm:$0xff]  }
 0x421   : > { %6161 = vmatpush3.bf16.msra.mxu1 %v6661_v44  ;;  %v2615_v10 = vpop.f32.mrf.mxu1  ;;  %6092 = vmatprep.subr.bf16.mxu0 %v6662_v40  ;;  %v6676_v44 = vld [vmem:[#allocation8 + $0x218] sm:$0xff]   ;;  %v2419_v40 = vadd.f32 %v8382_v6, %v8262_v32 }
 0x422   : > { %v2616_v19 = vadd.f32 %v2615_v10, %v2423_v13  ;;  %v8397_v20 = vpop.f32.mrf.mxu0  ;;  %6162 = vmatprep.subr.bf16.mxu1 %v6663_v54  ;;  %v6678_v54 = vld [vmem:[#allocation8 + $0x250] sm:$0xff]   ;;  %v2393_v13 = vadd.f32 %v8331_v0, %v8260_v59 }
 0x423   : > { %v8399_v38 = vpop.f32.mrf.mxu1 }
 0x424   : > { %6093 = vmatpush3.bf16.msra.mxu0 %v6664_v50  ;;  %v8402_v26 = vpop.f32.mrf.mxu0  ;;  %v2714_v7 = vmax.f32 %v2616_v19, 0.0  ;;  %v2590_v50 = vadd.f32 %v8349_v42, %v2397_v52  ;;  %v2586_v6 = vadd.f32 %v8340_v34, %v2393_v13  ;;  %v2385_v52 = vadd.f32 %v8323_v33, %v8262_v32  ;;  %v6687_v13 = vld [vmem:[#allocation8 + $0x4f0] sm:$0xff]   ;;  %v6688_v33 = vld [vmem:[#allocation8 + $0x200] sm:$0xff]  }
 0x425   : > { %6163 = vmatpush3.bf16.msra.mxu1 %v6665_v2  ;;  %v2619_v18 = vpop.f32.mrf.mxu1  ;;  %6094 = vmatprep.subr.bf16.mxu0 %v6666_v28  ;;  %v2415_v2 = vadd.f32 %v8368_v9, %v8262_v32  ;;  %v2612_v28 = vadd.f32 %v2611_v61, %v2419_v40 }
 0x426   : > { %v2620_v49 = vadd.f32 %v2619_v18, %v2427_v46  ;;  %v8404_v24 = vpop.f32.mrf.mxu0  ;;  %6164 = vmatprep.subr.bf16.mxu1 %v6667_v37  ;;  %v6681_v18 = vld [vmem:[#allocation8 + $0x380] sm:$0xff]  }
 0x427   : > { %v8406_v14 = vpop.f32.mrf.mxu1  ;;  %v2608_v0 = vadd.f32 %v8388_v17, %v2415_v2  ;;  %v2713_v34 = vmax.f32 %v2612_v28, 0.0 }
 0x428   : > { %v2716_v63 = vmax.f32 %v2620_v49, 0.0  ;;  %6095 = vmatpush3.bf16.msra.mxu0 %v6668_v25  ;;  %v8408_v58 = vpop.f32.mrf.mxu0  ;;  %v6680_v25 = vld [vmem:[#allocation8 + $0x210] sm:$0xff]   ;;  %v6683_v49 = vld [vmem:[#allocation8 + $0x4f8] sm:$0xff]  }
 0x429   : > { %6165 = vmatpush3.bf16.msra.mxu1 %v6669_v16  ;;  %v8410_v35 = vpop.f32.mrf.mxu1  ;;  %6096 = vmatprep.subr.bf16.mxu0 %v6670_v39  ;;  %v6682_v16 = vld [vmem:[#allocation8 + $0x248] sm:$0xff]   ;;  %v2704_v39 = vmax.f32 %v2590_v50, 0.0 }
 0x42a   : > { %v8412_v22 = vpack.c.bf16 %v2716_v63, %v2714_v7  ;;  %v2442_v27 = vpop.f32.mrf.mxu0  ;;  %6166 = vmatprep.subr.bf16.mxu1 %v6671_v55  ;;  %v2389_v7 = vadd.f32 %v8329_v5, %v8262_v32  ;;  %v2702_v63 = vmax.f32 %v2586_v6, 0.0 }
 0x42b   : > { %v8414_v47 = vpop.f32.mrf.mxu1  ;;  %v2443_v37 = vadd.f32 %v2442_v27, %v8260_v59 }
 0x42c   : > { %6097 = vmatpush3.bf16.msra.mxu0 %v6672_v41  ;;  %v8418_v15 = vpop.f32.mrf.mxu0  ;;  %v2752_v40 = vpack.c.bf16 %v2704_v39, %v2702_v63  ;;  %v6694_v63 = vld [vmem:[#allocation8 + $0x370] sm:$0xff]  }
 0x42d   : > { %6167 = vmatpush3.bf16.msra.mxu1 %v6673_v4  ;;  %v8422_v57 = vpop.f32.mrf.mxu1  ;;  %6098 = vmatprep.subr.bf16.mxu0 %v6674_v36  ;;  %v6684_v4 = vld [vmem:[#allocation8 + $0x208] sm:$0xff]   ;;  %v2711_v36 = vmax.f32 %v2608_v0, 0.0 }
 0x42e   : > { %v2446_v10 = vpop.f32.mrf.mxu0  ;;  %6168 = vmatprep.subr.bf16.mxu1 %v6675_v45  ;;  %v6685_v45 = vld [vmem:[#allocation8 + $0x4b8] sm:$0xff]  }
 0x42f   : > { %v8429_v19 = vpop.f32.mrf.mxu1  ;;  %v2447_v17 = vadd.f32 %v2446_v10, %v8260_v59  ;;  %v2757_v50 = vpack.c.bf16 %v2713_v34, %v2711_v36 }
 0x430   : > { %6099 = vmatpush3.bf16.msra.mxu0 %v6676_v44  ;;  %v8433_v46 = vpop.f32.mrf.mxu0  ;;  %v2582_v44 = vadd.f32 %v8338_v3, %v2389_v7  ;;  %v6693_v7 = vld [vmem:[#allocation8 + $0x4a8] sm:$0xff]  }
 0x431   : > { %6169 = vmatpush3.bf16.msra.mxu1 %v6677_v53  ;;  %v2635_v42 = vpop.f32.mrf.mxu1  ;;  %6100 = vmatprep.subr.bf16.mxu0 %v6678_v54  ;;  %v6686_v54 = vld [vmem:[#allocation8 + $0x240] sm:$0xff]  }
 0x432   : > { %v2636_v9 = vadd.f32 %v2635_v42, %v2443_v37  ;;  %v8436_v61 = vpop.f32.mrf.mxu0  ;;  %6170 = vmatprep.subr.bf16.mxu1 %v6679_v62  ;;  %v2578_v62 = vadd.f32 %v8333_v11, %v2385_v52  ;;  %v6689_v37 = vld [vmem:[#allocation8 + $0x4b0] sm:$0xff]   ;;  %v2701_v0 = vmax.f32 %v2582_v44, 0.0  ;;  %v6691_v11 = vld [vmem:[#allocation8 + $0x4e8] sm:$0xff]  }
 0x433   : > { %v8438_v55 = vpop.f32.mrf.mxu1 }
 0x434   : > { %6101 = vmatpush3.bf16.msra.mxu0 %v6680_v25  ;;  %v8443_v41 = vpop.f32.mrf.mxu0  ;;  %v2722_v2 = vmax.f32 %v2636_v9, 0.0  ;;  %v6690_v25 = vld [vmem:[#allocation8 + $0x378] sm:$0xff]   ;;  %v2699_v39 = vmax.f32 %v2578_v62, 0.0  ;;  %v6700_v62 = vld [vmem:[#allocation8 + $0x328] sm:$0xff]  }
 0x435   : > { %6171 = vmatpush3.bf16.msra.mxu1 %v6681_v18  ;;  %v2639_v27 = vpop.f32.mrf.mxu1  ;;  %6102 = vmatprep.subr.bf16.mxu0 %v6682_v16  ;;  %v6692_v9 = vld [vmem:[#allocation8 + $0x338] sm:$0xff]  }
 0x436   : > { %v2640_v53 = vadd.f32 %v2639_v27, %v2447_v17  ;;  %v8448_v5 = vpop.f32.mrf.mxu0  ;;  %6200 = vmatprep.subr.bf16.mxu1 %v6683_v49  ;;  %v2751_v17 = vpack.c.bf16 %v2701_v0, %v2699_v39  ;;  %v6705_v39 = vld [vmem:[#allocation8 + $0x490] sm:$0xff]  }
 0x437   : > { %v8450_v10 = vpop.f32.mrf.mxu1 }
 0x438   : > { %v2724_v28 = vmax.f32 %v2640_v53, 0.0  ;;  %5145 = vmatmul.mubr.bf16.vlgmr.msra.gmra.mxu1 %v2752_v40  ;;  %6103 = vmatpush3.bf16.msra.mxu0 %v6684_v4  ;;  %v8453_v6 = vpop.f32.mrf.mxu0  ;;  %v6695_v4 = vld [vmem:[#allocation8 + $0x4e0] sm:$0xff]   ;;  %v6698_v53 = vld [vmem:[#allocation8 + $0x368] sm:$0xff]  }
 0x439   : > { %6201 = vmatpush3.bf16.msra.mxu1 %v6685_v45  ;;  %5226 = vmatprep.mubr.bf16.mxu1 %v2757_v50  ;;  %v8455_v3 = vpop.f32.mrf.mxu1  ;;  %v6696_v45 = vld [vmem:[#allocation8 + $0x330] sm:$0xff]   ;;  %v6697_v40 = vld [vmem:[#allocation8 + $0x4a0] sm:$0xff]  }
 0x43a   : > { %v8457_v42 = vpack.c.bf16 %v2724_v28, %v2722_v2  ;;  %v2462_v18 = vpop.f32.mrf.mxu0  ;;  %6104 = vmatprep.subr.bf16.mxu0 %v6686_v54  ;;  %6202 = vmatprep.subr.bf16.mxu1 %v6687_v13  ;;  %v6699_v13 = vld [vmem:[#allocation8 + $0x4d8] sm:$0xff]  }
 0x43b   : > { %v8459_v16 = vpop.f32.mrf.mxu1  ;;  %v2463_v27 = vadd.f32 %v2462_v18, %v8260_v59  ;;  %v6701_v28 = vld [vmem:[#allocation8 + $0x498] sm:$0xff]  }
 0x43c   : > { %6105 = vmatpush3.bf16.msra.mxu0 %v6688_v33  ;;  %v8461_v49 = vpop.f32.mrf.mxu0  ;;  %v6702_v33 = vld [vmem:[#allocation8 + $0x360] sm:$0xff]  }
 0x43d   : > { %6203 = vmatpush3.bf16.msra.mxu1 %v6689_v37  ;;  %v8463_v34 = vpop.f32.mrf.mxu1  ;;  %6134 = vmatprep.subr.bf16.mxu0 %v6690_v25  ;;  %v6703_v25 = vld [vmem:[#allocation8 + $0x4d0] sm:$0xff]  }
 0x43e   : > { %6204 = vmatprep.subr.bf16.mxu1 %v6691_v11  ;;  %v2466_v52 = vpop.f32.mrf.mxu0  ;;  %v6704_v11 = vld [vmem:[#allocation8 + $0x320] sm:$0xff]  }
 0x43f   : > { %5022 = vmatmul.mubr.bf16.vlgmr.msra.gmra.mxu0 %v8320_v12  ;;  %v8466_v36 = vpop.f32.mrf.mxu1  ;;  %v2467_v12 = vadd.f32 %v2466_v52, %v8260_v59  ;;  %v6710_v52 = vld [vmem:[#allocation8 + $0x350] sm:$0xff]  }
 0x440   : > { %6135 = vmatpush3.bf16.msra.mxu0 %v6692_v9  ;;  %5103 = vmatprep.mubr.bf16.mxu0 %v2751_v17  ;;  %v6706_v9 = vld [vmem:[#allocation8 + $0x358] sm:$0xff]   ;;  %v2417_v17 = vadd.f32 %v8376_v8, %v8260_v59 }
 0x441   : > { %6205 = vmatpush3.bf16.msra.mxu1 %v6693_v7  ;;  %v2655_v44 = vpop.f32.mrf.mxu1  ;;  %6136 = vmatprep.subr.bf16.mxu0 %v6694_v63  ;;  %v6707_v63 = vld [vmem:[#allocation8 + $0x4c8] sm:$0xff]  }
 0x442   : > { %v2656_v54 = vadd.f32 %v2655_v44, %v2463_v27  ;;  %6206 = vmatprep.subr.bf16.mxu1 %v6695_v4  ;;  %v6708_v4 = vld [vmem:[#allocation8 + $0x318] sm:$0xff]   ;;  %v2439_v27 = vadd.f32 %v8408_v58, %v8262_v32  ;;  %v2413_v44 = vadd.f32 %v8359_v60, %v8260_v59  ;;  %v6712_v58 = vld [vmem:[#allocation8 + $0x310] sm:$0xff]  }
 0x443   : > { %v8469_v50 = vpop.f32.mrf.mxu1 }
 0x444   : > { %6137 = vmatpush3.bf16.msra.mxu0 %v6696_v45  ;;  %v2730_v0 = vmax.f32 %v2656_v54, 0.0  ;;  %v6709_v45 = vld [vmem:[#allocation8 + $0x488] sm:$0xff]   ;;  %v2435_v54 = vadd.f32 %v8402_v26, %v8262_v32  ;;  %v2632_v8 = vadd.f32 %v8429_v19, %v2439_v27 }
 0x445   : > { %6207 = vmatpush3.bf16.msra.mxu1 %v6697_v40  ;;  %v2659_v2 = vpop.f32.mrf.mxu1  ;;  %6138 = vmatprep.subr.bf16.mxu0 %v6698_v53  ;;  %v2610_v40 = vadd.f32 %v8392_v56, %v2417_v17  ;;  %v6711_v53 = vld [vmem:[#allocation8 + $0x4c0] sm:$0xff]   ;;  %v6715_v56 = vld [vmem:[#allocation8 + $0x5f8] sm:$0xff]   ;;  %v6716_v19 = vld [vmem:[#allocation8 + $0x308] sm:$0xff]  }
 0x446   : > { %v2660_v37 = vadd.f32 %v2659_v2, %v2467_v12  ;;  %6208 = vmatprep.subr.bf16.mxu1 %v6699_v13  ;;  %v2606_v13 = vadd.f32 %v8384_v43, %v2413_v44  ;;  %v2628_v12 = vadd.f32 %v8414_v47, %v2435_v54  ;;  %v6714_v2 = vld [vmem:[#allocation8 + $0x348] sm:$0xff]   ;;  %v6717_v43 = vld [vmem:[#allocation8 + $0x5b8] sm:$0xff]   ;;  %v2405_v47 = vadd.f32 %v8346_v30, %v8262_v32 }
 0x447   : > { %v2712_v60 = vmax.f32 %v2610_v40, 0.0  ;;  %v6722_v17 = vld [vmem:[#allocation8 + $0x478] sm:$0xff]   ;;  %v6723_v30 = vld [vmem:[#allocation8 + $0x5e8] sm:$0xff]   ;;  %v6728_v40 = vld [vmem:[#allocation8 + $0x430] sm:$0xff]  }
 0x448   : > { %v2732_v18 = vmax.f32 %v2660_v37, 0.0  ;;  %6139 = vmatpush3.bf16.msra.mxu0 %v6700_v62  ;;  %v6713_v62 = vld [vmem:[#allocation8 + $0x480] sm:$0xff]   ;;  %v2710_v26 = vmax.f32 %v2606_v13, 0.0  ;;  %v2719_v37 = vmax.f32 %v2628_v12, 0.0  ;;  %v6730_v54 = vld [vmem:[#allocation8 + $0x468] sm:$0xff]  }
 0x449   : > { %6209 = vmatpush3.bf16.msra.mxu1 %v6701_v28  ;;  %6140 = vmatprep.subr.bf16.mxu0 %v6702_v33  ;;  %v2721_v28 = vmax.f32 %v2632_v8, 0.0  ;;  %v2409_v33 = vadd.f32 %v8357_v31, %v8262_v32  ;;  %v6720_v31 = vld [vmem:[#allocation8 + $0x300] sm:$0xff]   ;;  %v6731_v8 = vld [vmem:[#allocation8 + $0x5d8] sm:$0xff]   ;;  %v6732_v13 = vld [vmem:[#allocation8 + $0x428] sm:$0xff]  }
 0x44a   : > { %v8472_v7 = vpack.c.bf16 %v2732_v18, %v2730_v0  ;;  %6210 = vmatprep.subr.bf16.mxu1 %v6703_v25  ;;  %v2756_v0 = vpack.c.bf16 %v2712_v60, %v2710_v26  ;;  %v6718_v18 = vld [vmem:[#allocation8 + $0x340] sm:$0xff]   ;;  %v6738_v60 = vld [vmem:[#allocation8 + $0x458] sm:$0xff]   ;;  %v2459_v26 = vadd.f32 %v8453_v6, %v8262_v32  ;;  %v6744_v6 = vld [vmem:[#allocation8 + $0x410] sm:$0xff]  }
 0x44b   : > { %v2602_v25 = vadd.f32 %v8379_v21, %v2409_v33  ;;  %v6724_v21 = vld [vmem:[#allocation8 + $0x438] sm:$0xff]   ;;  %v6734_v12 = vld [vmem:[#allocation8 + $0x460] sm:$0xff]  }
 0x44c   : > { %6141 = vmatpush3.bf16.msra.mxu0 %v6704_v11  ;;  %v6719_v11 = vld [vmem:[#allocation8 + $0x5f0] sm:$0xff]   ;;  %v6740_v33 = vld [vmem:[#allocation8 + $0x418] sm:$0xff]  }
 0x44d   : > { %6211 = vmatpush3.bf16.msra.mxu1 %v6705_v39  ;;  %6142 = vmatprep.subr.bf16.mxu0 %v6706_v9  ;;  %v2761_v39 = vpack.c.bf16 %v2721_v28, %v2719_v37  ;;  %v2598_v9 = vadd.f32 %v8363_v29, %v2405_v47  ;;  %v6727_v29 = vld [vmem:[#allocation8 + $0x5e0] sm:$0xff]   ;;  %v2437_v28 = vadd.f32 %v8404_v24, %v8260_v59  ;;  %v6742_v37 = vld [vmem:[#allocation8 + $0x450] sm:$0xff]  }
 0x44e   : > { %6212 = vmatprep.subr.bf16.mxu1 %v6707_v63  ;;  %v6721_v63 = vld [vmem:[#allocation8 + $0x5b0] sm:$0xff]   ;;  %v2652_v24 = vadd.f32 %v8466_v36, %v2459_v26  ;;  %v6748_v36 = vld [vmem:[#allocation8 + $0x408] sm:$0xff]  }
 0x44f   : > { %v2707_v27 = vmax.f32 %v2598_v9, 0.0  ;;  %v2630_v47 = vadd.f32 %v8422_v57, %v2437_v28  ;;  %v6746_v9 = vld [vmem:[#allocation8 + $0x448] sm:$0xff]   ;;  %v6747_v57 = vld [vmem:[#allocation8 + $0x6f8] sm:$0xff]  }
 0x450   : > { %6143 = vmatpush3.bf16.msra.mxu0 %v6708_v4  ;;  %v2709_v4 = vmax.f32 %v2602_v25, 0.0  ;;  %v6743_v25 = vld [vmem:[#allocation8 + $0x5c0] sm:$0xff]  }
 0x451   : > { %6213 = vmatpush3.bf16.msra.mxu1 %v6709_v45  ;;  %6144 = vmatprep.subr.bf16.mxu0 %v6710_v52  ;;  %v6725_v45 = vld [vmem:[#allocation8 + $0x5a8] sm:$0xff]   ;;  %v6726_v52 = vld [vmem:[#allocation8 + $0x470] sm:$0xff]  }
 0x452   : > { %6214 = vmatprep.subr.bf16.mxu1 %v6711_v53  ;;  %v2755_v44 = vpack.c.bf16 %v2709_v4, %v2707_v27  ;;  %v6729_v53 = vld [vmem:[#allocation8 + $0x5a0] sm:$0xff]  }
 0x453   : > { %v6750_v27 = vld [vmem:[#allocation8 + $0x440] sm:$0xff]  }
 0x454   : > { %6145 = vmatpush3.bf16.msra.mxu0 %v6712_v58  ;;  %v6733_v58 = vld [vmem:[#allocation8 + $0x598] sm:$0xff]  }
 0x455   : > { %6215 = vmatpush3.bf16.msra.mxu1 %v6713_v62  ;;  %6146 = vmatprep.subr.bf16.mxu0 %v6714_v2  ;;  %v6735_v62 = vld [vmem:[#allocation8 + $0x5d0] sm:$0xff]   ;;  %v6736_v2 = vld [vmem:[#allocation8 + $0x420] sm:$0xff]  }
 0x456   : > { %6244 = vmatprep.subr.bf16.mxu1 %v6715_v56  ;;  %v6739_v56 = vld [vmem:[#allocation8 + $0x5c8] sm:$0xff]  }
 0x458   : > { %5227 = vmatmul.mubr.bf16.vlgmr.msra.gmra.mxu1 %v2756_v0  ;;  %6147 = vmatpush3.bf16.msra.mxu0 %v6716_v19  ;;  %v6741_v19 = vld [vmem:[#allocation8 + $0x588] sm:$0xff]   ;;  %v2455_v0 = vadd.f32 %v8443_v41, %v8262_v32 }
 0x459   : > { %6245 = vmatpush3.bf16.msra.mxu1 %v6717_v43  ;;  %5308 = vmatprep.mubr.bf16.mxu1 %v2761_v39  ;;  %v2433_v43 = vadd.f32 %v8397_v20, %v8260_v59  ;;  %v6745_v39 = vld [vmem:[#allocation8 + $0x580] sm:$0xff]   ;;  %v2720_v20 = vmax.f32 %v2630_v47, 0.0  ;;  %v6767_v47 = vld [vmem:[#allocation8 + $0x6d0] sm:$0xff]  }
 0x45a   : > { %6148 = vmatprep.subr.bf16.mxu0 %v6718_v18  ;;  %6246 = vmatprep.subr.bf16.mxu1 %v6719_v11  ;;  %v2648_v11 = vadd.f32 %v8459_v16, %v2455_v0  ;;  %v2425_v16 = vadd.f32 %v8390_v1, %v8262_v32  ;;  %v6755_v1 = vld [vmem:[#allocation8 + $0x6e8] sm:$0xff]   ;;  %v6768_v0 = vld [vmem:[#allocation8 + $0x520] sm:$0xff]  }
 0x45b   : > { %v2626_v18 = vadd.f32 %v8410_v35, %v2433_v43  ;;  %v6749_v35 = vld [vmem:[#allocation8 + $0x6b8] sm:$0xff]   ;;  %v6766_v43 = vld [vmem:[#allocation8 + $0x560] sm:$0xff]  }
 0x45c   : > { %6149 = vmatpush3.bf16.msra.mxu0 %v6720_v31  ;;  %v2729_v31 = vmax.f32 %v2652_v24, 0.0  ;;  %v6769_v24 = vld [vmem:[#allocation8 + $0x690] sm:$0xff]  }
 0x45d   : > { %6247 = vmatpush3.bf16.msra.mxu1 %v6721_v63  ;;  %6178 = vmatprep.subr.bf16.mxu0 %v6722_v17  ;;  %v2429_v63 = vadd.f32 %v8395_v51, %v8262_v32  ;;  %v2718_v41 = vmax.f32 %v2626_v18, 0.0  ;;  %v2727_v17 = vmax.f32 %v2648_v11, 0.0  ;;  %v6752_v51 = vld [vmem:[#allocation8 + $0x400] sm:$0xff]   ;;  %v6770_v18 = vld [vmem:[#allocation8 + $0x558] sm:$0xff]   ;;  %v6771_v11 = vld [vmem:[#allocation8 + $0x6c8] sm:$0xff]  }
 0x45e   : > { %6248 = vmatprep.subr.bf16.mxu1 %v6723_v30 }
 0x45f   : > { %5104 = vmatmul.mubr.bf16.vlgmr.msra.gmra.mxu0 %v8342_v23  ;;  %v6737_v23 = vld [vmem:[#allocation8 + $0x590] sm:$0xff]   ;;  %v2622_v4 = vadd.f32 %v8406_v14, %v2429_v63  ;;  %v2760_v30 = vpack.c.bf16 %v2720_v20, %v2718_v41  ;;  %v6772_v20 = vld [vmem:[#allocation8 + $0x518] sm:$0xff]   ;;  %v2453_v41 = vadd.f32 %v8436_v61, %v8260_v59 }
 0x460   : > { %6179 = vmatpush3.bf16.msra.mxu0 %v6724_v21  ;;  %5185 = vmatprep.mubr.bf16.mxu0 %v2755_v44  ;;  %v6751_v21 = vld [vmem:[#allocation8 + $0x6f0] sm:$0xff]  }
 0x461   : > { %6249 = vmatpush3.bf16.msra.mxu1 %v6725_v45  ;;  %6180 = vmatprep.subr.bf16.mxu0 %v6726_v52  ;;  %v2765_v45 = vpack.c.bf16 %v2729_v31, %v2727_v17  ;;  %v2618_v52 = vadd.f32 %v8399_v38, %v2425_v16  ;;  %v6753_v44 = vld [vmem:[#allocation8 + $0x6b0] sm:$0xff]   ;;  %v6757_v38 = vld [vmem:[#allocation8 + $0x6a8] sm:$0xff]   ;;  %v6775_v17 = vld [vmem:[#allocation8 + $0x6c0] sm:$0xff]  }
 0x462   : > { %6250 = vmatprep.subr.bf16.mxu1 %v6727_v29  ;;  %v6754_v29 = vld [vmem:[#allocation8 + $0x578] sm:$0xff]   ;;  %v6773_v31 = vld [vmem:[#allocation8 + $0x688] sm:$0xff]   ;;  %v6774_v63 = vld [vmem:[#allocation8 + $0x550] sm:$0xff]  }
 0x463   : > { %v2715_v14 = vmax.f32 %v2618_v52, 0.0  ;;  %v6779_v52 = vld [vmem:[#allocation8 + $0x7f8] sm:$0xff]  }
 0x464   : > { %6181 = vmatpush3.bf16.msra.mxu0 %v6728_v40  ;;  %v2717_v40 = vmax.f32 %v2622_v4, 0.0  ;;  %v6776_v4 = vld [vmem:[#allocation8 + $0x510] sm:$0xff]  }
 0x465   : > { %6251 = vmatpush3.bf16.msra.mxu1 %v6729_v53  ;;  %6182 = vmatprep.subr.bf16.mxu0 %v6730_v54  ;;  %v8511_v53 = vpop.f32.mrf.mxu0  ;;  %v8513_v54 = vpop.f32.mrf.mxu1 }
 0x466   : > { %6252 = vmatprep.subr.bf16.mxu1 %v6731_v8  ;;  %v6756_v8 = vld [vmem:[#allocation8 + $0x538] sm:$0xff]  }
 0x468   : > { %6183 = vmatpush3.bf16.msra.mxu0 %v6732_v13  ;;  %v6758_v13 = vld [vmem:[#allocation8 + $0x570] sm:$0xff]  }
 0x469   : > { %6253 = vmatpush3.bf16.msra.mxu1 %v6733_v58  ;;  %6184 = vmatprep.subr.bf16.mxu0 %v6734_v12  ;;  %v2759_v58 = vpack.c.bf16 %v2717_v40, %v2715_v14  ;;  %v8515_v12 = vpop.f32.mrf.mxu0  ;;  %v2445_v40 = vadd.f32 %v8418_v15, %v8262_v32  ;;  %v6787_v15 = vld [vmem:[#allocation8 + $0x7e8] sm:$0xff]  }
 0x46a   : > { %6254 = vmatprep.subr.bf16.mxu1 %v6735_v62  ;;  %v6759_v62 = vld [vmem:[#allocation8 + $0x6e0] sm:$0xff]  }
 0x46b   : > { %v2474_v28 = vpop.f32.mrf.mxu0 }
 0x46c   : > { %6185 = vmatpush3.bf16.msra.mxu0 %v6736_v2  ;;  %v8518_v2 = vpop.f32.mrf.mxu1 }
 0x46d   : > { %6255 = vmatpush3.bf16.msra.mxu1 %v6737_v23  ;;  %6186 = vmatprep.subr.bf16.mxu0 %v6738_v60  ;;  %v6760_v23 = vld [vmem:[#allocation8 + $0x530] sm:$0xff]   ;;  %v6761_v60 = vld [vmem:[#allocation8 + $0x6a0] sm:$0xff]  }
 0x46e   : > { %6256 = vmatprep.subr.bf16.mxu1 %v6739_v56  ;;  %v6762_v56 = vld [vmem:[#allocation8 + $0x568] sm:$0xff]   ;;  %v2667_v26 = vpop.f32.mrf.mxu1 }
 0x470   : > { %6187 = vmatpush3.bf16.msra.mxu0 %v6740_v33  ;;  %v6763_v33 = vld [vmem:[#allocation8 + $0x6d8] sm:$0xff]  }
 0x471   : > { %6257 = vmatpush3.bf16.msra.mxu1 %v6741_v19  ;;  %6188 = vmatprep.subr.bf16.mxu0 %v6742_v37  ;;  %v6764_v19 = vld [vmem:[#allocation8 + $0x528] sm:$0xff]   ;;  %v6765_v37 = vld [vmem:[#allocation8 + $0x698] sm:$0xff]  }
 0x472   : > { %6258 = vmatprep.subr.bf16.mxu1 %v6743_v25  ;;  %v8522_v25 = vpop.f32.mrf.mxu1 }
 0x474   : > { %6189 = vmatpush3.bf16.msra.mxu0 %v6744_v6 }
 0x475   : > { %6259 = vmatpush3.bf16.msra.mxu1 %v6745_v39  ;;  %6190 = vmatprep.subr.bf16.mxu0 %v6746_v9  ;;  %v2457_v39 = vadd.f32 %v8448_v5, %v8260_v59  ;;  %v2671_v9 = vpop.f32.mrf.mxu1  ;;  %v2646_v5 = vadd.f32 %v8455_v3, %v2453_v41  ;;  %v6781_v3 = vld [vmem:[#allocation8 + $0x7b8] sm:$0xff]   ;;  %v2473_v41 = vadd.f32 %v8515_v12, %v8260_v59  ;;  %v6812_v12 = vld [vmem:[#allocation8 + $0x640] sm:$0xff]  }
 0x476   : > { %6288 = vmatprep.subr.bf16.mxu1 %v6747_v57 }
 0x478   : > { %5309 = vmatmul.mubr.bf16.vlgmr.msra.gmra.mxu1 %v2760_v30  ;;  %6191 = vmatpush3.bf16.msra.mxu0 %v6748_v36  ;;  %v2650_v36 = vadd.f32 %v8463_v34, %v2457_v39  ;;  %v2449_v34 = vadd.f32 %v8433_v46, %v8262_v32  ;;  %v6784_v46 = vld [vmem:[#allocation8 + $0x500] sm:$0xff]   ;;  %v6802_v39 = vld [vmem:[#allocation8 + $0x658] sm:$0xff]  }
 0x479   : > { %6289 = vmatpush3.bf16.msra.mxu1 %v6749_v35  ;;  %5390 = vmatprep.mubr.bf16.mxu1 %v2765_v45  ;;  %v2475_v35 = vadd.f32 %v2474_v28, %v8262_v32  ;;  %v6789_v28 = vld [vmem:[#allocation8 + $0x7a8] sm:$0xff]  }
 0x47a   : > { %6192 = vmatprep.subr.bf16.mxu0 %v6750_v27  ;;  %6290 = vmatprep.subr.bf16.mxu1 %v6751_v21  ;;  %v6777_v27 = vld [vmem:[#allocation8 + $0x680] sm:$0xff]   ;;  %v6778_v21 = vld [vmem:[#allocation8 + $0x548] sm:$0xff]   ;;  %v2728_v45 = vmax.f32 %v2650_v36, 0.0 }
 0x47b   : > { %v2668_v30 = vadd.f32 %v2667_v26, %v2475_v35  ;;  %v2666_v35 = vadd.f32 %v8518_v2, %v2473_v41  ;;  %v2465_v2 = vadd.f32 %v8461_v49, %v8262_v32  ;;  %v6818_v49 = vld [vmem:[#allocation8 + $0x768] sm:$0xff]  }
 0x47c   : > { %6193 = vmatpush3.bf16.msra.mxu0 %v6752_v51  ;;  %v2726_v51 = vmax.f32 %v2646_v5, 0.0  ;;  %v6810_v5 = vld [vmem:[#allocation8 + $0x648] sm:$0xff]  }
 0x47d   : > { %6291 = vmatpush3.bf16.msra.mxu1 %v6753_v44  ;;  %6222 = vmatprep.subr.bf16.mxu0 %v6754_v29  ;;  %v6780_v44 = vld [vmem:[#allocation8 + $0x508] sm:$0xff]   ;;  %v2735_v29 = vmax.f32 %v2668_v30, 0.0  ;;  %v2469_v30 = vadd.f32 %v8511_v53, %v8262_v32 }
 0x47e   : > { %6292 = vmatprep.subr.bf16.mxu1 %v6755_v1  ;;  %v2642_v1 = vadd.f32 %v8450_v10, %v2449_v34  ;;  %v2764_v14 = vpack.c.bf16 %v2728_v45, %v2726_v51  ;;  %v6788_v10 = vld [vmem:[#allocation8 + $0x638] sm:$0xff]   ;;  %v2658_v45 = vadd.f32 %v8469_v50, %v2465_v2  ;;  %v6819_v50 = vld [vmem:[#allocation8 + $0x728] sm:$0xff]  }
 0x47f   : > { %5186 = vmatmul.mubr.bf16.vlgmr.msra.gmra.mxu0 %v8386_v48  ;;  %v8520_v48 = vpop.f32.mrf.mxu0  ;;  %v6815_v51 = vld [vmem:[#allocation8 + $0x738] sm:$0xff]  }
 0x480   : > { %6223 = vmatpush3.bf16.msra.mxu0 %v6756_v8  ;;  %5267 = vmatprep.mubr.bf16.mxu0 %v2759_v58  ;;  %v6782_v8 = vld [vmem:[#allocation8 + $0x540] sm:$0xff]   ;;  %v2638_v58 = vadd.f32 %v8438_v55, %v2445_v40  ;;  %v2731_v34 = vmax.f32 %v2658_v45, 0.0  ;;  %v6822_v40 = vld [vmem:[#allocation8 + $0x758] sm:$0xff]  }
 0x481   : > { %6293 = vmatpush3.bf16.msra.mxu1 %v6757_v38  ;;  %6224 = vmatprep.subr.bf16.mxu0 %v6758_v13  ;;  %v2478_v6 = vpop.f32.mrf.mxu0  ;;  %v6783_v38 = vld [vmem:[#allocation8 + $0x7f0] sm:$0xff]   ;;  %v6791_v55 = vld [vmem:[#allocation8 + $0x7e0] sm:$0xff]  }
 0x482   : > { %6294 = vmatprep.subr.bf16.mxu1 %v6759_v62  ;;  %v2479_v57 = vadd.f32 %v2478_v6, %v8262_v32  ;;  %v6785_v62 = vld [vmem:[#allocation8 + $0x7b0] sm:$0xff]  }
 0x483   : > { %v6799_v6 = vld [vmem:[#allocation8 + $0x7d0] sm:$0xff]  }
 0x484   : > { %6225 = vmatpush3.bf16.msra.mxu0 %v6760_v23  ;;  %v2672_v16 = vadd.f32 %v2671_v9, %v2479_v57  ;;  %v6786_v23 = vld [vmem:[#allocation8 + $0x678] sm:$0xff]   ;;  %v6803_v9 = vld [vmem:[#allocation8 + $0x7c8] sm:$0xff]   ;;  %v6817_v32 = vld [vmem:[#allocation8 + $0x730] sm:$0xff]  }
 0x485   : > { %6295 = vmatpush3.bf16.msra.mxu1 %v6761_v60  ;;  %6226 = vmatprep.subr.bf16.mxu0 %v6762_v56  ;;  %v2725_v60 = vmax.f32 %v2642_v1, 0.0  ;;  %v2723_v56 = vmax.f32 %v2638_v58, 0.0  ;;  %v6804_v57 = vld [vmem:[#allocation8 + $0x618] sm:$0xff]   ;;  %v6829_v58 = vld [vmem:[#allocation8 + $0x700] sm:$0xff]  }
 0x486   : > { %6296 = vmatprep.subr.bf16.mxu1 %v6763_v33  ;;  %v2737_v61 = vmax.f32 %v2672_v16, 0.0  ;;  %v6790_v33 = vld [vmem:[#allocation8 + $0x670] sm:$0xff]   ;;  %v6823_v1 = vld [vmem:[#allocation8 + $0x718] sm:$0xff]  }
 0x487   : > { %v2763_v26 = vpack.c.bf16 %v2725_v60, %v2723_v56  ;;  %v6808_v16 = vld [vmem:[#allocation8 + $0x610] sm:$0xff]  }
 0x488   : > { %6227 = vmatpush3.bf16.msra.mxu0 %v6764_v19  ;;  %v2769_v13 = vpack.c.bf16 %v2737_v61, %v2735_v29  ;;  %v6792_v19 = vld [vmem:[#allocation8 + $0x630] sm:$0xff]   ;;  %v6814_v61 = vld [vmem:[#allocation8 + $0x778] sm:$0xff]  }
 0x489   : > { %6297 = vmatpush3.bf16.msra.mxu1 %v6765_v37  ;;  %6228 = vmatprep.subr.bf16.mxu0 %v6766_v43  ;;  %v6793_v37 = vld [vmem:[#allocation8 + $0x7a0] sm:$0xff]   ;;  %v6794_v43 = vld [vmem:[#allocation8 + $0x668] sm:$0xff]  }
 0x48a   : > { %6298 = vmatprep.subr.bf16.mxu1 %v6767_v47  ;;  %v6795_v47 = vld [vmem:[#allocation8 + $0x7d8] sm:$0xff]  }
 0x48c   : > { %6229 = vmatpush3.bf16.msra.mxu0 %v6768_v0  ;;  %v6796_v0 = vld [vmem:[#allocation8 + $0x628] sm:$0xff]  }
 0x48d   : > { %6299 = vmatpush3.bf16.msra.mxu1 %v6769_v24  ;;  %6230 = vmatprep.subr.bf16.mxu0 %v6770_v18  ;;  %v6797_v24 = vld [vmem:[#allocation8 + $0x798] sm:$0xff]   ;;  %v6798_v18 = vld [vmem:[#allocation8 + $0x660] sm:$0xff]  }
 0x48e   : > { %6300 = vmatprep.subr.bf16.mxu1 %v6771_v11  ;;  %v6800_v11 = vld [vmem:[#allocation8 + $0x620] sm:$0xff]  }
 0x490   : > { %6231 = vmatpush3.bf16.msra.mxu0 %v6772_v20  ;;  %v2477_v20 = vadd.f32 %v8520_v48, %v8260_v59  ;;  %v6809_v48 = vld [vmem:[#allocation8 + $0x780] sm:$0xff]   ;;  %v6811_v59 = vld [vmem:[#allocation8 + $0x608] sm:$0xff]  }
 0x491   : > { %6301 = vmatpush3.bf16.msra.mxu1 %v6773_v31  ;;  %6232 = vmatprep.subr.bf16.mxu0 %v6774_v63  ;;  %v6805_v31 = vld [vmem:[#allocation8 + $0x788] sm:$0xff]   ;;  %v6806_v63 = vld [vmem:[#allocation8 + $0x650] sm:$0xff]  }
 0x492   : > { %6302 = vmatprep.subr.bf16.mxu1 %v6775_v17  ;;  %v2670_v36 = vadd.f32 %v8522_v25, %v2477_v20  ;;  %v6807_v17 = vld [vmem:[#allocation8 + $0x7c0] sm:$0xff]   ;;  %v2662_v25 = vadd.f32 %v8513_v54, %v2469_v30 }
 0x493   : > { %v6820_v54 = vld [vmem:[#allocation8 + $0x760] sm:$0xff]  }
 0x494   : > { %6233 = vmatpush3.bf16.msra.mxu0 %v6776_v4  ;;  %v2736_v4 = vmax.f32 %v2670_v36, 0.0  ;;  %v2733_v53 = vmax.f32 %v2662_v25, 0.0 }
 0x495   : > { %6303 = vmatpush3.bf16.msra.mxu1 %v6777_v27  ;;  %6234 = vmatprep.subr.bf16.mxu0 %v6778_v21  ;;  %v2734_v27 = vmax.f32 %v2666_v35, 0.0 }
 0x496   : > { %6332 = vmatprep.subr.bf16.mxu1 %v6779_v52  ;;  %v6813_v52 = vld [vmem:[#allocation8 + $0x600] sm:$0xff]   ;;  %v2767_v29 = vpack.c.bf16 %v2733_v53, %v2731_v34 }
 0x497   : > { %v2768_v21 = vpack.c.bf16 %v2736_v4, %v2734_v27 }
 0x498   : > { %5391 = vmatmul.mubr.bf16.vlgmr.msra.gmra.mxu1 %v2764_v14  ;;  %6235 = vmatpush3.bf16.msra.mxu0 %v6780_v44  ;;  %v6816_v44 = vld [vmem:[#allocation8 + $0x770] sm:$0xff]  }
 0x499   : > { %6333 = vmatpush3.bf16.msra.mxu1 %v6781_v3  ;;  %5472 = vmatprep.mubr.bf16.mxu1 %v2769_v13  ;;  %v6821_v3 = vld [vmem:[#allocation8 + $0x720] sm:$0xff]   ;;  %v6824_v14 = vld [vmem:[#allocation8 + $0x750] sm:$0xff]  }
 0x49a   : > { %6236 = vmatprep.subr.bf16.mxu0 %v6782_v8  ;;  %6334 = vmatprep.subr.bf16.mxu1 %v6783_v38  ;;  %v6825_v8 = vld [vmem:[#allocation8 + $0x710] sm:$0xff]   ;;  %v6827_v38 = vld [vmem:[#allocation8 + $0x708] sm:$0xff]   ;;  %v6828_v13 = vld [vmem:[#allocation8 + $0x740] sm:$0xff]  }
 0x49c   : > { %6237 = vmatpush3.bf16.msra.mxu0 %v6784_v46 }
 0x49d   : > { %6335 = vmatpush3.bf16.msra.mxu1 %v6785_v62  ;;  %6266 = vmatprep.subr.bf16.mxu0 %v6786_v23 }
 0x49e   : > { %6336 = vmatprep.subr.bf16.mxu1 %v6787_v15 }
 0x49f   : > { %5268 = vmatmul.mubr.bf16.vlgmr.msra.gmra.mxu0 %v8412_v22  ;;  %v6801_v22 = vld [vmem:[#allocation8 + $0x790] sm:$0xff]   ;;  %v6018_v46 = vpop.f32.mrf.mxu0 }
 0x4a0   : > { %6267 = vmatpush3.bf16.msra.mxu0 %v6788_v10  ;;  %5349 = vmatprep.mubr.bf16.mxu0 %v2763_v26 }
 0x4a1   : > { %6337 = vmatpush3.bf16.msra.mxu1 %v6789_v28  ;;  %6268 = vmatprep.subr.bf16.mxu0 %v6790_v33  ;;  %v6019_v62 = vpop.f32.mrf.mxu0 }
 0x4a2   : > { %6338 = vmatprep.subr.bf16.mxu1 %v6791_v55  ;;  %v6020_v27 = vadd.f32 %v6019_v62, %v6018_v46 }
 0x4a3   : > { %v6021_v23 = vpop.f32.mrf.mxu0 }
 0x4a4   : > { %6269 = vmatpush3.bf16.msra.mxu0 %v6792_v19 }
 0x4a5   : > { %6339 = vmatpush3.bf16.msra.mxu1 %v6793_v37  ;;  %6270 = vmatprep.subr.bf16.mxu0 %v6794_v43  ;;  %v6022_v60 = vpop.f32.mrf.mxu0 }
 0x4a6   : > { %6340 = vmatprep.subr.bf16.mxu1 %v6795_v47  ;;  %v6023_v45 = vadd.f32 %v6022_v60, %v6021_v23 }
 0x4a8   : > { %6271 = vmatpush3.bf16.msra.mxu0 %v6796_v0 }
 0x4a9   : > { %6341 = vmatpush3.bf16.msra.mxu1 %v6797_v24  ;;  %6272 = vmatprep.subr.bf16.mxu0 %v6798_v18 }
 0x4aa   : > { %6342 = vmatprep.subr.bf16.mxu1 %v6799_v6 }
 0x4ac   : > { %6273 = vmatpush3.bf16.msra.mxu0 %v6800_v11 }
 0x4ad   : > { %6343 = vmatpush3.bf16.msra.mxu1 %v6801_v22  ;;  %6274 = vmatprep.subr.bf16.mxu0 %v6802_v39 }
 0x4ae   : > { %6344 = vmatprep.subr.bf16.mxu1 %v6803_v9 }
 0x4b0   : > { %6275 = vmatpush3.bf16.msra.mxu0 %v6804_v57 }
 0x4b1   : > { %6345 = vmatpush3.bf16.msra.mxu1 %v6805_v31  ;;  %6276 = vmatprep.subr.bf16.mxu0 %v6806_v63 }
 0x4b2   : > { %6346 = vmatprep.subr.bf16.mxu1 %v6807_v17 }
 0x4b4   : > { %6277 = vmatpush3.bf16.msra.mxu0 %v6808_v16 }
 0x4b5   : > { %6347 = vmatpush3.bf16.msra.mxu1 %v6809_v48  ;;  %6278 = vmatprep.subr.bf16.mxu0 %v6810_v5 }
 0x4b7   : > { %v6084_v28 = vpop.f32.mrf.mxu1 }
 0x4b8   : > { %5473 = vmatmul.mubr.bf16.vlgmr.msra.gmra.mxu1 %v2768_v21  ;;  %6279 = vmatpush3.bf16.msra.mxu0 %v6811_v59  ;;  %v5715_v59 = vld [vmem:[%s8617_s11] ss:$0 sm:$0xff] }
 0x4b9   : > { %6280 = vmatprep.subr.bf16.mxu0 %v6812_v12  ;;  %v6085_v26 = vpop.f32.mrf.mxu1  ;;  %v4860_v21 = vadd.f32 %v6020_v27, %v5715_v59 }
 0x4bb   : > { %v6087_v19 = vpop.f32.mrf.mxu1 }
 0x4bc   : > { %6281 = vmatpush3.bf16.msra.mxu0 %v6813_v52 }
 0x4bd   : > { %6310 = vmatprep.subr.bf16.mxu0 %v6814_v61  ;;  %v6088_v43 = vpop.f32.mrf.mxu1 }
 0x4bf   : > { %5350 = vmatmul.mubr.bf16.vlgmr.msra.gmra.mxu0 %v8457_v42  ;;  %v6826_v42 = vld [vmem:[#allocation8 + $0x748] sm:$0xff]   ;;  %v6040_v15 = vpop.f32.mrf.mxu0 }
 0x4c0   : > { %6311 = vmatpush3.bf16.msra.mxu0 %v6815_v51  ;;  %5431 = vmatprep.mubr.bf16.mxu0 %v2767_v29 }
 0x4c1   : > { %6312 = vmatprep.subr.bf16.mxu0 %v6816_v44  ;;  %v6041_v56 = vpop.f32.mrf.mxu0  ;;  %v4863_v44 = vadd.f32 %v6023_v45, %v5715_v59 }
 0x4c2   : > { %v6042_v12 = vadd.f32 %v6041_v56, %v6040_v15 }
 0x4c3   : > { %v6043_v10 = vpop.f32.mrf.mxu0 }
 0x4c4   : > { %6313 = vmatpush3.bf16.msra.mxu0 %v6817_v32  ;;  %v4901_v53 = vadd.f32 %v6042_v12, %v4860_v21 }
 0x4c5   : > { %6314 = vmatprep.subr.bf16.mxu0 %v6818_v49  ;;  %v6044_v33 = vpop.f32.mrf.mxu0 }
 0x4c6   : > { %v6045_v34 = vadd.f32 %v6044_v33, %v6043_v10 }
 0x4c8   : > { %6315 = vmatpush3.bf16.msra.mxu0 %v6819_v50 }
 0x4c9   : > { %6316 = vmatprep.subr.bf16.mxu0 %v6820_v54  ;;  %v6086_v54 = vadd.f32 %v6085_v26, %v6084_v28 }
 0x4cc   : > { %6317 = vmatpush3.bf16.msra.mxu0 %v6821_v3  ;;  %v4904_v3 = vadd.f32 %v6045_v34, %v4863_v44 }
 0x4cd   : > { %6318 = vmatprep.subr.bf16.mxu0 %v6822_v40 }
 0x4d0   : > { %6319 = vmatpush3.bf16.msra.mxu0 %v6823_v1 }
 0x4d1   : > { %6320 = vmatprep.subr.bf16.mxu0 %v6824_v14 }
 0x4d4   : > { %6321 = vmatpush3.bf16.msra.mxu0 %v6825_v8 }
 0x4d5   : > { %6322 = vmatprep.subr.bf16.mxu0 %v6826_v42 }
 0x4d8   : > { %6323 = vmatpush3.bf16.msra.mxu0 %v6827_v38  ;;  %v6128_v0 = vpop.f32.mrf.mxu1  ;;  %v6089_v38 = vadd.f32 %v6088_v43, %v6087_v19 }
 0x4d9   : > { %6324 = vmatprep.subr.bf16.mxu0 %v6828_v13 }
 0x4da   : > { %v6129_v18 = vpop.f32.mrf.mxu1 }
 0x4db   : > { %v6130_v46 = vadd.f32 %v6129_v18, %v6128_v0 }
 0x4dc   : > { %6325 = vmatpush3.bf16.msra.mxu0 %v6829_v58 }
 0x4df   : > { %5432 = vmatmul.mubr.bf16.vlgmr.msra.gmra.mxu0 %v8472_v7  ;;  %v6062_v55 = vpop.f32.mrf.mxu0  ;;  %v6131_v7 = vpop.f32.mrf.mxu1 }
 0x4e1   : > { %v6063_v37 = vpop.f32.mrf.mxu0  ;;  %v6132_v22 = vpop.f32.mrf.mxu1 }
 0x4e2   : > { %v6064_v52 = vadd.f32 %v6063_v37, %v6062_v55  ;;  %v6133_v55 = vadd.f32 %v6132_v22, %v6131_v7 }
 0x4e3   : > { %v6065_v47 = vpop.f32.mrf.mxu0 }
 0x4e4   : > { %v4942_v29 = vadd.f32 %v6064_v52, %v4901_v53 }
 0x4e5   : > { %v6066_v24 = vpop.f32.mrf.mxu0 }
 0x4e6   : > { %v6067_v32 = vadd.f32 %v6066_v24, %v6065_v47  ;;  %v4983_v14 = vadd.f32 %v6086_v54, %v4942_v29 }
 0x4e8   : > { %v4945_v1 = vadd.f32 %v6067_v32, %v4904_v3 }
 0x4ea   : > { %v4986_v62 = vadd.f32 %v6089_v38, %v4945_v1 }
 0x4f8   : > { %v6172_v9 = vpop.f32.mrf.mxu1 }
 0x4fa   : > { %v6173_v57 = vpop.f32.mrf.mxu1 }
 0x4fb   : > { %v6174_v47 = vadd.f32 %v6173_v57, %v6172_v9 }
 0x4fc   : > { %v6175_v63 = vpop.f32.mrf.mxu1 }
 0x4fe   : > { %v6176_v36 = vpop.f32.mrf.mxu1 }
 0x4ff   : > { %v6106_v6 = vpop.f32.mrf.mxu0 }
 0x501   : > { %v6107_v11 = vpop.f32.mrf.mxu0 }
 0x502   : > { %v6108_v40 = vadd.f32 %v6107_v11, %v6106_v6 }
 0x503   : > { %v6109_v39 = vpop.f32.mrf.mxu0 }
 0x504   : > { %v5024_v13 = vadd.f32 %v6108_v40, %v4983_v14 }
 0x505   : > { %v6110_v20 = vpop.f32.mrf.mxu0 }
 0x506   : > { %v6111_v58 = vadd.f32 %v6110_v20, %v6109_v39  ;;  %v5065_v10 = vadd.f32 %v6130_v46, %v5024_v13  ;;  %v6177_v39 = vadd.f32 %v6176_v36, %v6175_v63 }
 0x508   : > { %v5027_v56 = vadd.f32 %v6111_v58, %v4986_v62 }
 0x50a   : > { %v5068_v24 = vadd.f32 %v6133_v55, %v5027_v56 }
 0x518   : > { %v6216_v35 = vpop.f32.mrf.mxu1 }
 0x51a   : > { %v6217_v48 = vpop.f32.mrf.mxu1 }
 0x51c   : > { %v6219_v4 = vpop.f32.mrf.mxu1 }
 0x51e   : > { %v6220_v2 = vpop.f32.mrf.mxu1 }
 0x51f   : > { %v6150_v31 = vpop.f32.mrf.mxu0 }
 0x521   : > { %v6151_v41 = vpop.f32.mrf.mxu0 }
 0x522   : > { %v6152_v23 = vadd.f32 %v6151_v41, %v6150_v31  ;;  %v6218_v41 = vadd.f32 %v6217_v48, %v6216_v35 }
 0x523   : > { %v6153_v17 = vpop.f32.mrf.mxu0 }
 0x524   : > { %v5106_v37 = vadd.f32 %v6152_v23, %v5065_v10 }
 0x525   : > { %v6154_v16 = vpop.f32.mrf.mxu0 }
 0x526   : > { %v6155_v28 = vadd.f32 %v6154_v16, %v6153_v17  ;;  %v5147_v43 = vadd.f32 %v6174_v47, %v5106_v37  ;;  %v6221_v16 = vadd.f32 %v6220_v2, %v6219_v4 }
 0x528   : > { %v5109_v19 = vadd.f32 %v6155_v28, %v5068_v24 }
 0x52a   : > { %v5150_v59 = vadd.f32 %v6177_v39, %v5109_v19 }
 0x538   : > { %v6260_v61 = vpop.f32.mrf.mxu1 }
 0x53a   : > { %v6261_v49 = vpop.f32.mrf.mxu1 }
 0x53c   : > { %v6263_v8 = vpop.f32.mrf.mxu1 }
 0x53e   : > { %v6264_v60 = vpop.f32.mrf.mxu1 }
 0x53f   : > { %v6194_v5 = vpop.f32.mrf.mxu0  ;;  %v6265_v34 = vadd.f32 %v6264_v60, %v6263_v8 }
 0x541   : > { %v6195_v30 = vpop.f32.mrf.mxu0 }
 0x542   : > { %v6196_v6 = vadd.f32 %v6195_v30, %v6194_v5  ;;  %v6262_v30 = vadd.f32 %v6261_v49, %v6260_v61 }
 0x543   : > { %v6197_v25 = vpop.f32.mrf.mxu0 }
 0x544   : > { %v5188_v0 = vadd.f32 %v6196_v6, %v5147_v43 }
 0x545   : > { %v6198_v51 = vpop.f32.mrf.mxu0 }
 0x546   : > { %v6199_v18 = vadd.f32 %v6198_v51, %v6197_v25  ;;  %v5229_v7 = vadd.f32 %v6218_v41, %v5188_v0 }
 0x548   : > { %v5191_v21 = vadd.f32 %v6199_v18, %v5150_v59 }
 0x54a   : > { %v5232_v45 = vadd.f32 %v6221_v16, %v5191_v21 }
 0x558   : > { %v6304_v33 = vpop.f32.mrf.mxu1 }
 0x55a   : > { %v6305_v11 = vpop.f32.mrf.mxu1 }
 0x55b   : > { %v6306_v44 = vadd.f32 %v6305_v11, %v6304_v33 }
 0x55c   : > { %v6307_v20 = vpop.f32.mrf.mxu1 }
 0x55e   : > { %v6308_v22 = vpop.f32.mrf.mxu1 }
 0x55f   : > { %v6238_v50 = vpop.f32.mrf.mxu0  ;;  %v6309_v49 = vadd.f32 %v6308_v22, %v6307_v20 }
 0x561   : > { %v6239_v42 = vpop.f32.mrf.mxu0 }
 0x562   : > { %v6240_v12 = vadd.f32 %v6239_v42, %v6238_v50 }
 0x563   : > { %v6241_v15 = vpop.f32.mrf.mxu0 }
 0x564   : > { %v5270_v9 = vadd.f32 %v6240_v12, %v5229_v7 }
 0x565   : > { %v6242_v26 = vpop.f32.mrf.mxu0 }
 0x566   : > { %v6243_v57 = vadd.f32 %v6242_v26, %v6241_v15  ;;  %v5311_v25 = vadd.f32 %v6262_v30, %v5270_v9 }
 0x568   : > { %v5273_v36 = vadd.f32 %v6243_v57, %v5232_v45 }
 0x56a   : > { %v5314_v29 = vadd.f32 %v6265_v34, %v5273_v36 }
 0x578   : > { %v6348_v5 = vpop.f32.mrf.mxu1 }
 0x57a   : > { %v6349_v53 = vpop.f32.mrf.mxu1 }
 0x57b   : > { %v6350_v3 = vadd.f32 %v6349_v53, %v6348_v5 }
 0x57c   : > { %v6351_v32 = vpop.f32.mrf.mxu1 }
 0x57e   : > { %v6352_v1 = vpop.f32.mrf.mxu1 }
 0x57f   : > { %v6282_v27 = vpop.f32.mrf.mxu0  ;;  %v6353_v13 = vadd.f32 %v6352_v1, %v6351_v32 }
 0x581   : > { %v6283_v31 = vpop.f32.mrf.mxu0 }
 0x582   : > { %v6284_v52 = vadd.f32 %v6283_v31, %v6282_v27 }
 0x583   : > { %v6285_v17 = vpop.f32.mrf.mxu0 }
 0x584   : > { %v5352_v35 = vadd.f32 %v6284_v52, %v5311_v25 }
 0x585   : > { %v6286_v63 = vpop.f32.mrf.mxu0 }
 0x586   : > { %v6287_v48 = vadd.f32 %v6286_v63, %v6285_v17  ;;  %v5393_v50 = vadd.f32 %v6306_v44, %v5352_v35 }
 0x588   : > { %v5355_v2 = vadd.f32 %v6287_v48, %v5314_v29 }
 0x58a   : > { %v5396_v42 = vadd.f32 %v6309_v49, %v5355_v2 }
 0x59f   : > { %v6326_v51 = vpop.f32.mrf.mxu0 }
 0x5a1   : > { %v6327_v4 = vpop.f32.mrf.mxu0 }
 0x5a2   : > { %v6328_v54 = vadd.f32 %v6327_v4, %v6326_v51 }
 0x5a3   : > { %v6329_v61 = vpop.f32.mrf.mxu0 }
 0x5a4   : > { %v5434_v40 = vadd.f32 %v6328_v54, %v5393_v50 }
 0x5a5   : > { %v6330_v14 = vpop.f32.mrf.mxu0 }
 0x5a6   : > { %v5475_v8 = vadd.f32 %v6350_v3, %v5434_v40  ;;  %v6331_v38 = vadd.f32 %v6330_v14, %v6329_v61 }
 0x5a8   : > { %5481 = vst [vmem:[%s476_s29] sm:$0xff] %v5475_v8  ;;  %v5437_v58 = vadd.f32 %v6331_v38, %v5396_v42 }
 0x5aa   : > { %v5478_v46 = vadd.f32 %v6353_v13, %v5437_v58 }
 0x5ac   : > { %5482 = vst [vmem:[%s476_s29 + $0x8] sm:$0xff] %v5478_v46 }
 0x5ad   : > { %6949 = shalt.err (!%p6946_p9)
}
 0x5ae   : > { %s6950_s23 = scalar_lea.hbm %s8563_s13, 256  ;;  %s6954_s17 = scalar_lea.hbm %s8618_s12, 512 }
 0x5af   : > { %p6951_p1 = scmp.ne.s32.totalorder %s8563_s13, %s6950_s23  ;;  %p6955_p8 = scmp.lt.s32.totalorder %s8563_s13, %s8618_s12 }
 0x5b0   : > { %p6956_p3 = scmp.lt.s32.totalorder %s6954_s17, %s6950_s23 }
 0x5b1   : > { %p6952_p4 = pnand %p6951_p1, %p8654_p12 }
 0x5b2   : > { %p6957_p11 = por %p6956_p3, %p6955_p8 }
 0x5b3   : > { %p6953_p6 = pneg %p6952_p4 }
 0x5b5   : > { %p6958_p7 = pnand %p6957_p11, %p6953_p6 }
 0x5b7   : > { %6961 = shalt.err (!%p6958_p7)
}
 0x5b8   : > { %s7022_s19 = smov 128   ;;  %s7023_s14 = smov 8  }
 0x5b9   : > { %6412 = dma.vmem_to_hbm [thread:$0]  (%p8654_p12), %s8558_s18, 256, %s8563_s13, %s5484_s26, %s7022_s19, %s7022_s19, %s7023_s14  }
 0x5ba PF: > { %s8655_s7 = sld [smem:[#allocation16_spill]]  ;;  %s5512_s25 = sand.u32 1, %s6996_s21  }
 0x5bb   : > { %p8657_p0 = scmp.ge.s32.totalorder %s7008_s24, 2  ;;  %s5513_s10 = scalar_lea.sflag [#allocation4], %s5512_s25 }
 0x5c0   : > { %p8656_p13 = scmp.ne.s32.totalorder %s8655_s7, 0 }
 0x5c2   : > { %p6429_p5 = pnand %p8657_p0, %p8656_p13 }
 0x5c4   : > { %p6430_p10 = pneg %p6429_p5 }
 0x5c6   : > { %6991 = dma.done.wait (%p6430_p10), %s5513_s10, 256  }
 0x5c7   : > { %6993 = vsyncadd (%p6430_p10), %s5513_s10, 4294967040  ;;  %s8658_s28 = sld [smem:[#allocation15_spill]]  ;;  %p27_p2 = scmp.ge.s32.totalorder %s7167_s30, 4  }
 0x5c8   : > { %s8659_s23 = sld [smem:[#allocation17_spill]]  ;;  %s8660_s21 = smov %s7000_s22 }
 0x5c9   : > { %s8662_s24 = smov %s7167_s30  ;;  %29 = sbr.rel (!%p27_p2) target bundleno = 11 (0xb), region = 125 }
 0x5cd   : > { %s8661_s22 = smov %s8658_s28 }
 0x5ce   :  { %5518 = vsyncpa [#allocation3], 1 }
 0x5cf   :  { %5520 = vsyncpa [#allocation3 + $0x1], 1 }
 0x5d0   :  { %5521 = vsyncpa [#allocation6], 1 }
 0x5d1   :  { %5522 = vsyncpa [#allocation9], 1 }
 0x5d2   :  { %5523 = vsyncpa [#allocation4], 1 }
 0x5d3   :  { %5525 = vsyncpa [#allocation4 + $0x1], 1 }

</bundles_post_ra>
